<compile_context>
chip_gen: v7x
topology: tpu7x:2x2x1
jax: 0.10.0
libtpu: 0.0.40
codegen_flags: <defaults>
</compile_context>

<pallas_src>
import functools

import jax
import jax.numpy as jnp
from jax import lax
from jax.experimental import pallas as pl
from jax.experimental.pallas import tpu as pltpu

EPS = 1e-5                      # nn.BatchNorm2d default eps
VMEM_LIMIT = 32 * 1024 * 1024   # explicit scoped-VMEM budget (safe on v5e/v6e/v7x)


# ----------------------- kernel A: tiled conv-as-matmul + folded BN + ReLU ----------
def conv_mm_kernel(p_ref, w_ref, s_ref, o_ref):
    # p_ref: (TM, K) patches   w_ref: (K, N)   s_ref: (1, N) f32   o_ref: (TM, N)
    z = jnp.dot(p_ref[...], w_ref[...], preferred_element_type=jnp.float32)
    o_ref[...] = jnp.maximum(z + s_ref[...], 0.0).astype(o_ref.dtype)


def _conv_call(patches, wmat, shift, out_dtype, tm=512):
    M, K = patches.shape
    N = wmat.shape[1]
    tm = M if M <= tm else tm           # full-dim block when M is small
    grid = (pl.cdiv(M, tm),)
    return pl.pallas_call(
        conv_mm_kernel,
        out_shape=jax.ShapeDtypeStruct((M, N), out_dtype),
        grid_spec=pltpu.PrefetchScalarGridSpec(
            num_scalar_prefetch=0,
            grid=grid,
            in_specs=[
                pl.BlockSpec((tm, K), lambda i: (i, 0)),
                pl.BlockSpec((K, N), lambda i: (0, 0)),
                pl.BlockSpec((1, N), lambda i: (0, 0)),
            ],
            out_specs=pl.BlockSpec((tm, N), lambda i: (i, 0)),
        ),
        compiler_params=pltpu.CompilerParams(
            dimension_semantics=("parallel",),
            vmem_limit_bytes=VMEM_LIMIT,
        ),
    )(patches, wmat, shift)


# ----------------------- kernel B: batched fused MLP head ---------------------------
def head_kernel(f_ref, a_ref, w1i_ref, w1a_ref, b1_ref, w2_ref, b2_ref,
                w3_ref, b3_ref, wa_ref, ba_ref, o_ref, *, inv_max_action):
    # f_ref: (TB, 81) f32  a_ref: (TB, A) f32  o_ref: (TB, 1) f32
    f = f_ref[...].astype(w1i_ref.dtype)
    a = (a_ref[...] * inv_max_action).astype(w1a_ref.dtype)
    h = jnp.dot(f, w1i_ref[...], preferred_element_type=jnp.float32)
    h = h + jnp.dot(a, w1a_ref[...], preferred_element_type=jnp.float32)
    h = jnp.maximum(h + b1_ref[...], 0.0)
    h = jnp.maximum(jnp.dot(h.astype(w2_ref.dtype), w2_ref[...],
                            preferred_element_type=jnp.float32) + b2_ref[...], 0.0)
    h = jnp.maximum(jnp.dot(h.astype(w3_ref.dtype), w3_ref[...],
                            preferred_element_type=jnp.float32) + b3_ref[...], 0.0)
    o_ref[...] = jnp.dot(h.astype(wa_ref.dtype), wa_ref[...],
                         preferred_element_type=jnp.float32) + ba_ref[...]


def _head_call(features, actions, prep, max_action, tb=256):
    B, F = features.shape
    A = actions.shape[1]
    tb = B if B <= tb else tb
    kernel = functools.partial(head_kernel, inv_max_action=1.0 / float(max_action))
    return pl.pallas_call(
        kernel,
        out_shape=jax.ShapeDtypeStruct((B, 1), jnp.float32),
        grid_spec=pltpu.PrefetchScalarGridSpec(
            num_scalar_prefetch=0,
            grid=(pl.cdiv(B, tb),),
            in_specs=[
                pl.BlockSpec((tb, F), lambda i: (i, 0)),
                pl.BlockSpec((tb, A), lambda i: (i, 0)),
                pl.BlockSpec(prep["w1i"].shape, lambda i: (0, 0)),
                pl.BlockSpec(prep["w1a"].shape, lambda i: (0, 0)),
                pl.BlockSpec(prep["b1"].shape, lambda i: (0, 0)),
                pl.BlockSpec(prep["w2"].shape, lambda i: (0, 0)),
                pl.BlockSpec(prep["b2"].shape, lambda i: (0, 0)),
                pl.BlockSpec(prep["w3"].shape, lambda i: (0, 0)),
                pl.BlockSpec(prep["b3"].shape, lambda i: (0, 0)),
                pl.BlockSpec(prep["wa"].shape, lambda i: (0, 0)),
                pl.BlockSpec(prep["ba"].shape, lambda i: (0, 0)),
            ],
            out_specs=pl.BlockSpec((tb, 1), lambda i: (i, 0)),
        ),
        compiler_params=pltpu.CompilerParams(
            dimension_semantics=("parallel",),
            vmem_limit_bytes=VMEM_LIMIT,
        ),
    )(features, actions.astype(jnp.float32), prep["w1i"], prep["w1a"], prep["b1"],
      prep["w2"], prep["b2"], prep["w3"], prep["b3"], prep["wa"], prep["ba"])


# ----------------------- glue: window extraction (XLA) ------------------------------
def _im2col(x, stride, ksize=3):
    # x: [B, H, W, C] -> [B, Ho, Wo, ksize*ksize*C], feature order (di, dj, c)
    B, H, W, C = x.shape
    Ho = (H - ksize) // stride + 1
    Wo = (W - ksize) // stride + 1
    taps = [x[:, di:di + stride * (Ho - 1) + 1:stride,
               dj:dj + stride * (Wo - 1) + 1:stride, :]
            for di in range(ksize) for dj in range(ksize)]
    return jnp.concatenate(taps, axis=-1)


# ----------------------- forward -----------------------------------------------------
def sym_image_critic_forward(x_nchw, actions, prep, *, max_action):
    """sym_image_critic.forward(x, actions) with eval-mode BatchNorm."""
    B = x_nchw.shape[0]
    x = jnp.transpose(x_nchw, (0, 2, 3, 1)).astype(jnp.bfloat16)         # [B, H, W, Cin]

    p1 = _im2col(x, 2)                                                   # [B, 49, 49, 36]
    _, H1, W1, F1 = p1.shape
    y1 = _conv_call(p1.reshape(B * H1 * W1, F1), prep["cw1"], prep["cs1"], jnp.bfloat16)
    y1 = y1.reshape(B, H1, W1, -1)                                       # [B, 49, 49, 32]

    p2 = _im2col(y1, 2)                                                  # [B, 24, 24, 288]
    _, H2, W2, F2 = p2.shape
    y2 = _conv_call(p2.reshape(B * H2 * W2, F2), prep["cw2"], prep["cs2"], jnp.bfloat16)
    y2 = y2.reshape(B, H2, W2, -1)                                       # [B, 24, 24, 64]

    p3 = _im2col(y2, 2)                                                  # [B, 11, 11, 576]
    _, H3, W3, F3 = p3.shape
    y3 = _conv_call(p3.reshape(B * H3 * W3, F3), prep["cw3"], prep["cs3"], jnp.float32)
    y3 = y3.reshape(B, H3, W3, -1)                                       # [B, 11, 11, 32]

    p4 = _im2col(y3, 1)                                                  # [B, 9, 9, 288]
    _, H4, W4, F4 = p4.shape
    y4 = _conv_call(p4.reshape(B * H4 * W4, F4), prep["cw4"], prep["cs4"], jnp.float32)
    feats = y4.reshape(B, H4 * W4)                                       # [B, 81] (NCHW flatten order)

    return _head_call(feats, actions, prep, max_action)                  # [B, 1]


# ----------------------- one-time weight prep (BN fold, fc1 split, bf16) -------------
def prepare_params(p):
    def fold_conv(w, b, g, beta, mean, var):
        cout, cin, kh, kw = w.shape
        scale = g / jnp.sqrt(var + EPS)
        wmat = jnp.transpose(w, (2, 3, 1, 0)).reshape(kh * kw * cin, cout) * scale[None, :]
        shift = ((b - mean) * scale + beta).reshape(1, cout)
        return wmat, shift

    cw1, cs1 = fold_conv(p["wc1"], p["bc1"], p["bn1_g"], p["bn1_b"], p["bn1_m"], p["bn1_v"])
    cw2, cs2 = fold_conv(p["wc2"], p["bc2"], p["bn2_g"], p["bn2_b"], p["bn2_m"], p["bn2_v"])
    cw3, cs3 = fold_conv(p["wc3"], p["bc3"], p["bn3_g"], p["bn3_b"], p["bn3_m"], p["bn3_v"])
    cw4, cs4 = fold_conv(p["wc4"], p["bc4"], p["bn4_g"], p["bn4_b"], p["bn4_m"], p["bn4_v"])
    hid = p["w1"].shape[1]
    return {
        "cw1": cw1.astype(jnp.bfloat16), "cs1": cs1,
        "cw2": cw2.astype(jnp.bfloat16), "cs2": cs2,
        "cw3": cw3.astype(jnp.bfloat16), "cs3": cs3,
        "cw4": cw4,                      "cs4": cs4,          # f32: cnn4 is tiny, keep exact
        # fc1: first 81 rows = NCHW flatten of the 1x9x9 map, rest = action columns.
        "w1i": p["w1"][:81].astype(jnp.bfloat16),
        "w1a": p["w1"][81:].astype(jnp.bfloat16),
        "b1": p["b1"].reshape(1, hid),
        "w2": p["w2"].astype(jnp.bfloat16), "b2": p["b2"].reshape(1, hid),
        "w3": p["w3"].astype(jnp.bfloat16), "b3": p["b3"].reshape(1, hid),
        "wa": p["wa"].astype(jnp.bfloat16), "ba": p["ba"].reshape(1, 1),
    }


# ----------------------- deterministic parameter init (torch-default-style) ----------
def init_params(key, in_chan, action_dim):
    ks = jax.random.split(key, 16)

    def uniform(k, shape, fan_in):
        bound = 1.0 / (fan_in ** 0.5)
        return jax.random.uniform(k, shape, jnp.float32, -bound, bound)

    def bn(c):
        return (jnp.ones((c,), jnp.float32), jnp.zeros((c,), jnp.float32),
                jnp.zeros((c,), jnp.float32), jnp.ones((c,), jnp.float32))

    p = {}
    p["wc1"] = uniform(ks[0], (32, in_chan, 3, 3), in_chan * 9)
    p["bc1"] = uniform(ks[1], (32,), in_chan * 9)
    p["bn1_g"], p["bn1_b"], p["bn1_m"], p["bn1_v"] = bn(32)
    p["wc2"] = uniform(ks[2], (64, 32, 3, 3), 32 * 9)
    p["bc2"] = uniform(ks[3], (64,), 32 * 9)
    p["bn2_g"], p["bn2_b"], p["bn2_m"], p["bn2_v"] = bn(64)
    p["wc3"] = uniform(ks[4], (32, 64, 3, 3), 64 * 9)
    p["bc3"] = uniform(ks[5], (32,), 64 * 9)
    p["bn3_g"], p["bn3_b"], p["bn3_m"], p["bn3_v"] = bn(32)
    p["wc4"] = uniform(ks[6], (1, 32, 3, 3), 32 * 9)
    p["bc4"] = uniform(ks[7], (1,), 32 * 9)
    p["bn4_g"], p["bn4_b"], p["bn4_m"], p["bn4_v"] = bn(1)
    fin = 81 + action_dim                                    # = 85 for the module
    p["w1"] = uniform(ks[8], (fin, 256), fin)
    p["b1"] = uniform(ks[9], (256,), fin)
    p["w2"] = uniform(ks[10], (256, 256), 256)
    p["b2"] = uniform(ks[11], (256,), 256)
    p["w3"] = uniform(ks[12], (256, 256), 256)
    p["b3"] = uniform(ks[13], (256,), 256)
    p["wa"] = uniform(ks[14], (256, 1), 256)
    p["ba"] = uniform(ks[15], (1,), 256)
    return p


# ----------------------- pure-JAX reference (f32) ------------------------------------
def reference_forward(x_nchw, actions, p, max_action):
    def conv_bn_relu(x, w, b, g, beta, mean, var, stride):
        z = lax.conv_general_dilated(x, w, (stride, stride), "VALID",
                                     dimension_numbers=("NCHW", "OIHW", "NCHW"))
        z = z + b[None, :, None, None]
        scale = g / jnp.sqrt(var + EPS)
        z = (z - mean[None, :, None, None]) * scale[None, :, None, None] \
            + beta[None, :, None, None]
        return jnp.maximum(z, 0.0)

    z = conv_bn_relu(x_nchw, p["wc1"], p["bc1"], p["bn1_g"], p["bn1_b"], p["bn1_m"], p["bn1_v"], 2)
    z = conv_bn_relu(z, p["wc2"], p["bc2"], p["bn2_g"], p["bn2_b"], p["bn2_m"], p["bn2_v"], 2)
    z = conv_bn_relu(z, p["wc3"], p["bc3"], p["bn3_g"], p["bn3_b"], p["bn3_m"], p["bn3_v"], 2)
    z = conv_bn_relu(z, p["wc4"], p["bc4"], p["bn4_g"], p["bn4_b"], p["bn4_m"], p["bn4_v"], 1)
    f = z.reshape(z.shape[0], -1)                            # torch NCHW flatten order
    f = jnp.concatenate([f, actions / max_action], axis=1)
    h = jnp.maximum(f @ p["w1"] + p["b1"], 0.0)
    h = jnp.maximum(h @ p["w2"] + p["b2"], 0.0)
    h = jnp.maximum(h @ p["w3"] + p["b3"], 0.0)
    return h @ p["wa"] + p["ba"]


if __name__ == "__main__":
    B, ACTION_DIM, MAX_ACTION = 2, 4, 2.0
    IN_CHAN = 4          # env_params['depth'] = True
    IMG = 100            # 100x100 -> 49 -> 24 -> 11 -> 9x9 -> 81 (+4 actions) = 85

    key = jax.random.PRNGKey(0)
    kx, ka, kp = jax.random.split(key, 3)
    x = jax.random.normal(kx, (B, IN_CHAN, IMG, IMG), jnp.float32)
    actions = jax.random.uniform(ka, (B, ACTION_DIM), jnp.float32, -MAX_ACTION, MAX_ACTION)
    params = init_params(kp, IN_CHAN, ACTION_DIM)
    prep = prepare_params(params)

    fwd = jax.jit(sym_image_critic_forward, static_argnames="max_action")
    q = jax.block_until_ready(fwd(x, actions, prep, max_action=MAX_ACTION))
    ref = jax.block_until_ready(reference_forward(x, actions, params, MAX_ACTION))

    assert q.shape == (B, 1)
    assert bool(jnp.all(jnp.isfinite(q)))
    err = float(jnp.max(jnp.abs(q - ref)))
    assert err < 1e-2, f"max abs diff {err}"
    print("KERNEL_OK")
</pallas_src>

<mosaic_0001>
module attributes {stable_mosaic.version = 11 : i64} {
  func.func @conv_mm_kernel(%arg0: i32, %arg1: memref<512x36xbf16, #tpu.memory_space<vmem>>, %arg2: memref<36x32xbf16, #tpu.memory_space<vmem>>, %arg3: memref<1x32xf32, #tpu.memory_space<vmem>>, %arg4: memref<512x32xbf16, #tpu.memory_space<vmem>>) attributes {dimension_semantics = [#tpu.dimension_semantics<parallel>], iteration_bounds = array<i64: 10>, scalar_prefetch = 0 : i64, scratch_operands = 0 : i64, tpu.core_type = #tpu.core_type<tc>, window_params = [{transform_indices = @transform_0, window_bounds = array<i64: 512, 36>}, {pipeline_mode = #tpu.pipeline_mode<synchronous>, transform_indices = @transform_1, window_bounds = array<i64: 36, 32>}, {pipeline_mode = #tpu.pipeline_mode<synchronous>, transform_indices = @transform_2, window_bounds = array<i64: 1, 32>}, {transform_indices = @transform_3, window_bounds = array<i64: 512, 32>}]} {
    %c0 = arith.constant 0 : index
    %c0_0 = arith.constant 0 : index
    %0 = vector.load %arg1[%c0, %c0_0] : memref<512x36xbf16, #tpu.memory_space<vmem>>, vector<512x36xbf16>
    %c0_1 = arith.constant 0 : index
    %c0_2 = arith.constant 0 : index
    %1 = vector.load %arg2[%c0_1, %c0_2] : memref<36x32xbf16, #tpu.memory_space<vmem>>, vector<36x32xbf16>
    %cst = arith.constant dense<0.000000e+00> : vector<512x32xf32>
    %2 = tpu.matmul %0, %1, %cst {dimension_numbers = #tpu.dot_dimension_numbers<[1], [0], [0], [1], [0, 0, 1, 1], [], []>} : vector<512x36xbf16>, vector<36x32xbf16>, vector<512x32xf32> -> vector<512x32xf32>
    %c0_3 = arith.constant 0 : index
    %c0_4 = arith.constant 0 : index
    %3 = vector.load %arg3[%c0_3, %c0_4] : memref<1x32xf32, #tpu.memory_space<vmem>>, vector<1x32xf32>
    %4 = vector.broadcast %3 : vector<1x32xf32> to vector<512x32xf32>
    %5 = arith.addf %2, %4 : vector<512x32xf32>
    %cst_5 = arith.constant 0.000000e+00 : f32
    %6 = vector.broadcast %cst_5 : f32 to vector<512x32xf32>
    %7 = arith.maximumf %5, %6 : vector<512x32xf32>
    %8 = arith.truncf %7 : vector<512x32xf32> to vector<512x32xbf16>
    %c0_6 = arith.constant 0 : index
    %c0_7 = arith.constant 0 : index
    %9 = vector.load %arg4[%c0_6, %c0_7] : memref<512x32xbf16, #tpu.memory_space<vmem>>, vector<512x32xbf16>
    tpu.vector_store %arg4[%c0_6, %c0_7], %8 {strides = array<i32>} : memref<512x32xbf16, #tpu.memory_space<vmem>>, vector<512x32xbf16>,
    return
  }
  func.func @transform_0(%arg0: i32) -> (i32, i32) {
    %c0_i32 = arith.constant 0 : i32
    %c0_i32_0 = arith.constant 0 : i32
    return %arg0, %c0_i32 : i32, i32
  }
  func.func @transform_1(%arg0: i32) -> (i32, i32) {
    %c0_i32 = arith.constant 0 : i32
    %c0_i32_0 = arith.constant 0 : i32
    %c0_i32_1 = arith.constant 0 : i32
    return %c0_i32, %c0_i32_0 : i32, i32
  }
  func.func @transform_2(%arg0: i32) -> (i32, i32) {
    %c0_i32 = arith.constant 0 : i32
    %c0_i32_0 = arith.constant 0 : i32
    %c0_i32_1 = arith.constant 0 : i32
    return %c0_i32, %c0_i32_0 : i32, i32
  }
  func.func @transform_3(%arg0: i32) -> (i32, i32) {
    %c0_i32 = arith.constant 0 : i32
    %c0_i32_0 = arith.constant 0 : i32
    return %arg0, %c0_i32 : i32, i32
  }
}

module attributes {stable_mosaic.version = 11 : i64} {
  func.func @conv_mm_kernel(%arg0: i32, %arg1: memref<512x288xbf16, #tpu.memory_space<vmem>>, %arg2: memref<288x64xbf16, #tpu.memory_space<vmem>>, %arg3: memref<1x64xf32, #tpu.memory_space<vmem>>, %arg4: memref<512x64xbf16, #tpu.memory_space<vmem>>) attributes {dimension_semantics = [#tpu.dimension_semantics<parallel>], iteration_bounds = array<i64: 3>, scalar_prefetch = 0 : i64, scratch_operands = 0 : i64, tpu.core_type = #tpu.core_type<tc>, window_params = [{transform_indices = @transform_0, window_bounds = array<i64: 512, 288>}, {pipeline_mode = #tpu.pipeline_mode<synchronous>, transform_indices = @transform_1, window_bounds = array<i64: 288, 64>}, {pipeline_mode = #tpu.pipeline_mode<synchronous>, transform_indices = @transform_2, window_bounds = array<i64: 1, 64>}, {transform_indices = @transform_3, window_bounds = array<i64: 512, 64>}]} {
    %c0 = arith.constant 0 : index
    %c0_0 = arith.constant 0 : index
    %0 = vector.load %arg1[%c0, %c0_0] : memref<512x288xbf16, #tpu.memory_space<vmem>>, vector<512x288xbf16>
    %c0_1 = arith.constant 0 : index
    %c0_2 = arith.constant 0 : index
    %1 = vector.load %arg2[%c0_1, %c0_2] : memref<288x64xbf16, #tpu.memory_space<vmem>>, vector<288x64xbf16>
    %cst = arith.constant dense<0.000000e+00> : vector<512x64xf32>
    %2 = tpu.matmul %0, %1, %cst {dimension_numbers = #tpu.dot_dimension_numbers<[1], [0], [0], [1], [0, 0, 1, 1], [], []>} : vector<512x288xbf16>, vector<288x64xbf16>, vector<512x64xf32> -> vector<512x64xf32>
    %c0_3 = arith.constant 0 : index
    %c0_4 = arith.constant 0 : index
    %3 = vector.load %arg3[%c0_3, %c0_4] : memref<1x64xf32, #tpu.memory_space<vmem>>, vector<1x64xf32>
    %4 = vector.broadcast %3 : vector<1x64xf32> to vector<512x64xf32>
    %5 = arith.addf %2, %4 : vector<512x64xf32>
    %cst_5 = arith.constant 0.000000e+00 : f32
    %6 = vector.broadcast %cst_5 : f32 to vector<512x64xf32>
    %7 = arith.maximumf %5, %6 : vector<512x64xf32>
    %8 = arith.truncf %7 : vector<512x64xf32> to vector<512x64xbf16>
    %c0_6 = arith.constant 0 : index
    %c0_7 = arith.constant 0 : index
    %9 = vector.load %arg4[%c0_6, %c0_7] : memref<512x64xbf16, #tpu.memory_space<vmem>>, vector<512x64xbf16>
    tpu.vector_store %arg4[%c0_6, %c0_7], %8 {strides = array<i32>} : memref<512x64xbf16, #tpu.memory_space<vmem>>, vector<512x64xbf16>,
    return
  }
  func.func @transform_0(%arg0: i32) -> (i32, i32) {
    %c0_i32 = arith.constant 0 : i32
    %c0_i32_0 = arith.constant 0 : i32
    return %arg0, %c0_i32 : i32, i32
  }
  func.func @transform_1(%arg0: i32) -> (i32, i32) {
    %c0_i32 = arith.constant 0 : i32
    %c0_i32_0 = arith.constant 0 : i32
    %c0_i32_1 = arith.constant 0 : i32
    return %c0_i32, %c0_i32_0 : i32, i32
  }
  func.func @transform_2(%arg0: i32) -> (i32, i32) {
    %c0_i32 = arith.constant 0 : i32
    %c0_i32_0 = arith.constant 0 : i32
    %c0_i32_1 = arith.constant 0 : i32
    return %c0_i32, %c0_i32_0 : i32, i32
  }
  func.func @transform_3(%arg0: i32) -> (i32, i32) {
    %c0_i32 = arith.constant 0 : i32
    %c0_i32_0 = arith.constant 0 : i32
    return %arg0, %c0_i32 : i32, i32
  }
}

module attributes {stable_mosaic.version = 11 : i64} {
  func.func @conv_mm_kernel(%arg0: i32, %arg1: memref<242x576xbf16, #tpu.memory_space<vmem>>, %arg2: memref<576x32xbf16, #tpu.memory_space<vmem>>, %arg3: memref<1x32xf32, #tpu.memory_space<vmem>>, %arg4: memref<242x32xf32, #tpu.memory_space<vmem>>) attributes {dimension_semantics = [#tpu.dimension_semantics<parallel>], iteration_bounds = array<i64: 1>, scalar_prefetch = 0 : i64, scratch_operands = 0 : i64, tpu.core_type = #tpu.core_type<tc>, window_params = [{transform_indices = @transform_0, window_bounds = array<i64: 242, 576>}, {pipeline_mode = #tpu.pipeline_mode<synchronous>, transform_indices = @transform_1, window_bounds = array<i64: 576, 32>}, {pipeline_mode = #tpu.pipeline_mode<synchronous>, transform_indices = @transform_2, window_bounds = array<i64: 1, 32>}, {transform_indices = @transform_3, window_bounds = array<i64: 242, 32>}]} {
    %c0 = arith.constant 0 : index
    %c0_0 = arith.constant 0 : index
    %0 = vector.load %arg1[%c0, %c0_0] : memref<242x576xbf16, #tpu.memory_space<vmem>>, vector<242x576xbf16>
    %c0_1 = arith.constant 0 : index
    %c0_2 = arith.constant 0 : index
    %1 = vector.load %arg2[%c0_1, %c0_2] : memref<576x32xbf16, #tpu.memory_space<vmem>>, vector<576x32xbf16>
    %cst = arith.constant dense<0.000000e+00> : vector<242x32xf32>
    %2 = tpu.matmul %0, %1, %cst {dimension_numbers = #tpu.dot_dimension_numbers<[1], [0], [0], [1], [0, 0, 1, 1], [], []>} : vector<242x576xbf16>, vector<576x32xbf16>, vector<242x32xf32> -> vector<242x32xf32>
    %c0_3 = arith.constant 0 : index
    %c0_4 = arith.constant 0 : index
    %3 = vector.load %arg3[%c0_3, %c0_4] : memref<1x32xf32, #tpu.memory_space<vmem>>, vector<1x32xf32>
    %4 = vector.broadcast %3 : vector<1x32xf32> to vector<242x32xf32>
    %5 = arith.addf %2, %4 : vector<242x32xf32>
    %cst_5 = arith.constant 0.000000e+00 : f32
    %6 = vector.broadcast %cst_5 : f32 to vector<242x32xf32>
    %7 = arith.maximumf %5, %6 : vector<242x32xf32>
    %c0_6 = arith.constant 0 : index
    %c0_7 = arith.constant 0 : index
    %8 = vector.load %arg4[%c0_6, %c0_7] : memref<242x32xf32, #tpu.memory_space<vmem>>, vector<242x32xf32>
    tpu.vector_store %arg4[%c0_6, %c0_7], %7 {strides = array<i32>} : memref<242x32xf32, #tpu.memory_space<vmem>>, vector<242x32xf32>,
    return
  }
  func.func @transform_0(%arg0: i32) -> (i32, i32) {
    %c0_i32 = arith.constant 0 : i32
    %c0_i32_0 = arith.constant 0 : i32
    return %arg0, %c0_i32 : i32, i32
  }
  func.func @transform_1(%arg0: i32) -> (i32, i32) {
    %c0_i32 = arith.constant 0 : i32
    %c0_i32_0 = arith.constant 0 : i32
    %c0_i32_1 = arith.constant 0 : i32
    return %c0_i32, %c0_i32_0 : i32, i32
  }
  func.func @transform_2(%arg0: i32) -> (i32, i32) {
    %c0_i32 = arith.constant 0 : i32
    %c0_i32_0 = arith.constant 0 : i32
    %c0_i32_1 = arith.constant 0 : i32
    return %c0_i32, %c0_i32_0 : i32, i32
  }
  func.func @transform_3(%arg0: i32) -> (i32, i32) {
    %c0_i32 = arith.constant 0 : i32
    %c0_i32_0 = arith.constant 0 : i32
    return %arg0, %c0_i32 : i32, i32
  }
}

module attributes {stable_mosaic.version = 11 : i64} {
  func.func @conv_mm_kernel(%arg0: i32, %arg1: memref<162x288xf32, #tpu.memory_space<vmem>>, %arg2: memref<288x1xf32, #tpu.memory_space<vmem>>, %arg3: memref<1x1xf32, #tpu.memory_space<vmem>>, %arg4: memref<162x1xf32, #tpu.memory_space<vmem>>) attributes {dimension_semantics = [#tpu.dimension_semantics<parallel>], iteration_bounds = array<i64: 1>, scalar_prefetch = 0 : i64, scratch_operands = 0 : i64, tpu.core_type = #tpu.core_type<tc>, window_params = [{transform_indices = @transform_0, window_bounds = array<i64: 162, 288>}, {pipeline_mode = #tpu.pipeline_mode<synchronous>, transform_indices = @transform_1, window_bounds = array<i64: 288, 1>}, {pipeline_mode = #tpu.pipeline_mode<synchronous>, transform_indices = @transform_2, window_bounds = array<i64: 1, 1>}, {transform_indices = @transform_3, window_bounds = array<i64: 162, 1>}]} {
    %c0 = arith.constant 0 : index
    %c0_0 = arith.constant 0 : index
    %0 = vector.load %arg1[%c0, %c0_0] : memref<162x288xf32, #tpu.memory_space<vmem>>, vector<162x288xf32>
    %c0_1 = arith.constant 0 : index
    %c0_2 = arith.constant 0 : index
    %1 = vector.load %arg2[%c0_1, %c0_2] : memref<288x1xf32, #tpu.memory_space<vmem>>, vector<288x1xf32>
    %cst = arith.constant dense<0.000000e+00> : vector<162x1xf32>
    %2 = tpu.matmul %0, %1, %cst {dimension_numbers = #tpu.dot_dimension_numbers<[1], [0], [0], [1], [0, 0, 1, 1], [], []>} : vector<162x288xf32>, vector<288x1xf32>, vector<162x1xf32> -> vector<162x1xf32>
    %c0_3 = arith.constant 0 : index
    %c0_4 = arith.constant 0 : index
    %3 = vector.load %arg3[%c0_3, %c0_4] : memref<1x1xf32, #tpu.memory_space<vmem>>, vector<1x1xf32>
    %4 = vector.broadcast %3 : vector<1x1xf32> to vector<162x1xf32>
    %5 = arith.addf %2, %4 : vector<162x1xf32>
    %cst_5 = arith.constant 0.000000e+00 : f32
    %6 = vector.broadcast %cst_5 : f32 to vector<162x1xf32>
    %7 = arith.maximumf %5, %6 : vector<162x1xf32>
    %c0_6 = arith.constant 0 : index
    %c0_7 = arith.constant 0 : index
    %8 = vector.load %arg4[%c0_6, %c0_7] : memref<162x1xf32, #tpu.memory_space<vmem>>, vector<162x1xf32>
    tpu.vector_store %arg4[%c0_6, %c0_7], %7 {strides = array<i32>} : memref<162x1xf32, #tpu.memory_space<vmem>>, vector<162x1xf32>,
    return
  }
  func.func @transform_0(%arg0: i32) -> (i32, i32) {
    %c0_i32 = arith.constant 0 : i32
    %c0_i32_0 = arith.constant 0 : i32
    return %arg0, %c0_i32 : i32, i32
  }
  func.func @transform_1(%arg0: i32) -> (i32, i32) {
    %c0_i32 = arith.constant 0 : i32
    %c0_i32_0 = arith.constant 0 : i32
    %c0_i32_1 = arith.constant 0 : i32
    return %c0_i32, %c0_i32_0 : i32, i32
  }
  func.func @transform_2(%arg0: i32) -> (i32, i32) {
    %c0_i32 = arith.constant 0 : i32
    %c0_i32_0 = arith.constant 0 : i32
    %c0_i32_1 = arith.constant 0 : i32
    return %c0_i32, %c0_i32_0 : i32, i32
  }
  func.func @transform_3(%arg0: i32) -> (i32, i32) {
    %c0_i32 = arith.constant 0 : i32
    %c0_i32_0 = arith.constant 0 : i32
    return %arg0, %c0_i32 : i32, i32
  }
}

module attributes {stable_mosaic.version = 11 : i64} {
  func.func @head_kernel(%arg0: i32, %arg1: memref<2x81xf32, #tpu.memory_space<vmem>>, %arg2: memref<2x4xf32, #tpu.memory_space<vmem>>, %arg3: memref<81x256xbf16, #tpu.memory_space<vmem>>, %arg4: memref<4x256xbf16, #tpu.memory_space<vmem>>, %arg5: memref<1x256xf32, #tpu.memory_space<vmem>>, %arg6: memref<256x256xbf16, #tpu.memory_space<vmem>>, %arg7: memref<1x256xf32, #tpu.memory_space<vmem>>, %arg8: memref<256x256xbf16, #tpu.memory_space<vmem>>, %arg9: memref<1x256xf32, #tpu.memory_space<vmem>>, %arg10: memref<256x1xbf16, #tpu.memory_space<vmem>>, %arg11: memref<1x1xf32, #tpu.memory_space<vmem>>, %arg12: memref<2x1xf32, #tpu.memory_space<vmem>>) attributes {dimension_semantics = [#tpu.dimension_semantics<parallel>], iteration_bounds = array<i64: 1>, scalar_prefetch = 0 : i64, scratch_operands = 0 : i64, tpu.core_type = #tpu.core_type<tc>, window_params = [{transform_indices = @transform_0, window_bounds = array<i64: 2, 81>}, {transform_indices = @transform_1, window_bounds = array<i64: 2, 4>}, {pipeline_mode = #tpu.pipeline_mode<synchronous>, transform_indices = @transform_2, window_bounds = array<i64: 81, 256>}, {pipeline_mode = #tpu.pipeline_mode<synchronous>, transform_indices = @transform_3, window_bounds = array<i64: 4, 256>}, {pipeline_mode = #tpu.pipeline_mode<synchronous>, transform_indices = @transform_4, window_bounds = array<i64: 1, 256>}, {pipeline_mode = #tpu.pipeline_mode<synchronous>, transform_indices = @transform_5, window_bounds = array<i64: 256, 256>}, {pipeline_mode = #tpu.pipeline_mode<synchronous>, transform_indices = @transform_6, window_bounds = array<i64: 1, 256>}, {pipeline_mode = #tpu.pipeline_mode<synchronous>, transform_indices = @transform_7, window_bounds = array<i64: 256, 256>}, {pipeline_mode = #tpu.pipeline_mode<synchronous>, transform_indices = @transform_8, window_bounds = array<i64: 1, 256>}, {pipeline_mode = #tpu.pipeline_mode<synchronous>, transform_indices = @transform_9, window_bounds = array<i64: 256, 1>}, {pipeline_mode = #tpu.pipeline_mode<synchronous>, transform_indices = @transform_10, window_bounds = array<i64: 1, 1>}, {transform_indices = @transform_11, window_bounds = array<i64: 2, 1>}]} {
    %c0 = arith.constant 0 : index
    %c0_0 = arith.constant 0 : index
    %0 = vector.load %arg1[%c0, %c0_0] : memref<2x81xf32, #tpu.memory_space<vmem>>, vector<2x81xf32>
    %1 = arith.truncf %0 : vector<2x81xf32> to vector<2x81xbf16>
    %c0_1 = arith.constant 0 : index
    %c0_2 = arith.constant 0 : index
    %2 = vector.load %arg2[%c0_1, %c0_2] : memref<2x4xf32, #tpu.memory_space<vmem>>, vector<2x4xf32>
    %cst = arith.constant 5.000000e-01 : f32
    %3 = vector.broadcast %cst : f32 to vector<2x4xf32>
    %4 = arith.mulf %2, %3 : vector<2x4xf32>
    %5 = arith.truncf %4 : vector<2x4xf32> to vector<2x4xbf16>
    %c0_3 = arith.constant 0 : index
    %c0_4 = arith.constant 0 : index
    %6 = vector.load %arg3[%c0_3, %c0_4] : memref<81x256xbf16, #tpu.memory_space<vmem>>, vector<81x256xbf16>
    %cst_5 = arith.constant dense<0.000000e+00> : vector<2x256xf32>
    %7 = tpu.matmul %1, %6, %cst_5 {dimension_numbers = #tpu.dot_dimension_numbers<[1], [0], [0], [1], [0, 0, 1, 1], [], []>} : vector<2x81xbf16>, vector<81x256xbf16>, vector<2x256xf32> -> vector<2x256xf32>
    %c0_6 = arith.constant 0 : index
    %c0_7 = arith.constant 0 : index
    %8 = vector.load %arg4[%c0_6, %c0_7] : memref<4x256xbf16, #tpu.memory_space<vmem>>, vector<4x256xbf16>
    %cst_8 = arith.constant dense<0.000000e+00> : vector<2x256xf32>
    %9 = tpu.matmul %5, %8, %cst_8 {dimension_numbers = #tpu.dot_dimension_numbers<[1], [0], [0], [1], [0, 0, 1, 1], [], []>} : vector<2x4xbf16>, vector<4x256xbf16>, vector<2x256xf32> -> vector<2x256xf32>
    %10 = arith.addf %7, %9 : vector<2x256xf32>
    %c0_9 = arith.constant 0 : index
    %c0_10 = arith.constant 0 : index
    %11 = vector.load %arg5[%c0_9, %c0_10] : memref<1x256xf32, #tpu.memory_space<vmem>>, vector<1x256xf32>
    %12 = vector.broadcast %11 : vector<1x256xf32> to vector<2x256xf32>
    %13 = arith.addf %10, %12 : vector<2x256xf32>
    %cst_11 = arith.constant 0.000000e+00 : f32
    %14 = vector.broadcast %cst_11 : f32 to vector<2x256xf32>
    %15 = arith.maximumf %13, %14 : vector<2x256xf32>
    %16 = arith.truncf %15 : vector<2x256xf32> to vector<2x256xbf16>
    %c0_12 = arith.constant 0 : index
    %c0_13 = arith.constant 0 : index
    %17 = vector.load %arg6[%c0_12, %c0_13] : memref<256x256xbf16, #tpu.memory_space<vmem>>, vector<256x256xbf16>
    %cst_14 = arith.constant dense<0.000000e+00> : vector<2x256xf32>
    %18 = tpu.matmul %16, %17, %cst_14 {dimension_numbers = #tpu.dot_dimension_numbers<[1], [0], [0], [1], [0, 0, 1, 1], [], []>} : vector<2x256xbf16>, vector<256x256xbf16>, vector<2x256xf32> -> vector<2x256xf32>
    %c0_15 = arith.constant 0 : index
    %c0_16 = arith.constant 0 : index
    %19 = vector.load %arg7[%c0_15, %c0_16] : memref<1x256xf32, #tpu.memory_space<vmem>>, vector<1x256xf32>
    %20 = vector.broadcast %19 : vector<1x256xf32> to vector<2x256xf32>
    %21 = arith.addf %18, %20 : vector<2x256xf32>
    %cst_17 = arith.constant 0.000000e+00 : f32
    %22 = vector.broadcast %cst_17 : f32 to vector<2x256xf32>
    %23 = arith.maximumf %21, %22 : vector<2x256xf32>
    %24 = arith.truncf %23 : vector<2x256xf32> to vector<2x256xbf16>
    %c0_18 = arith.constant 0 : index
    %c0_19 = arith.constant 0 : index
    %25 = vector.load %arg8[%c0_18, %c0_19] : memref<256x256xbf16, #tpu.memory_space<vmem>>, vector<256x256xbf16>
    %cst_20 = arith.constant dense<0.000000e+00> : vector<2x256xf32>
    %26 = tpu.matmul %24, %25, %cst_20 {dimension_numbers = #tpu.dot_dimension_numbers<[1], [0], [0], [1], [0, 0, 1, 1], [], []>} : vector<2x256xbf16>, vector<256x256xbf16>, vector<2x256xf32> -> vector<2x256xf32>
    %c0_21 = arith.constant 0 : index
    %c0_22 = arith.constant 0 : index
    %27 = vector.load %arg9[%c0_21, %c0_22] : memref<1x256xf32, #tpu.memory_space<vmem>>, vector<1x256xf32>
    %28 = vector.broadcast %27 : vector<1x256xf32> to vector<2x256xf32>
    %29 = arith.addf %26, %28 : vector<2x256xf32>
    %cst_23 = arith.constant 0.000000e+00 : f32
    %30 = vector.broadcast %cst_23 : f32 to vector<2x256xf32>
    %31 = arith.maximumf %29, %30 : vector<2x256xf32>
    %32 = arith.truncf %31 : vector<2x256xf32> to vector<2x256xbf16>
    %c0_24 = arith.constant 0 : index
    %c0_25 = arith.constant 0 : index
    %33 = vector.load %arg10[%c0_24, %c0_25] : memref<256x1xbf16, #tpu.memory_space<vmem>>, vector<256x1xbf16>
    %cst_26 = arith.constant dense<0.000000e+00> : vector<2x1xf32>
    %34 = tpu.matmul %32, %33, %cst_26 {dimension_numbers = #tpu.dot_dimension_numbers<[1], [0], [0], [1], [0, 0, 1, 1], [], []>} : vector<2x256xbf16>, vector<256x1xbf16>, vector<2x1xf32> -> vector<2x1xf32>
    %c0_27 = arith.constant 0 : index
    %c0_28 = arith.constant 0 : index
    %35 = vector.load %arg11[%c0_27, %c0_28] : memref<1x1xf32, #tpu.memory_space<vmem>>, vector<1x1xf32>
    %36 = vector.broadcast %35 : vector<1x1xf32> to vector<2x1xf32>
    %37 = arith.addf %34, %36 : vector<2x1xf32>
    %c0_29 = arith.constant 0 : index
    %c0_30 = arith.constant 0 : index
    %38 = vector.load %arg12[%c0_29, %c0_30] : memref<2x1xf32, #tpu.memory_space<vmem>>, vector<2x1xf32>
    tpu.vector_store %arg12[%c0_29, %c0_30], %37 {strides = array<i32>} : memref<2x1xf32, #tpu.memory_space<vmem>>, vector<2x1xf32>,
    return
  }
  func.func @transform_0(%arg0: i32) -> (i32, i32) {
    %c0_i32 = arith.constant 0 : i32
    %c0_i32_0 = arith.constant 0 : i32
    return %arg0, %c0_i32 : i32, i32
  }
  func.func @transform_1(%arg0: i32) -> (i32, i32) {
    %c0_i32 = arith.constant 0 : i32
    %c0_i32_0 = arith.constant 0 : i32
    return %arg0, %c0_i32 : i32, i32
  }
  func.func @transform_2(%arg0: i32) -> (i32, i32) {
    %c0_i32 = arith.constant 0 : i32
    %c0_i32_0 = arith.constant 0 : i32
    %c0_i32_1 = arith.constant 0 : i32
    return %c0_i32, %c0_i32_0 : i32, i32
  }
  func.func @transform_3(%arg0: i32) -> (i32, i32) {
    %c0_i32 = arith.constant 0 : i32
    %c0_i32_0 = arith.constant 0 : i32
    %c0_i32_1 = arith.constant 0 : i32
    return %c0_i32, %c0_i32_0 : i32, i32
  }
  func.func @transform_4(%arg0: i32) -> (i32, i32) {
    %c0_i32 = arith.constant 0 : i32
    %c0_i32_0 = arith.constant 0 : i32
    %c0_i32_1 = arith.constant 0 : i32
    return %c0_i32, %c0_i32_0 : i32, i32
  }
  func.func @transform_5(%arg0: i32) -> (i32, i32) {
    %c0_i32 = arith.constant 0 : i32
    %c0_i32_0 = arith.constant 0 : i32
    %c0_i32_1 = arith.constant 0 : i32
    return %c0_i32, %c0_i32_0 : i32, i32
  }
  func.func @transform_6(%arg0: i32) -> (i32, i32) {
    %c0_i32 = arith.constant 0 : i32
    %c0_i32_0 = arith.constant 0 : i32
    %c0_i32_1 = arith.constant 0 : i32
    return %c0_i32, %c0_i32_0 : i32, i32
  }
  func.func @transform_7(%arg0: i32) -> (i32, i32) {
    %c0_i32 = arith.constant 0 : i32
    %c0_i32_0 = arith.constant 0 : i32
    %c0_i32_1 = arith.constant 0 : i32
    return %c0_i32, %c0_i32_0 : i32, i32
  }
  func.func @transform_8(%arg0: i32) -> (i32, i32) {
    %c0_i32 = arith.constant 0 : i32
    %c0_i32_0 = arith.constant 0 : i32
    %c0_i32_1 = arith.constant 0 : i32
    return %c0_i32, %c0_i32_0 : i32, i32
  }
  func.func @transform_9(%arg0: i32) -> (i32, i32) {
    %c0_i32 = arith.constant 0 : i32
    %c0_i32_0 = arith.constant 0 : i32
    %c0_i32_1 = arith.constant 0 : i32
    return %c0_i32, %c0_i32_0 : i32, i32
  }
  func.func @transform_10(%arg0: i32) -> (i32, i32) {
    %c0_i32 = arith.constant 0 : i32
    %c0_i32_0 = arith.constant 0 : i32
    %c0_i32_1 = arith.constant 0 : i32
    return %c0_i32, %c0_i32_0 : i32, i32
  }
  func.func @transform_11(%arg0: i32) -> (i32, i32) {
    %c0_i32 = arith.constant 0 : i32
    %c0_i32_0 = arith.constant 0 : i32
    return %arg0, %c0_i32 : i32, i32
  }
}

</mosaic_0001>

<bundles_post_ra>
// kernel: sym_image_critic_forward.5
= control target key start
LH: loop header
LB: loop body
LE: loop exit
PB: predicated region body
PF: predicated region fallthrough
CT: control target
= control target key end

     0   :  { %s2252_s12 = smov 0   ;;  %s2254_s13 = smov 0   ;;  %s2763_s0 = inlined_call_operand.vmem [shape: bf16[4802,36], index: 0, kind: input, shape index: {}]   ;;  %s2764_s1 = inlined_call_operand.vmem [shape: bf16[36,32], index: 1, kind: input, shape index: {}]   ;;  %s2765_s2 = inlined_call_operand.vmem [shape: f32[1,32], index: 2, kind: input, shape index: {}]   ;;  %s2766_s3 = inlined_call_operand.vmem [shape: bf16[4802,32], index: 3, kind: output, shape index: {}]  }
   0x1   :  { %s2256_s14 = smov 0  }
   0x2 LB: > { %s2265_s15 = sadd.s32 4294967295, %s2198_s14   ;;  %s2267_s16 = sadd.s32 1, %s2198_s14   ;;  %s2198_s14 = sphi %s2256_s14, %s2773_s14   ;;  %s2194_s13 = sphi %s2254_s13, %s2772_s13   ;;  %s2190_s12 = sphi %s2252_s12, %s2771_s12  }
   0x3   : > { %s85_s17 = ssub.s32 %s2198_s14, %s2267_s16  ;;  %s88_s18 = sadd.s32 1, %s2194_s13 }
   0x4   : > { %p86_p0 = scmp.eq.s32.totalorder %s85_s17, 0  ;;  %p98_p1 = scmp.ne.s32.totalorder %s2194_s13, %s2190_s12 }
   0x5   : > { %p99_p2 = scmp.eq.s32.totalorder %s2265_s15, 9  ;;  %p1688_p3 = scmp.ge.s32.totalorder %s2198_s14, 1 }
   0x6   : > { %s2275_s19 = scalar_select %p86_p0, %s2194_s13, %s88_s18  }
   0x7   : > { %p2277_p4 = por %p99_p2, %p98_p1  ;;  %p146_p5 = scmp.lt.s32.totalorder %s2198_s14, 11 }
   0x9   : > { %p147_p6 = pnand %p1688_p3, %p146_p5 }
   0xa   : > { %v2109_v0 = vld [vmem:[%s2764_s1] sm:$0xff] (!%p147_p6)   ;;  %v2110_v1 = vld [vmem:[%s2764_s1 + $0x8] sm:$0xff] (!%p147_p6)   ;;  %s2288_s25 = sshll.u32 (!%p147_p6), %s2265_s15, 6  ;;  %v2111_v2 = vld [vmem:[%s2764_s1 + $0x10] ss:$0 sps:$4 sm:$0x33] (!%p147_p6)  }
   0xb   : > { %150 = sbr.rel (%p147_p6) target bundleno = 394 (0x18a), region = 32  ;;  %1943 = vmatprep.subr.bf16.mxu0 (!%p147_p6), %v2109_v0  ;;  %2013 = vmatprep.subr.bf16.mxu1 (!%p147_p6), %v2109_v0  ;;  %p178_p7 = scmp.lt.s32.totalorder (!%p147_p6), %s2288_s25, 600  ;;  %vm541_vm0 = vcmask (!%p147_p6), 1041408   ;;  %vm444_vm1 = vcmask (!%p147_p6), 293888   ;;  %v2368_v36 = vld [vmem:[%s2765_s2] ss:$0 sm:$0xff] (!%p147_p6) }
   0xc   : > { %1944 = vmatpush3.bf16.msra.mxu0 (!%p147_p6), %v2109_v0  ;;  %2016 = vmatpush3.bf16.msra.mxu1 (!%p147_p6), %v2109_v0  ;;  %v543_v3 = vsel (!%p147_p6), %vm541_vm0, %v2111_v2, 0  ;;  %s170_s6 = sand.u32 (!%p147_p6), 1, %s2190_s12   ;;  %vm1154_vm2 = vcmask (!%p147_p6), 257024  }
   0xd   : > { %1945 = vmatprep.subr.bf16.mxu0 (!%p147_p6), %v2110_v1  ;;  %2014 = vmatprep.subr.bf16.mxu1 (!%p147_p6), %v2110_v1  ;;  %s1689_s9 = sshll.u32 (!%p147_p6), %s170_s6, 8 }
   0xe   : > { %s2378_s10 = scalar_lea.vmem (!%p147_p6), [#allocation2], %s1689_s9  }
  0x10   : > { %1946 = vmatpush3.bf16.msra.mxu0 (!%p147_p6), %v2110_v1  ;;  %2017 = vmatpush3.bf16.msra.mxu1 (!%p147_p6), %v2110_v1 }
  0x11   : > { %2019 = vmatprep.subr.msk.bf16.mxu0 (!%p147_p6), %vm541_vm0, %v2111_v2  ;;  %2020 = vmatprep.subr.msk.bf16.mxu1 (!%p147_p6), %vm541_vm0, %v2111_v2 }
  0x12   : > { %s179_s28 = scalar_select %p178_p7, %s2288_s25, 600 }
  0x13   : > { %s1227_s11 = ssub.s32 (%p2277_p4), 601, %s2288_s25  ;;  %s1905_s12 = sshll.u32 (%p2277_p4), %s2265_s15, 8 }
  0x14   : > { %s1691_s29 = sshll.u32 %s179_s28, 2  ;;  %1948 = vmatpush3.bf16.msra.mxu0 %v543_v3  ;;  %2018 = vmatpush3.bf16.msra.mxu1 %v543_v3  ;;  %p1228_p8 = scmp.lt.s32.totalorder (%p2277_p4), %s1227_s11, 64 }
  0x15   : > { %s2298_s5 = scalar_lea.vmem %s2763_s0, %s1691_s29  ;;  %s2571_s18 = scalar_lea.vmem (%p2277_p4), %s2766_s3, %s1905_s12  }
  0x16   : > { %v2112_v4 = vld [vmem:[%s2298_s5] sm:$0xff]   ;;  %v2114_v6 = vld [vmem:[%s2298_s5 + $0x8] sm:$0xff]   ;;  %v2116_v8 = vld [vmem:[%s2298_s5 + $0x10] sm:$0xff]  }
  0x17   : > { %v2113_v5 = vld [vmem:[%s2298_s5 + $0x80] sm:$0xff]   ;;  %1949 = vmatprep.mubr.msk.bf16.mxu0 %vm444_vm1, %v2112_v4  ;;  %v2115_v7 = vld [vmem:[%s2298_s5 + $0x88] sm:$0xff]   ;;  %v2117_v9 = vld [vmem:[%s2298_s5 + $0x90] sm:$0xff]  }
  0x18   : > { %1981 = vmatprep.mubr.msk.bf16.mxu1 %vm444_vm1, %v2113_v5  ;;  %1950 = vmatmul.mubr.msk.bf16.vlgmr.msra.gmra.mrb[0].mxu0 %vm444_vm1, %v2114_v6  ;;  %v2118_v10 = vld [vmem:[%s2298_s5 + $0x18] sm:$0xff]   ;;  %v2120_v12 = vld [vmem:[%s2298_s5 + $0x20] sm:$0xff]   ;;  %v2122_v14 = vld [vmem:[%s2298_s5 + $0x28] sm:$0xff]  }
  0x19   : > { %1982 = vmatmul.mubr.msk.bf16.vlgmr.msra.gmra.mrb[0].mxu1 %vm444_vm1, %v2115_v7  ;;  %1953 = vmatprep.mubr.msk.bf16.mxu0 %vm444_vm1, %v2116_v8  ;;  %v2119_v11 = vld [vmem:[%s2298_s5 + $0x98] sm:$0xff]   ;;  %v2121_v13 = vld [vmem:[%s2298_s5 + $0xa0] sm:$0xff]   ;;  %v2123_v15 = vld [vmem:[%s2298_s5 + $0xa8] sm:$0xff]  }
  0x1a   : > { %1985 = vmatprep.mubr.msk.bf16.mxu1 %vm444_vm1, %v2117_v9  ;;  %v2124_v16 = vld [vmem:[%s2298_s5 + $0x30] sm:$0xff]   ;;  %v2126_v18 = vld [vmem:[%s2298_s5 + $0x38] sm:$0xff]   ;;  %v2128_v20 = vld [vmem:[%s2298_s5 + $0x40] sm:$0xff]  }
  0x1b   : > { %v2125_v17 = vld [vmem:[%s2298_s5 + $0xb0] sm:$0xff]   ;;  %v2127_v19 = vld [vmem:[%s2298_s5 + $0xb8] sm:$0xff]   ;;  %v2129_v21 = vld [vmem:[%s2298_s5 + $0xc0] sm:$0xff]  }
  0x1c   : > { %v2130_v22 = vld [vmem:[%s2298_s5 + $0x48] sm:$0xff]   ;;  %v2132_v24 = vld [vmem:[%s2298_s5 + $0x50] sm:$0xff]   ;;  %v2134_v26 = vld [vmem:[%s2298_s5 + $0x58] sm:$0xff]  }
  0x1d   : > { %v2131_v23 = vld [vmem:[%s2298_s5 + $0xc8] sm:$0xff]   ;;  %v2133_v25 = vld [vmem:[%s2298_s5 + $0xd0] sm:$0xff]   ;;  %v2135_v27 = vld [vmem:[%s2298_s5 + $0xd8] sm:$0xff]  }
  0x1e   : > { %v2136_v28 = vld [vmem:[%s2298_s5 + $0x60] sm:$0xff]   ;;  %v2138_v30 = vld [vmem:[%s2298_s5 + $0x68] sm:$0xff]   ;;  %v2140_v32 = vld [vmem:[%s2298_s5 + $0x70] sm:$0xff]  }
  0x1f   : > { %v2137_v29 = vld [vmem:[%s2298_s5 + $0xe0] sm:$0xff]   ;;  %v2139_v31 = vld [vmem:[%s2298_s5 + $0xe8] sm:$0xff]   ;;  %v2141_v33 = vld [vmem:[%s2298_s5 + $0xf0] sm:$0xff]  }
  0x20   : > { %1954 = vmatmul.mubr.msk.bf16.gmra.mrb[4].mxu0 %vm444_vm1, %v2118_v10  ;;  %v2142_v34 = vld [vmem:[%s2298_s5 + $0x78] sm:$0xff]  }
  0x21   : > { %1986 = vmatmul.mubr.msk.bf16.gmra.mrb[4].mxu1 %vm444_vm1, %v2119_v11  ;;  %1957 = vmatprep.mubr.msk.bf16.mxu0 %vm444_vm1, %v2120_v12  ;;  %v2143_v35 = vld [vmem:[%s2298_s5 + $0xf8] sm:$0xff]  }
  0x22   : > { %1989 = vmatprep.mubr.msk.bf16.mxu1 %vm444_vm1, %v2121_v13 }
  0x28   : > { %1958 = vmatmul.mubr.msk.bf16.gmra.mrb[8].mxu0 %vm444_vm1, %v2122_v14 }
  0x29   : > { %1990 = vmatmul.mubr.msk.bf16.gmra.mrb[8].mxu1 %vm444_vm1, %v2123_v15  ;;  %1961 = vmatprep.mubr.msk.bf16.mxu0 %vm444_vm1, %v2124_v16 }
  0x2a   : > { %1993 = vmatprep.mubr.msk.bf16.mxu1 %vm444_vm1, %v2125_v17 }
  0x30   : > { %1962 = vmatmul.mubr.msk.bf16.gmra.mrb[12].mxu0 %vm444_vm1, %v2126_v18 }
  0x31   : > { %1994 = vmatmul.mubr.msk.bf16.gmra.mrb[12].mxu1 %vm444_vm1, %v2127_v19  ;;  %1965 = vmatprep.mubr.msk.bf16.mxu0 %vm444_vm1, %v2128_v20 }
  0x32   : > { %1997 = vmatprep.mubr.msk.bf16.mxu1 %vm444_vm1, %v2129_v21 }
  0x38   : > { %1966 = vmatmul.mubr.msk.bf16.gmra.mrb[16].mxu0 %vm444_vm1, %v2130_v22 }
  0x39   : > { %1998 = vmatmul.mubr.msk.bf16.gmra.mrb[16].mxu1 %vm444_vm1, %v2131_v23  ;;  %1969 = vmatprep.mubr.msk.bf16.mxu0 %vm444_vm1, %v2132_v24 }
  0x3a   : > { %2001 = vmatprep.mubr.msk.bf16.mxu1 %vm444_vm1, %v2133_v25 }
  0x40   : > { %1970 = vmatmul.mubr.msk.bf16.gmra.mrb[20].mxu0 %vm444_vm1, %v2134_v26 }
  0x41   : > { %2002 = vmatmul.mubr.msk.bf16.gmra.mrb[20].mxu1 %vm444_vm1, %v2135_v27  ;;  %1973 = vmatprep.mubr.msk.bf16.mxu0 %vm444_vm1, %v2136_v28 }
  0x42   : > { %2005 = vmatprep.mubr.msk.bf16.mxu1 %vm444_vm1, %v2137_v29 }
  0x48   : > { %1974 = vmatmul.mubr.msk.bf16.gmra.mrb[24].mxu0 %vm444_vm1, %v2138_v30 }
  0x49   : > { %2006 = vmatmul.mubr.msk.bf16.gmra.mrb[24].mxu1 %vm444_vm1, %v2139_v31  ;;  %1977 = vmatprep.mubr.msk.bf16.mxu0 %vm444_vm1, %v2140_v32 }
  0x4a   : > { %2009 = vmatprep.mubr.msk.bf16.mxu1 %vm444_vm1, %v2141_v33 }
  0x50   : > { %1978 = vmatmul.mubr.msk.bf16.gmra.mrb[28].mxu0 %vm444_vm1, %v2142_v34 }
  0x51   : > { %2010 = vmatmul.mubr.msk.bf16.gmra.mrb[28].mxu1 %vm444_vm1, %v2143_v35 }
  0xeb   : > { %v1951_v37 = vpop.f32.mrb[0].mxu0 }
  0xec   : > { %v1983_v38 = vpop.f32.mrb[0].mxu1  ;;  %v588_v39 = vadd.f32 %v1951_v37, %v2368_v36  ;;  %v579_v41 = vpop.f32.mrb[1].mxu0 }
  0xed   : > { %v716_v40 = vadd.f32 %v1983_v38, %v2368_v36  ;;  %v707_v42 = vpop.f32.mrb[1].mxu1  ;;  %v580_v43 = vadd.f32 %v2368_v36, %v579_v41  ;;  %v1952_v45 = vpop.f32.mrb[2].mxu0 }
  0xee   : > { %v708_v44 = vadd.f32 %v2368_v36, %v707_v42  ;;  %v1984_v46 = vpop.f32.mrb[2].mxu1  ;;  %v836_v47 = vmax.f32 %v588_v39, 0.0  ;;  %v591_v49 = vadd.f32 %v1952_v45, %v2368_v36  ;;  %v582_v51 = vpop.f32.mrb[3].mxu0 }
  0xef   : > { %v868_v48 = vmax.f32 %v716_v40, 0.0  ;;  %v719_v50 = vadd.f32 %v1984_v46, %v2368_v36  ;;  %v710_v52 = vpop.f32.mrb[3].mxu1  ;;  %v834_v53 = vmax.f32 %v580_v43, 0.0  ;;  %v583_v55 = vadd.f32 %v2368_v36, %v582_v51 }
  0xf0   : > { %v866_v54 = vmax.f32 %v708_v44, 0.0  ;;  %v711_v56 = vadd.f32 %v2368_v36, %v710_v52  ;;  %v1843_v57 = vpack.c.bf16 %v836_v47, %v836_v47  ;;  %v837_v59 = vmax.f32 %v591_v49, 0.0 }
  0xf1   : > { %v1875_v58 = vpack.c.bf16 %v868_v48, %v868_v48  ;;  %v869_v60 = vmax.f32 %v719_v50, 0.0  ;;  %v1841_v61 = vpack.c.bf16 %v834_v53, %v834_v53  ;;  %v835_v63 = vmax.f32 %v583_v55, 0.0 }
  0xf2   : > { %v1873_v62 = vpack.c.bf16 %v866_v54, %v866_v54  ;;  %v867_v0 = vmax.f32 %v711_v56, 0.0  ;;  %1157 = vst.msk [vmem:[%s2378_s10 + $0x8] sm:$0xf] %vm1154_vm2, %v1843_v57  ;;  %v1844_v1 = vpack.c.bf16 %v837_v59, %v837_v59 }
  0xf3   : > { %1189 = vst.msk [vmem:[%s2378_s10 + $0x88] sm:$0xf] %vm1154_vm2, %v1875_v58  ;;  %v1876_v2 = vpack.c.bf16 %v869_v60, %v869_v60  ;;  %1155 = vst.msk [vmem:[%s2378_s10] sm:$0xf] %vm1154_vm2, %v1841_v61  ;;  %v1842_v3 = vpack.c.bf16 %v835_v63, %v835_v63  ;;  %v1955_v5 = vpop.f32.mrb[4].mxu0 }
  0xf4   : > { %1187 = vst.msk [vmem:[%s2378_s10 + $0x80] sm:$0xf] %vm1154_vm2, %v1873_v62  ;;  %v1874_v4 = vpack.c.bf16 %v867_v0, %v867_v0  ;;  %v1987_v6 = vpop.f32.mrb[4].mxu1  ;;  %1158 = vst.msk [vmem:[%s2378_s10 + $0xc] sm:$0xf] %vm1154_vm2, %v1844_v1  ;;  %v604_v7 = vadd.f32 %v1955_v5, %v2368_v36  ;;  %v595_v9 = vpop.f32.mrb[5].mxu0 }
  0xf5   : > { %1190 = vst.msk [vmem:[%s2378_s10 + $0x8c] sm:$0xf] %vm1154_vm2, %v1876_v2  ;;  %v732_v8 = vadd.f32 %v1987_v6, %v2368_v36  ;;  %v723_v10 = vpop.f32.mrb[5].mxu1  ;;  %1156 = vst.msk [vmem:[%s2378_s10 + $0x4] sm:$0xf] %vm1154_vm2, %v1842_v3  ;;  %v596_v11 = vadd.f32 %v2368_v36, %v595_v9  ;;  %v1956_v13 = vpop.f32.mrb[6].mxu0 }
  0xf6   : > { %1188 = vst.msk [vmem:[%s2378_s10 + $0x84] sm:$0xf] %vm1154_vm2, %v1874_v4  ;;  %v724_v12 = vadd.f32 %v2368_v36, %v723_v10  ;;  %v1988_v14 = vpop.f32.mrb[6].mxu1  ;;  %v840_v15 = vmax.f32 %v604_v7, 0.0  ;;  %v607_v17 = vadd.f32 %v1956_v13, %v2368_v36  ;;  %v598_v19 = vpop.f32.mrb[7].mxu0 }
  0xf7   : > { %v872_v16 = vmax.f32 %v732_v8, 0.0  ;;  %v735_v18 = vadd.f32 %v1988_v14, %v2368_v36  ;;  %v726_v20 = vpop.f32.mrb[7].mxu1  ;;  %v838_v21 = vmax.f32 %v596_v11, 0.0  ;;  %v599_v23 = vadd.f32 %v2368_v36, %v598_v19 }
  0xf8   : > { %v870_v22 = vmax.f32 %v724_v12, 0.0  ;;  %v727_v24 = vadd.f32 %v2368_v36, %v726_v20  ;;  %v1847_v25 = vpack.c.bf16 %v840_v15, %v840_v15  ;;  %v841_v27 = vmax.f32 %v607_v17, 0.0 }
  0xf9   : > { %v1879_v26 = vpack.c.bf16 %v872_v16, %v872_v16  ;;  %v873_v28 = vmax.f32 %v735_v18, 0.0  ;;  %v1845_v29 = vpack.c.bf16 %v838_v21, %v838_v21  ;;  %v839_v31 = vmax.f32 %v599_v23, 0.0 }
  0xfa   : > { %v1877_v30 = vpack.c.bf16 %v870_v22, %v870_v22  ;;  %v871_v32 = vmax.f32 %v727_v24, 0.0  ;;  %1161 = vst.msk [vmem:[%s2378_s10 + $0x18] sm:$0xf] %vm1154_vm2, %v1847_v25  ;;  %v1848_v33 = vpack.c.bf16 %v841_v27, %v841_v27 }
  0xfb   : > { %1193 = vst.msk [vmem:[%s2378_s10 + $0x98] sm:$0xf] %vm1154_vm2, %v1879_v26  ;;  %v1880_v34 = vpack.c.bf16 %v873_v28, %v873_v28  ;;  %1159 = vst.msk [vmem:[%s2378_s10 + $0x10] sm:$0xf] %vm1154_vm2, %v1845_v29  ;;  %v1846_v35 = vpack.c.bf16 %v839_v31, %v839_v31  ;;  %v1959_v38 = vpop.f32.mrb[8].mxu0 }
  0xfc   : > { %1191 = vst.msk [vmem:[%s2378_s10 + $0x90] sm:$0xf] %vm1154_vm2, %v1877_v30  ;;  %v1878_v37 = vpack.c.bf16 %v871_v32, %v871_v32  ;;  %v1991_v39 = vpop.f32.mrb[8].mxu1  ;;  %1162 = vst.msk [vmem:[%s2378_s10 + $0x1c] sm:$0xf] %vm1154_vm2, %v1848_v33  ;;  %v620_v40 = vadd.f32 %v1959_v38, %v2368_v36  ;;  %v611_v42 = vpop.f32.mrb[9].mxu0 }
  0xfd   : > { %1194 = vst.msk [vmem:[%s2378_s10 + $0x9c] sm:$0xf] %vm1154_vm2, %v1880_v34  ;;  %v748_v41 = vadd.f32 %v1991_v39, %v2368_v36  ;;  %v739_v43 = vpop.f32.mrb[9].mxu1  ;;  %1160 = vst.msk [vmem:[%s2378_s10 + $0x14] sm:$0xf] %vm1154_vm2, %v1846_v35  ;;  %v612_v44 = vadd.f32 %v2368_v36, %v611_v42  ;;  %v1960_v46 = vpop.f32.mrb[10].mxu0 }
  0xfe   : > { %1192 = vst.msk [vmem:[%s2378_s10 + $0x94] sm:$0xf] %vm1154_vm2, %v1878_v37  ;;  %v740_v45 = vadd.f32 %v2368_v36, %v739_v43  ;;  %v1992_v47 = vpop.f32.mrb[10].mxu1  ;;  %v844_v48 = vmax.f32 %v620_v40, 0.0  ;;  %v623_v50 = vadd.f32 %v1960_v46, %v2368_v36  ;;  %v614_v52 = vpop.f32.mrb[11].mxu0 }
  0xff   : > { %v876_v49 = vmax.f32 %v748_v41, 0.0  ;;  %v751_v51 = vadd.f32 %v1992_v47, %v2368_v36  ;;  %v742_v53 = vpop.f32.mrb[11].mxu1  ;;  %v842_v54 = vmax.f32 %v612_v44, 0.0  ;;  %v615_v56 = vadd.f32 %v2368_v36, %v614_v52 }
 0x100   : > { %v874_v55 = vmax.f32 %v740_v45, 0.0  ;;  %v743_v57 = vadd.f32 %v2368_v36, %v742_v53  ;;  %v1851_v58 = vpack.c.bf16 %v844_v48, %v844_v48  ;;  %v845_v60 = vmax.f32 %v623_v50, 0.0 }
 0x101   : > { %v1883_v59 = vpack.c.bf16 %v876_v49, %v876_v49  ;;  %v877_v61 = vmax.f32 %v751_v51, 0.0  ;;  %v1849_v62 = vpack.c.bf16 %v842_v54, %v842_v54  ;;  %v843_v0 = vmax.f32 %v615_v56, 0.0 }
 0x102   : > { %v1881_v63 = vpack.c.bf16 %v874_v55, %v874_v55  ;;  %v875_v1 = vmax.f32 %v743_v57, 0.0  ;;  %1165 = vst.msk [vmem:[%s2378_s10 + $0x28] sm:$0xf] %vm1154_vm2, %v1851_v58  ;;  %v1852_v2 = vpack.c.bf16 %v845_v60, %v845_v60 }
 0x103   : > { %1197 = vst.msk [vmem:[%s2378_s10 + $0xa8] sm:$0xf] %vm1154_vm2, %v1883_v59  ;;  %v1884_v3 = vpack.c.bf16 %v877_v61, %v877_v61  ;;  %1163 = vst.msk [vmem:[%s2378_s10 + $0x20] sm:$0xf] %vm1154_vm2, %v1849_v62  ;;  %v1850_v4 = vpack.c.bf16 %v843_v0, %v843_v0  ;;  %v1963_v6 = vpop.f32.mrb[12].mxu0 }
 0x104   : > { %1195 = vst.msk [vmem:[%s2378_s10 + $0xa0] sm:$0xf] %vm1154_vm2, %v1881_v63  ;;  %v1882_v5 = vpack.c.bf16 %v875_v1, %v875_v1  ;;  %v1995_v7 = vpop.f32.mrb[12].mxu1  ;;  %1166 = vst.msk [vmem:[%s2378_s10 + $0x2c] sm:$0xf] %vm1154_vm2, %v1852_v2  ;;  %v636_v8 = vadd.f32 %v1963_v6, %v2368_v36  ;;  %v627_v10 = vpop.f32.mrb[13].mxu0 }
 0x105   : > { %1198 = vst.msk [vmem:[%s2378_s10 + $0xac] sm:$0xf] %vm1154_vm2, %v1884_v3  ;;  %v764_v9 = vadd.f32 %v1995_v7, %v2368_v36  ;;  %v755_v11 = vpop.f32.mrb[13].mxu1  ;;  %1164 = vst.msk [vmem:[%s2378_s10 + $0x24] sm:$0xf] %vm1154_vm2, %v1850_v4  ;;  %v628_v12 = vadd.f32 %v2368_v36, %v627_v10  ;;  %v1964_v14 = vpop.f32.mrb[14].mxu0 }
 0x106   : > { %1196 = vst.msk [vmem:[%s2378_s10 + $0xa4] sm:$0xf] %vm1154_vm2, %v1882_v5  ;;  %v756_v13 = vadd.f32 %v2368_v36, %v755_v11  ;;  %v1996_v15 = vpop.f32.mrb[14].mxu1  ;;  %v848_v16 = vmax.f32 %v636_v8, 0.0  ;;  %v639_v18 = vadd.f32 %v1964_v14, %v2368_v36  ;;  %v630_v20 = vpop.f32.mrb[15].mxu0 }
 0x107   : > { %v880_v17 = vmax.f32 %v764_v9, 0.0  ;;  %v767_v19 = vadd.f32 %v1996_v15, %v2368_v36  ;;  %v758_v21 = vpop.f32.mrb[15].mxu1  ;;  %v846_v22 = vmax.f32 %v628_v12, 0.0  ;;  %v631_v24 = vadd.f32 %v2368_v36, %v630_v20 }
 0x108   : > { %v878_v23 = vmax.f32 %v756_v13, 0.0  ;;  %v759_v25 = vadd.f32 %v2368_v36, %v758_v21  ;;  %v1855_v26 = vpack.c.bf16 %v848_v16, %v848_v16  ;;  %v849_v28 = vmax.f32 %v639_v18, 0.0 }
 0x109   : > { %v1887_v27 = vpack.c.bf16 %v880_v17, %v880_v17  ;;  %v881_v29 = vmax.f32 %v767_v19, 0.0  ;;  %v1853_v30 = vpack.c.bf16 %v846_v22, %v846_v22  ;;  %v847_v32 = vmax.f32 %v631_v24, 0.0 }
 0x10a   : > { %v1885_v31 = vpack.c.bf16 %v878_v23, %v878_v23  ;;  %v879_v33 = vmax.f32 %v759_v25, 0.0  ;;  %1169 = vst.msk [vmem:[%s2378_s10 + $0x38] sm:$0xf] %vm1154_vm2, %v1855_v26  ;;  %v1856_v34 = vpack.c.bf16 %v849_v28, %v849_v28 }
 0x10b   : > { %1201 = vst.msk [vmem:[%s2378_s10 + $0xb8] sm:$0xf] %vm1154_vm2, %v1887_v27  ;;  %v1888_v35 = vpack.c.bf16 %v881_v29, %v881_v29  ;;  %1167 = vst.msk [vmem:[%s2378_s10 + $0x30] sm:$0xf] %vm1154_vm2, %v1853_v30  ;;  %v1854_v37 = vpack.c.bf16 %v847_v32, %v847_v32  ;;  %v1967_v39 = vpop.f32.mrb[16].mxu0 }
 0x10c   : > { %1199 = vst.msk [vmem:[%s2378_s10 + $0xb0] sm:$0xf] %vm1154_vm2, %v1885_v31  ;;  %v1886_v38 = vpack.c.bf16 %v879_v33, %v879_v33  ;;  %v1999_v40 = vpop.f32.mrb[16].mxu1  ;;  %1170 = vst.msk [vmem:[%s2378_s10 + $0x3c] sm:$0xf] %vm1154_vm2, %v1856_v34  ;;  %v652_v41 = vadd.f32 %v1967_v39, %v2368_v36  ;;  %v643_v43 = vpop.f32.mrb[17].mxu0 }
 0x10d   : > { %1202 = vst.msk [vmem:[%s2378_s10 + $0xbc] sm:$0xf] %vm1154_vm2, %v1888_v35  ;;  %v780_v42 = vadd.f32 %v1999_v40, %v2368_v36  ;;  %v771_v44 = vpop.f32.mrb[17].mxu1  ;;  %1168 = vst.msk [vmem:[%s2378_s10 + $0x34] sm:$0xf] %vm1154_vm2, %v1854_v37  ;;  %v644_v45 = vadd.f32 %v2368_v36, %v643_v43  ;;  %v1968_v47 = vpop.f32.mrb[18].mxu0 }
 0x10e   : > { %1200 = vst.msk [vmem:[%s2378_s10 + $0xb4] sm:$0xf] %vm1154_vm2, %v1886_v38  ;;  %v772_v46 = vadd.f32 %v2368_v36, %v771_v44  ;;  %v2000_v48 = vpop.f32.mrb[18].mxu1  ;;  %v852_v49 = vmax.f32 %v652_v41, 0.0  ;;  %v655_v51 = vadd.f32 %v1968_v47, %v2368_v36  ;;  %v646_v53 = vpop.f32.mrb[19].mxu0 }
 0x10f   : > { %v884_v50 = vmax.f32 %v780_v42, 0.0  ;;  %v783_v52 = vadd.f32 %v2000_v48, %v2368_v36  ;;  %v774_v54 = vpop.f32.mrb[19].mxu1  ;;  %v850_v55 = vmax.f32 %v644_v45, 0.0  ;;  %v647_v57 = vadd.f32 %v2368_v36, %v646_v53 }
 0x110   : > { %v882_v56 = vmax.f32 %v772_v46, 0.0  ;;  %v775_v58 = vadd.f32 %v2368_v36, %v774_v54  ;;  %v1859_v59 = vpack.c.bf16 %v852_v49, %v852_v49  ;;  %v853_v61 = vmax.f32 %v655_v51, 0.0 }
 0x111   : > { %v1891_v60 = vpack.c.bf16 %v884_v50, %v884_v50  ;;  %v885_v62 = vmax.f32 %v783_v52, 0.0  ;;  %v1857_v63 = vpack.c.bf16 %v850_v55, %v850_v55  ;;  %v851_v1 = vmax.f32 %v647_v57, 0.0 }
 0x112   : > { %v1889_v0 = vpack.c.bf16 %v882_v56, %v882_v56  ;;  %v883_v2 = vmax.f32 %v775_v58, 0.0  ;;  %1173 = vst.msk [vmem:[%s2378_s10 + $0x48] sm:$0xf] %vm1154_vm2, %v1859_v59  ;;  %v1860_v3 = vpack.c.bf16 %v853_v61, %v853_v61 }
 0x113   : > { %1205 = vst.msk [vmem:[%s2378_s10 + $0xc8] sm:$0xf] %vm1154_vm2, %v1891_v60  ;;  %v1892_v4 = vpack.c.bf16 %v885_v62, %v885_v62  ;;  %1171 = vst.msk [vmem:[%s2378_s10 + $0x40] sm:$0xf] %vm1154_vm2, %v1857_v63  ;;  %v1858_v5 = vpack.c.bf16 %v851_v1, %v851_v1  ;;  %v1971_v7 = vpop.f32.mrb[20].mxu0 }
 0x114   : > { %1203 = vst.msk [vmem:[%s2378_s10 + $0xc0] sm:$0xf] %vm1154_vm2, %v1889_v0  ;;  %v1890_v6 = vpack.c.bf16 %v883_v2, %v883_v2  ;;  %v2003_v8 = vpop.f32.mrb[20].mxu1  ;;  %1174 = vst.msk [vmem:[%s2378_s10 + $0x4c] sm:$0xf] %vm1154_vm2, %v1860_v3  ;;  %v668_v9 = vadd.f32 %v1971_v7, %v2368_v36  ;;  %v659_v11 = vpop.f32.mrb[21].mxu0 }
 0x115   : > { %1206 = vst.msk [vmem:[%s2378_s10 + $0xcc] sm:$0xf] %vm1154_vm2, %v1892_v4  ;;  %v796_v10 = vadd.f32 %v2003_v8, %v2368_v36  ;;  %v787_v12 = vpop.f32.mrb[21].mxu1  ;;  %1172 = vst.msk [vmem:[%s2378_s10 + $0x44] sm:$0xf] %vm1154_vm2, %v1858_v5  ;;  %v660_v13 = vadd.f32 %v2368_v36, %v659_v11  ;;  %v1972_v15 = vpop.f32.mrb[22].mxu0 }
 0x116   : > { %1204 = vst.msk [vmem:[%s2378_s10 + $0xc4] sm:$0xf] %vm1154_vm2, %v1890_v6  ;;  %v788_v14 = vadd.f32 %v2368_v36, %v787_v12  ;;  %v2004_v16 = vpop.f32.mrb[22].mxu1  ;;  %v856_v17 = vmax.f32 %v668_v9, 0.0  ;;  %v671_v19 = vadd.f32 %v1972_v15, %v2368_v36  ;;  %v662_v21 = vpop.f32.mrb[23].mxu0 }
 0x117   : > { %v888_v18 = vmax.f32 %v796_v10, 0.0  ;;  %v799_v20 = vadd.f32 %v2004_v16, %v2368_v36  ;;  %v790_v22 = vpop.f32.mrb[23].mxu1  ;;  %v854_v23 = vmax.f32 %v660_v13, 0.0  ;;  %v663_v25 = vadd.f32 %v2368_v36, %v662_v21 }
 0x118   : > { %v886_v24 = vmax.f32 %v788_v14, 0.0  ;;  %v791_v26 = vadd.f32 %v2368_v36, %v790_v22  ;;  %v1863_v27 = vpack.c.bf16 %v856_v17, %v856_v17  ;;  %v857_v29 = vmax.f32 %v671_v19, 0.0 }
 0x119   : > { %v1895_v28 = vpack.c.bf16 %v888_v18, %v888_v18  ;;  %v889_v30 = vmax.f32 %v799_v20, 0.0  ;;  %v1861_v31 = vpack.c.bf16 %v854_v23, %v854_v23  ;;  %v855_v33 = vmax.f32 %v663_v25, 0.0 }
 0x11a   : > { %v1893_v32 = vpack.c.bf16 %v886_v24, %v886_v24  ;;  %v887_v34 = vmax.f32 %v791_v26, 0.0  ;;  %1177 = vst.msk [vmem:[%s2378_s10 + $0x58] sm:$0xf] %vm1154_vm2, %v1863_v27  ;;  %v1864_v35 = vpack.c.bf16 %v857_v29, %v857_v29 }
 0x11b   : > { %1209 = vst.msk [vmem:[%s2378_s10 + $0xd8] sm:$0xf] %vm1154_vm2, %v1895_v28  ;;  %v1896_v37 = vpack.c.bf16 %v889_v30, %v889_v30  ;;  %1175 = vst.msk [vmem:[%s2378_s10 + $0x50] sm:$0xf] %vm1154_vm2, %v1861_v31  ;;  %v1862_v38 = vpack.c.bf16 %v855_v33, %v855_v33  ;;  %v1975_v40 = vpop.f32.mrb[24].mxu0 }
 0x11c   : > { %1207 = vst.msk [vmem:[%s2378_s10 + $0xd0] sm:$0xf] %vm1154_vm2, %v1893_v32  ;;  %v1894_v39 = vpack.c.bf16 %v887_v34, %v887_v34  ;;  %v2007_v41 = vpop.f32.mrb[24].mxu1  ;;  %1178 = vst.msk [vmem:[%s2378_s10 + $0x5c] sm:$0xf] %vm1154_vm2, %v1864_v35  ;;  %v684_v42 = vadd.f32 %v1975_v40, %v2368_v36  ;;  %v675_v44 = vpop.f32.mrb[25].mxu0 }
 0x11d   : > { %1210 = vst.msk [vmem:[%s2378_s10 + $0xdc] sm:$0xf] %vm1154_vm2, %v1896_v37  ;;  %v812_v43 = vadd.f32 %v2007_v41, %v2368_v36  ;;  %v803_v45 = vpop.f32.mrb[25].mxu1  ;;  %1176 = vst.msk [vmem:[%s2378_s10 + $0x54] sm:$0xf] %vm1154_vm2, %v1862_v38  ;;  %v676_v46 = vadd.f32 %v2368_v36, %v675_v44  ;;  %v1976_v48 = vpop.f32.mrb[26].mxu0 }
 0x11e   : > { %1208 = vst.msk [vmem:[%s2378_s10 + $0xd4] sm:$0xf] %vm1154_vm2, %v1894_v39  ;;  %v804_v47 = vadd.f32 %v2368_v36, %v803_v45  ;;  %v2008_v49 = vpop.f32.mrb[26].mxu1  ;;  %v860_v50 = vmax.f32 %v684_v42, 0.0  ;;  %v687_v52 = vadd.f32 %v1976_v48, %v2368_v36  ;;  %v678_v54 = vpop.f32.mrb[27].mxu0 }
 0x11f   : > { %v892_v51 = vmax.f32 %v812_v43, 0.0  ;;  %v815_v53 = vadd.f32 %v2008_v49, %v2368_v36  ;;  %v806_v55 = vpop.f32.mrb[27].mxu1  ;;  %v858_v56 = vmax.f32 %v676_v46, 0.0  ;;  %v679_v58 = vadd.f32 %v2368_v36, %v678_v54 }
 0x120   : > { %v890_v57 = vmax.f32 %v804_v47, 0.0  ;;  %v807_v59 = vadd.f32 %v2368_v36, %v806_v55  ;;  %v1867_v60 = vpack.c.bf16 %v860_v50, %v860_v50  ;;  %v861_v62 = vmax.f32 %v687_v52, 0.0 }
 0x121   : > { %v1899_v61 = vpack.c.bf16 %v892_v51, %v892_v51  ;;  %v893_v63 = vmax.f32 %v815_v53, 0.0  ;;  %v1865_v0 = vpack.c.bf16 %v858_v56, %v858_v56  ;;  %v859_v2 = vmax.f32 %v679_v58, 0.0 }
 0x122   : > { %v1897_v1 = vpack.c.bf16 %v890_v57, %v890_v57  ;;  %v891_v3 = vmax.f32 %v807_v59, 0.0  ;;  %1181 = vst.msk [vmem:[%s2378_s10 + $0x68] sm:$0xf] %vm1154_vm2, %v1867_v60  ;;  %v1868_v4 = vpack.c.bf16 %v861_v62, %v861_v62 }
 0x123   : > { %1213 = vst.msk [vmem:[%s2378_s10 + $0xe8] sm:$0xf] %vm1154_vm2, %v1899_v61  ;;  %v1900_v5 = vpack.c.bf16 %v893_v63, %v893_v63  ;;  %1179 = vst.msk [vmem:[%s2378_s10 + $0x60] sm:$0xf] %vm1154_vm2, %v1865_v0  ;;  %v1866_v6 = vpack.c.bf16 %v859_v2, %v859_v2  ;;  %v1979_v8 = vpop.f32.mrb[28].mxu0 }
 0x124   : > { %1211 = vst.msk [vmem:[%s2378_s10 + $0xe0] sm:$0xf] %vm1154_vm2, %v1897_v1  ;;  %v1898_v7 = vpack.c.bf16 %v891_v3, %v891_v3  ;;  %v2011_v9 = vpop.f32.mrb[28].mxu1  ;;  %1182 = vst.msk [vmem:[%s2378_s10 + $0x6c] sm:$0xf] %vm1154_vm2, %v1868_v4  ;;  %v700_v10 = vadd.f32 %v1979_v8, %v2368_v36  ;;  %v691_v12 = vpop.f32.mrb[29].mxu0 }
 0x125   : > { %1214 = vst.msk [vmem:[%s2378_s10 + $0xec] sm:$0xf] %vm1154_vm2, %v1900_v5  ;;  %v828_v11 = vadd.f32 %v2011_v9, %v2368_v36  ;;  %v819_v13 = vpop.f32.mrb[29].mxu1  ;;  %1180 = vst.msk [vmem:[%s2378_s10 + $0x64] sm:$0xf] %vm1154_vm2, %v1866_v6  ;;  %v692_v14 = vadd.f32 %v2368_v36, %v691_v12  ;;  %v1980_v16 = vpop.f32.mrb[30].mxu0 }
 0x126   : > { %1212 = vst.msk [vmem:[%s2378_s10 + $0xe4] sm:$0xf] %vm1154_vm2, %v1898_v7  ;;  %v820_v15 = vadd.f32 %v2368_v36, %v819_v13  ;;  %v2012_v17 = vpop.f32.mrb[30].mxu1  ;;  %v864_v18 = vmax.f32 %v700_v10, 0.0  ;;  %v703_v20 = vadd.f32 %v1980_v16, %v2368_v36  ;;  %v694_v22 = vpop.f32.mrb[31].mxu0 }
 0x127   : > { %v896_v19 = vmax.f32 %v828_v11, 0.0  ;;  %v831_v21 = vadd.f32 %v2012_v17, %v2368_v36  ;;  %v822_v23 = vpop.f32.mrb[31].mxu1  ;;  %v862_v24 = vmax.f32 %v692_v14, 0.0  ;;  %v695_v26 = vadd.f32 %v2368_v36, %v694_v22 }
 0x128   : > { %v894_v25 = vmax.f32 %v820_v15, 0.0  ;;  %v823_v27 = vadd.f32 %v2368_v36, %v822_v23  ;;  %v1871_v28 = vpack.c.bf16 %v864_v18, %v864_v18  ;;  %v865_v30 = vmax.f32 %v703_v20, 0.0  ;;  %1225 = sbr.rel (!%p2277_p4) target bundleno = 394 (0x18a), region = 36 }
 0x129   : > { %v1903_v29 = vpack.c.bf16 %v896_v19, %v896_v19  ;;  %v897_v31 = vmax.f32 %v831_v21, 0.0  ;;  %v1869_v32 = vpack.c.bf16 %v862_v24, %v862_v24  ;;  %v863_v34 = vmax.f32 %v695_v26, 0.0 }
 0x12a   : > { %v1901_v33 = vpack.c.bf16 %v894_v25, %v894_v25  ;;  %v895_v35 = vmax.f32 %v823_v27, 0.0  ;;  %1185 = vst.msk [vmem:[%s2378_s10 + $0x78] sm:$0xf] %vm1154_vm2, %v1871_v28  ;;  %v1872_v37 = vpack.c.bf16 %v865_v30, %v865_v30 }
 0x12b   : > { %1217 = vst.msk [vmem:[%s2378_s10 + $0xf8] sm:$0xf] %vm1154_vm2, %v1903_v29  ;;  %v1904_v38 = vpack.c.bf16 %v897_v31, %v897_v31  ;;  %1183 = vst.msk [vmem:[%s2378_s10 + $0x70] sm:$0xf] %vm1154_vm2, %v1869_v32  ;;  %v1870_v36 = vpack.c.bf16 %v863_v34, %v863_v34 }
 0x12c   : > { %1215 = vst.msk [vmem:[%s2378_s10 + $0xf0] sm:$0xf] %vm1154_vm2, %v1901_v33  ;;  %v1902_v39 = vpack.c.bf16 %v895_v35, %v895_v35  ;;  %1186 = vst.msk [vmem:[%s2378_s10 + $0x7c] sm:$0xf] %vm1154_vm2, %v1872_v37 }
 0x12d   : > { %1218 = vst.msk [vmem:[%s2378_s10 + $0xfc] sm:$0xf] %vm1154_vm2, %v1904_v38  ;;  %1184 = vst.msk [vmem:[%s2378_s10 + $0x74] sm:$0xf] %vm1154_vm2, %v1870_v36 }
 0x12e   : > { %1216 = vst.msk [vmem:[%s2378_s10 + $0xf4] sm:$0xf] %vm1154_vm2, %v1902_v39 }
 0x12f   : > { %s2775_s11 = smov (!%p1228_p8, %s1227_s11), 64 }
 0x130   : > { %s1826_s21 = sshll.u32 %s2775_s11, 6 }
 0x131   : > { %p1829_p9 = scmp.eq.s32.totalorder %s1826_s21, 0 }
 0x132   : > { %s2577_s22 = sshrl.u32 (!%p1829_p9), %s2775_s11, 6 }
 0x133   : > { %1236 = sbr.rel (%p1829_p9) target bundleno = 394 (0x18a), region = 40  ;;  %p1830_p10 = scmp.le.s32.totalorder (!%p1829_p9), %s2577_s22, 0 }
 0x13a   : > { %1641 = sbr.rel (%p1830_p10) target bundleno = 373 (0x175), region = 112  ;;  %s2768_s15 = smov (!%p1830_p10), %s2571_s18 }
 0x13b   : > { %s2769_s20 = smov (!%p1830_p10), %s2378_s10  ;;  %s2586_s23 = smov (!%p1830_p10), 0  }
 0x13c   : > { %s2588_s24 = smov (!%p1830_p10), 0  }
 0x141 LB: >> { %v1252_v40 = vld [vmem:[%s2206_s20] sm:$0xf]  ;;  %v1254_v41 = vld [vmem:[%s2206_s20 + $0x4] sm:$0xf]  ;;  %v1256_v42 = vld [vmem:[%s2206_s20 + $0x8] sm:$0xf]  ;;  %s2214_s24 = sphi %s2588_s24, %s1246_s24   ;;  %s2210_s23 = sphi %s2586_s23, %s2770_s23   ;;  %s2206_s20 = sphi %s2769_s20, %s1385_s20   ;;  %s2202_s15 = sphi %s2768_s15, %s1386_s15  }
 0x142   : >> { %1253 = vst [vmem:[%s2202_s15] sm:$0xf] %v1252_v40  ;;  %1255 = vst [vmem:[%s2202_s15 + $0x4] sm:$0xf] %v1254_v41  ;;  %v1258_v43 = vld [vmem:[%s2206_s20 + $0xc] sm:$0xf]  ;;  %s1380_s25 = sadd.s32 1, %s2210_s23 }
 0x143   : >> { %1257 = vst [vmem:[%s2202_s15 + $0x8] sm:$0xf] %v1256_v42  ;;  %v1260_v44 = vld [vmem:[%s2206_s20 + $0x10] sm:$0xf]  ;;  %v1262_v45 = vld [vmem:[%s2206_s20 + $0x14] sm:$0xf]  ;;  %p1381_p11 = scmp.ge.s32.totalorder %s1380_s25, %s2577_s22 }
 0x144   : >> { %1259 = vst [vmem:[%s2202_s15 + $0xc] sm:$0xf] %v1258_v43  ;;  %1261 = vst [vmem:[%s2202_s15 + $0x10] sm:$0xf] %v1260_v44  ;;  %v1264_v46 = vld [vmem:[%s2206_s20 + $0x18] sm:$0xf] }
 0x145   : >> { %1263 = vst [vmem:[%s2202_s15 + $0x14] sm:$0xf] %v1262_v45  ;;  %v1266_v47 = vld [vmem:[%s2206_s20 + $0x1c] sm:$0xf]  ;;  %v1268_v48 = vld [vmem:[%s2206_s20 + $0x20] sm:$0xf] }
 0x146   : >> { %1265 = vst [vmem:[%s2202_s15 + $0x18] sm:$0xf] %v1264_v46  ;;  %1267 = vst [vmem:[%s2202_s15 + $0x1c] sm:$0xf] %v1266_v47  ;;  %v1270_v49 = vld [vmem:[%s2206_s20 + $0x24] sm:$0xf] }
 0x147   : >> { %1269 = vst [vmem:[%s2202_s15 + $0x20] sm:$0xf] %v1268_v48  ;;  %v1272_v50 = vld [vmem:[%s2206_s20 + $0x28] sm:$0xf]  ;;  %v1274_v51 = vld [vmem:[%s2206_s20 + $0x2c] sm:$0xf] }
 0x148   : >> { %1271 = vst [vmem:[%s2202_s15 + $0x24] sm:$0xf] %v1270_v49  ;;  %1273 = vst [vmem:[%s2202_s15 + $0x28] sm:$0xf] %v1272_v50  ;;  %v1276_v52 = vld [vmem:[%s2206_s20 + $0x30] sm:$0xf] }
 0x149   : >> { %1275 = vst [vmem:[%s2202_s15 + $0x2c] sm:$0xf] %v1274_v51  ;;  %v1278_v53 = vld [vmem:[%s2206_s20 + $0x34] sm:$0xf]  ;;  %v1280_v54 = vld [vmem:[%s2206_s20 + $0x38] sm:$0xf] }
 0x14a   : >> { %1277 = vst [vmem:[%s2202_s15 + $0x30] sm:$0xf] %v1276_v52  ;;  %1279 = vst [vmem:[%s2202_s15 + $0x34] sm:$0xf] %v1278_v53  ;;  %v1282_v55 = vld [vmem:[%s2206_s20 + $0x3c] sm:$0xf] }
 0x14b   : >> { %1281 = vst [vmem:[%s2202_s15 + $0x38] sm:$0xf] %v1280_v54  ;;  %v1284_v56 = vld [vmem:[%s2206_s20 + $0x40] sm:$0xf]  ;;  %v1286_v57 = vld [vmem:[%s2206_s20 + $0x44] sm:$0xf] }
 0x14c   : >> { %1283 = vst [vmem:[%s2202_s15 + $0x3c] sm:$0xf] %v1282_v55  ;;  %1285 = vst [vmem:[%s2202_s15 + $0x40] sm:$0xf] %v1284_v56  ;;  %v1288_v58 = vld [vmem:[%s2206_s20 + $0x48] sm:$0xf] }
 0x14d   : >> { %1287 = vst [vmem:[%s2202_s15 + $0x44] sm:$0xf] %v1286_v57  ;;  %v1290_v59 = vld [vmem:[%s2206_s20 + $0x4c] sm:$0xf]  ;;  %v1292_v60 = vld [vmem:[%s2206_s20 + $0x50] sm:$0xf] }
 0x14e   : >> { %1289 = vst [vmem:[%s2202_s15 + $0x48] sm:$0xf] %v1288_v58  ;;  %1291 = vst [vmem:[%s2202_s15 + $0x4c] sm:$0xf] %v1290_v59  ;;  %v1294_v61 = vld [vmem:[%s2206_s20 + $0x54] sm:$0xf] }
 0x14f   : >> { %1293 = vst [vmem:[%s2202_s15 + $0x50] sm:$0xf] %v1292_v60  ;;  %v1296_v62 = vld [vmem:[%s2206_s20 + $0x58] sm:$0xf]  ;;  %v1298_v63 = vld [vmem:[%s2206_s20 + $0x5c] sm:$0xf] }
 0x150   : >> { %1295 = vst [vmem:[%s2202_s15 + $0x54] sm:$0xf] %v1294_v61  ;;  %1297 = vst [vmem:[%s2202_s15 + $0x58] sm:$0xf] %v1296_v62  ;;  %v1300_v0 = vld [vmem:[%s2206_s20 + $0x60] sm:$0xf] }
 0x151   : >> { %1299 = vst [vmem:[%s2202_s15 + $0x5c] sm:$0xf] %v1298_v63  ;;  %v1302_v1 = vld [vmem:[%s2206_s20 + $0x64] sm:$0xf]  ;;  %v1304_v2 = vld [vmem:[%s2206_s20 + $0x68] sm:$0xf] }
 0x152   : >> { %1301 = vst [vmem:[%s2202_s15 + $0x60] sm:$0xf] %v1300_v0  ;;  %1303 = vst [vmem:[%s2202_s15 + $0x64] sm:$0xf] %v1302_v1  ;;  %v1306_v3 = vld [vmem:[%s2206_s20 + $0x6c] sm:$0xf] }
 0x153   : >> { %1305 = vst [vmem:[%s2202_s15 + $0x68] sm:$0xf] %v1304_v2  ;;  %v1308_v4 = vld [vmem:[%s2206_s20 + $0x70] sm:$0xf]  ;;  %v1310_v5 = vld [vmem:[%s2206_s20 + $0x74] sm:$0xf] }
 0x154   : >> { %1307 = vst [vmem:[%s2202_s15 + $0x6c] sm:$0xf] %v1306_v3  ;;  %1309 = vst [vmem:[%s2202_s15 + $0x70] sm:$0xf] %v1308_v4  ;;  %v1312_v6 = vld [vmem:[%s2206_s20 + $0x78] sm:$0xf] }
 0x155   : >> { %1311 = vst [vmem:[%s2202_s15 + $0x74] sm:$0xf] %v1310_v5  ;;  %v1314_v7 = vld [vmem:[%s2206_s20 + $0x7c] sm:$0xf]  ;;  %v1316_v8 = vld [vmem:[%s2206_s20 + $0x80] sm:$0xf] }
 0x156   : >> { %1313 = vst [vmem:[%s2202_s15 + $0x78] sm:$0xf] %v1312_v6  ;;  %1315 = vst [vmem:[%s2202_s15 + $0x7c] sm:$0xf] %v1314_v7  ;;  %v1318_v9 = vld [vmem:[%s2206_s20 + $0x84] sm:$0xf] }
 0x157   : >> { %1317 = vst [vmem:[%s2202_s15 + $0x80] sm:$0xf] %v1316_v8  ;;  %v1320_v10 = vld [vmem:[%s2206_s20 + $0x88] sm:$0xf]  ;;  %v1322_v11 = vld [vmem:[%s2206_s20 + $0x8c] sm:$0xf] }
 0x158   : >> { %1319 = vst [vmem:[%s2202_s15 + $0x84] sm:$0xf] %v1318_v9  ;;  %1321 = vst [vmem:[%s2202_s15 + $0x88] sm:$0xf] %v1320_v10  ;;  %v1324_v12 = vld [vmem:[%s2206_s20 + $0x90] sm:$0xf] }
 0x159   : >> { %1323 = vst [vmem:[%s2202_s15 + $0x8c] sm:$0xf] %v1322_v11  ;;  %v1326_v13 = vld [vmem:[%s2206_s20 + $0x94] sm:$0xf]  ;;  %v1328_v14 = vld [vmem:[%s2206_s20 + $0x98] sm:$0xf] }
 0x15a   : >> { %1325 = vst [vmem:[%s2202_s15 + $0x90] sm:$0xf] %v1324_v12  ;;  %1327 = vst [vmem:[%s2202_s15 + $0x94] sm:$0xf] %v1326_v13  ;;  %v1330_v15 = vld [vmem:[%s2206_s20 + $0x9c] sm:$0xf] }
 0x15b   : >> { %1329 = vst [vmem:[%s2202_s15 + $0x98] sm:$0xf] %v1328_v14  ;;  %v1332_v16 = vld [vmem:[%s2206_s20 + $0xa0] sm:$0xf]  ;;  %v1334_v17 = vld [vmem:[%s2206_s20 + $0xa4] sm:$0xf] }
 0x15c   : >> { %1331 = vst [vmem:[%s2202_s15 + $0x9c] sm:$0xf] %v1330_v15  ;;  %1333 = vst [vmem:[%s2202_s15 + $0xa0] sm:$0xf] %v1332_v16  ;;  %v1336_v18 = vld [vmem:[%s2206_s20 + $0xa8] sm:$0xf] }
 0x15d   : >> { %1335 = vst [vmem:[%s2202_s15 + $0xa4] sm:$0xf] %v1334_v17  ;;  %v1338_v19 = vld [vmem:[%s2206_s20 + $0xac] sm:$0xf]  ;;  %v1340_v20 = vld [vmem:[%s2206_s20 + $0xb0] sm:$0xf] }
 0x15e   : >> { %1337 = vst [vmem:[%s2202_s15 + $0xa8] sm:$0xf] %v1336_v18  ;;  %1339 = vst [vmem:[%s2202_s15 + $0xac] sm:$0xf] %v1338_v19  ;;  %v1342_v21 = vld [vmem:[%s2206_s20 + $0xb4] sm:$0xf] }
 0x15f   : >> { %1341 = vst [vmem:[%s2202_s15 + $0xb0] sm:$0xf] %v1340_v20  ;;  %v1344_v22 = vld [vmem:[%s2206_s20 + $0xb8] sm:$0xf]  ;;  %v1346_v23 = vld [vmem:[%s2206_s20 + $0xbc] sm:$0xf] }
 0x160   : >> { %1343 = vst [vmem:[%s2202_s15 + $0xb4] sm:$0xf] %v1342_v21  ;;  %1345 = vst [vmem:[%s2202_s15 + $0xb8] sm:$0xf] %v1344_v22  ;;  %v1348_v24 = vld [vmem:[%s2206_s20 + $0xc0] sm:$0xf] }
 0x161   : >> { %1347 = vst [vmem:[%s2202_s15 + $0xbc] sm:$0xf] %v1346_v23  ;;  %v1350_v25 = vld [vmem:[%s2206_s20 + $0xc4] sm:$0xf]  ;;  %v1352_v26 = vld [vmem:[%s2206_s20 + $0xc8] sm:$0xf] }
 0x162   : >> { %1349 = vst [vmem:[%s2202_s15 + $0xc0] sm:$0xf] %v1348_v24  ;;  %1351 = vst [vmem:[%s2202_s15 + $0xc4] sm:$0xf] %v1350_v25  ;;  %v1354_v27 = vld [vmem:[%s2206_s20 + $0xcc] sm:$0xf] }
 0x163   : >> { %1353 = vst [vmem:[%s2202_s15 + $0xc8] sm:$0xf] %v1352_v26  ;;  %v1356_v28 = vld [vmem:[%s2206_s20 + $0xd0] sm:$0xf]  ;;  %v1358_v29 = vld [vmem:[%s2206_s20 + $0xd4] sm:$0xf] }
 0x164   : >> { %1355 = vst [vmem:[%s2202_s15 + $0xcc] sm:$0xf] %v1354_v27  ;;  %1357 = vst [vmem:[%s2202_s15 + $0xd0] sm:$0xf] %v1356_v28  ;;  %v1360_v30 = vld [vmem:[%s2206_s20 + $0xd8] sm:$0xf] }
 0x165   : >> { %1359 = vst [vmem:[%s2202_s15 + $0xd4] sm:$0xf] %v1358_v29  ;;  %v1362_v31 = vld [vmem:[%s2206_s20 + $0xdc] sm:$0xf]  ;;  %v1364_v32 = vld [vmem:[%s2206_s20 + $0xe0] sm:$0xf] }
 0x166   : >> { %1361 = vst [vmem:[%s2202_s15 + $0xd8] sm:$0xf] %v1360_v30  ;;  %1363 = vst [vmem:[%s2202_s15 + $0xdc] sm:$0xf] %v1362_v31  ;;  %v1366_v33 = vld [vmem:[%s2206_s20 + $0xe4] sm:$0xf] }
 0x167   : >> { %1365 = vst [vmem:[%s2202_s15 + $0xe0] sm:$0xf] %v1364_v32  ;;  %v1368_v34 = vld [vmem:[%s2206_s20 + $0xe8] sm:$0xf]  ;;  %v1370_v35 = vld [vmem:[%s2206_s20 + $0xec] sm:$0xf] }
 0x168   : >> { %1367 = vst [vmem:[%s2202_s15 + $0xe4] sm:$0xf] %v1366_v33  ;;  %1369 = vst [vmem:[%s2202_s15 + $0xe8] sm:$0xf] %v1368_v34  ;;  %v1372_v37 = vld [vmem:[%s2206_s20 + $0xf0] sm:$0xf] }
 0x169   : >> { %1371 = vst [vmem:[%s2202_s15 + $0xec] sm:$0xf] %v1370_v35  ;;  %v1374_v38 = vld [vmem:[%s2206_s20 + $0xf4] sm:$0xf]  ;;  %v1376_v36 = vld [vmem:[%s2206_s20 + $0xf8] sm:$0xf] }
 0x16a   : >> { %1373 = vst [vmem:[%s2202_s15 + $0xf0] sm:$0xf] %v1372_v37  ;;  %1375 = vst [vmem:[%s2202_s15 + $0xf4] sm:$0xf] %v1374_v38  ;;  %v1378_v39 = vld [vmem:[%s2206_s20 + $0xfc] sm:$0xf] }
 0x16b   : >> { %1377 = vst [vmem:[%s2202_s15 + $0xf8] sm:$0xf] %v1376_v36  ;;  %1379 = vst [vmem:[%s2202_s15 + $0xfc] sm:$0xf] %v1378_v39  ;;  %s2777_s25 = smov (%p1381_p11, %s1380_s25), 0  ;;  %s1246_s24 = sadd.s32 1, %s2214_s24  }
 0x16c   : >> { %s1831_s26 = sshll.u32 %s2777_s25, 8  ;;  %p1245_p12 = scmp.ge.s32.totalorder %s1246_s24, %s2577_s22 }
 0x16d   : >> { %s1385_s20 = scalar_lea.vmem %s2378_s10, %s1831_s26 [#allocation2]   ;;  %s1386_s15 = scalar_lea.vmem %s2571_s18, %s1831_s26  }
 0x16e   : >> { %s2770_s23 = smov %s2777_s25  ;;  %1248 = sbr.rel (!%p1245_p12) target bundleno = 321 (0x141), region = 118 }
 0x175 PF: > { %s2745_s27 = sand.u32 63, %s2775_s11   ;;  %s1906_s28 = sshll.u32 %s2577_s22, 8 }
 0x176   : > { %s1391_s29 = scalar_lea.vmem %s2378_s10, %s1906_s28 [#allocation2]   ;;  %s1393_s30 = scalar_lea.vmem %s2571_s18, %s1906_s28  }
 0x177   : > { %p1836_p13 = scmp.le.s32.totalorder %s2745_s27, 0 }
 0x178   : > { %s2216_s4 = smov (!%p1836_p13), %s1393_s30   ;;  %s2220_s5 = smov (!%p1836_p13), %s1391_s29  }
 0x179   : > { %1655 = sbr.rel (%p1836_p13) target bundleno = 394 (0x18a), region = 123  ;;  %s2224_s6 = smov (!%p1836_p13), 0  }
 0x17a   : > { %s2228_s7 = smov (!%p1836_p13), 0  }
 0x180 LB: >> { %v1403_v40 = vld [vmem:[%s2222_s5] sm:$0xf]  ;;  %s1405_s8 = sadd.s32 1, %s2226_s6  ;;  %s1397_s7 = sadd.s32 1, %s2230_s7   ;;  %s2230_s7 = sphi %s2228_s7, %s1397_s7   ;;  %s2226_s6 = sphi %s2224_s6, %s2225_s6   ;;  %s2222_s5 = sphi %s2220_s5, %s1410_s5   ;;  %s2218_s4 = sphi %s2216_s4, %s1411_s4  }
 0x181   : >> { %1404 = vst [vmem:[%s2218_s4] sm:$0xf] %v1403_v40  ;;  %p1406_p0 = scmp.ge.s32.totalorder %s1405_s8, %s2745_s27  ;;  %p1396_p1 = scmp.ge.s32.totalorder %s1397_s7, %s2745_s27 }
 0x183   : >> { %s2779_s8 = smov (%p1406_p0, %s1405_s8), 0  ;;  %1399 = sbr.rel (!%p1396_p1) target bundleno = 384 (0x180), region = 129 }
 0x184   : >> { %s1837_s9 = sshll.u32 %s2779_s8, 2  ;;  %s2225_s6 = smov %s2779_s8  }
 0x185   : >> { %s1410_s5 = scalar_lea.vmem %s1391_s29, %s1837_s9 [#allocation2]   ;;  %s1411_s4 = scalar_lea.vmem %s1393_s30, %s1837_s9  }
 0x18a PF: > { %p10_p2 = scmp.ge.s32.totalorder %s2267_s16, 12   ;;  %s2771_s12 = smov %s2194_s13 }
 0x18b   : > { %s2772_s13 = smov %s2275_s19  ;;  %s2773_s14 = smov %s2267_s16 }
 0x18c   :  { %12 = sbr.rel (!%p10_p2) target bundleno = 2 (0x2), region = 140 }

// kernel: sym_image_critic_forward.6
= control target key start
LH: loop header
LB: loop body
LE: loop exit
PB: predicated region body
PF: predicated region fallthrough
CT: control target
= control target key end

     0   :  { %s3267_s12 = smov 0   ;;  %s3269_s13 = smov 0   ;;  %s4045_s0 = inlined_call_operand.vmem [shape: bf16[1152,288], index: 0, kind: input, shape index: {}]   ;;  %s4046_s1 = inlined_call_operand.vmem [shape: bf16[288,64], index: 1, kind: input, shape index: {}]   ;;  %s4047_s2 = inlined_call_operand.vmem [shape: f32[1,64], index: 2, kind: input, shape index: {}]   ;;  %s4048_s3 = inlined_call_operand.vmem [shape: bf16[1152,64], index: 3, kind: output, shape index: {}]  }
   0x1   :  { %s3271_s14 = smov 0  }
   0x2 LB: > { %s3280_s15 = sadd.s32 4294967295, %s3212_s14   ;;  %s3282_s16 = sadd.s32 1, %s3212_s14   ;;  %s3212_s14 = sphi %s3271_s14, %s4055_s14   ;;  %s3208_s13 = sphi %s3269_s13, %s4054_s13   ;;  %s3204_s12 = sphi %s3267_s12, %s4053_s12  }
   0x3   : > { %s85_s17 = ssub.s32 %s3212_s14, %s3282_s16  ;;  %s88_s18 = sadd.s32 1, %s3208_s13 }
   0x4   : > { %p86_p0 = scmp.eq.s32.totalorder %s85_s17, 0  ;;  %p98_p1 = scmp.ne.s32.totalorder %s3208_s13, %s3204_s12 }
   0x5   : > { %p99_p2 = scmp.eq.s32.totalorder %s3280_s15, 2  ;;  %p2489_p3 = scmp.ge.s32.totalorder %s3212_s14, 1 }
   0x6   : > { %s3290_s19 = scalar_select %p86_p0, %s3208_s13, %s88_s18  }
   0x7   : > { %p3292_p4 = por %p99_p2, %p98_p1  ;;  %p149_p5 = scmp.lt.s32.totalorder %s3212_s14, 4 }
   0x9   : > { %p150_p6 = pnand %p2489_p3, %p149_p5 }
   0xa   : > { %v3012_v0 = vld [vmem:[%s4046_s1] sm:$0xff] (!%p150_p6)   ;;  %v3246_v1 = vmov (!%p150_p6), 0   ;;  %s3302_s23 = sshll.u32 (!%p150_p6), %s3280_s15, 6  ;;  %v3013_v2 = vld [vmem:[%s4046_s1 + $0x8] sm:$0xff] (!%p150_p6)   ;;  %v3014_v3 = vld [vmem:[%s4046_s1 + $0x10] sm:$0xff] (!%p150_p6)   ;;  %vm960_vm0 = vcmask (!%p150_p6), 261120  }
   0xb   : > { %153 = sbr.rel (%p150_p6) target bundleno = 573 (0x23d), region = 32  ;;  %1057 = vmatprep.subr.bf16.mxu0 (!%p150_p6), %v3246_v1  ;;  %2890 = vmatprep.subr.bf16.mxu1 (!%p150_p6), %v3246_v1  ;;  %p184_p7 = scmp.lt.s32.totalorder (!%p150_p6), %s3302_s23, 143  ;;  %v3015_v4 = vld [vmem:[%s4046_s1 + $0x18] sm:$0xff] (!%p150_p6)   ;;  %v3016_v5 = vld [vmem:[%s4046_s1 + $0x20] sm:$0xff] (!%p150_p6)   ;;  %v3017_v7 = vld [vmem:[%s4046_s1 + $0x28] sm:$0xff] (!%p150_p6)   ;;  %vm1955_vm1 = vcmask (!%p150_p6), 519168  }
   0xc   : > { %1058 = vmatpush1.bf16.msra.mxu0 (!%p150_p6), %v3012_v0  ;;  %2906 = vmatpush1.bf16.msra.mxu1 (!%p150_p6), %v3012_v0  ;;  %v3018_v9 = vld [vmem:[%s4046_s1 + $0x30] sm:$0xff] (!%p150_p6)   ;;  %v3019_v10 = vld [vmem:[%s4046_s1 + $0x38] sm:$0xff] (!%p150_p6)   ;;  %v3020_v11 = vld [vmem:[%s4046_s1 + $0x40] sm:$0xff] (!%p150_p6)   ;;  %s175_s25 = sand.u32 (!%p150_p6), 1, %s3204_s12  }
   0xd   : > { %1059 = vmatprep.subr.bf16.mxu0 (!%p150_p6), %v3246_v1  ;;  %2891 = vmatprep.subr.bf16.mxu1 (!%p150_p6), %v3246_v1  ;;  %v3021_v12 = vld [vmem:[%s4046_s1 + $0x48] sm:$0xff] (!%p150_p6)   ;;  %v3022_v13 = vld [vmem:[%s4046_s1 + $0x50] sm:$0xff] (!%p150_p6)   ;;  %v3023_v14 = vld [vmem:[%s4046_s1 + $0x58] sm:$0xff] (!%p150_p6)   ;;  %s2490_s26 = sshll.u32 (!%p150_p6), %s175_s25, 8 }
   0xe   : > { %v3024_v15 = vld [vmem:[%s4046_s1 + $0x60] sm:$0xff] (!%p150_p6)   ;;  %v3025_v16 = vld [vmem:[%s4046_s1 + $0x68] sm:$0xff] (!%p150_p6)   ;;  %v3026_v17 = vld [vmem:[%s4046_s1 + $0x70] sm:$0xff] (!%p150_p6)   ;;  %s3598_s12 = scalar_lea.vmem (!%p150_p6), [#allocation2], %s2490_s26  }
   0xf   : > { %v3027_v18 = vld [vmem:[%s4046_s1 + $0x78] sm:$0xff] (!%p150_p6)   ;;  %v3034_v19 = vld [vmem:[%s4046_s1 + $0x80] sm:$0xff] (!%p150_p6)   ;;  %v3059_v24 = vld [vmem:[%s4046_s1 + $0x88] sm:$0xff] (!%p150_p6)  }
  0x10   : > { %1060 = vmatpush1.bf16.msra.mxu0 (!%p150_p6), %v3013_v2  ;;  %2907 = vmatpush1.bf16.msra.mxu1 (!%p150_p6), %v3013_v2 }
  0x11   : > { %1061 = vmatprep.subr.bf16.mxu0 (!%p150_p6), %v3246_v1  ;;  %2892 = vmatprep.subr.bf16.mxu1 (!%p150_p6), %v3246_v1 }
  0x12   : > { %s185_s28 = scalar_select %p184_p7, %s3302_s23, 143 }
  0x13   : > { %s2028_s27 = ssub.s32 (%p3292_p4), 144, %s3302_s23 }
  0x14   : > { %1062 = vmatpush1.bf16.msra.mxu0 %v3014_v3  ;;  %2908 = vmatpush1.bf16.msra.mxu1 %v3014_v3  ;;  %s2922_s4 = smul.u32 12, %s185_s28  ;;  %s2785_s28 = sshll.u32 (%p3292_p4), %s3280_s15, 8 }
  0x15   : > { %1063 = vmatprep.subr.bf16.mxu0 %v3246_v1  ;;  %2893 = vmatprep.subr.bf16.mxu1 %v3246_v1  ;;  %p2029_p8 = scmp.lt.s32.totalorder (%p3292_p4), %s2028_s27, 64 }
  0x16   : > { %s3327_s9 = scalar_lea.vmem %s4045_s0, %s2922_s4  ;;  %s3853_s4 = scalar_lea.vmem (%p3292_p4), %s4048_s3, %s2785_s28  }
  0x17   : > { %v3030_v6 = vld [vmem:[%s3327_s9 + $0x4] ss:$12 sps:$4 sm:$0xff]   ;;  %v3028_v20 = vld [vmem:[%s3327_s9] ss:$12 sps:$4 sm:$0xff]   ;;  %v3035_v22 = vld [vmem:[%s3327_s9 + $0x1c] ss:$12 sps:$4 sm:$0xff]  }
  0x18   : > { %1064 = vmatpush1.bf16.msra.mxu0 %v3015_v4  ;;  %2909 = vmatpush1.bf16.msra.mxu1 %v3015_v4  ;;  %v3033_v8 = vld [vmem:[%s3327_s9 + $0x244] ss:$12 sps:$4 sm:$0xff]   ;;  %v3031_v21 = vld [vmem:[%s3327_s9 + $0x240] ss:$12 sps:$4 sm:$0xff]   ;;  %v3037_v23 = vld [vmem:[%s3327_s9 + $0x25c] ss:$12 sps:$4 sm:$0xff]  }
  0x19   : > { %1065 = vmatprep.subr.bf16.mxu0 %v3246_v1  ;;  %2894 = vmatprep.subr.bf16.mxu1 %v3246_v1  ;;  %v3039_v25 = vld [vmem:[%s3327_s9 + $0x18] ss:$12 sps:$4 sm:$0xff]   ;;  %v3041_v27 = vld [vmem:[%s3327_s9 + $0x34] ss:$12 sps:$4 sm:$0xff]   ;;  %v3045_v29 = vld [vmem:[%s3327_s9 + $0x30] ss:$12 sps:$4 sm:$0xff]  }
  0x1a   : > { %1089 = vmatprep.mubr.bf16.mxu0 %v3030_v6  ;;  %1281 = vmatprep.mubr.bf16.mxu1 %v3033_v8  ;;  %v3040_v26 = vld [vmem:[%s3327_s9 + $0x258] ss:$12 sps:$4 sm:$0xff]   ;;  %v3043_v28 = vld [vmem:[%s3327_s9 + $0x274] ss:$12 sps:$4 sm:$0xff]   ;;  %v3046_v30 = vld [vmem:[%s3327_s9 + $0x270] ss:$12 sps:$4 sm:$0xff]  }
  0x1b   : > { %v3047_v31 = vld [vmem:[%s3327_s9 + $0x4c] ss:$12 sps:$4 sm:$0xff]   ;;  %v3051_v33 = vld [vmem:[%s3327_s9 + $0x48] ss:$12 sps:$4 sm:$0xff]   ;;  %v3053_v35 = vld [vmem:[%s3327_s9 + $0x64] ss:$12 sps:$4 sm:$0xff]  }
  0x1c   : > { %1066 = vmatpush1.bf16.msra.mxu0 %v3016_v5  ;;  %2910 = vmatpush1.bf16.msra.mxu1 %v3016_v5  ;;  %v3049_v32 = vld [vmem:[%s3327_s9 + $0x28c] ss:$12 sps:$4 sm:$0xff]   ;;  %v3052_v34 = vld [vmem:[%s3327_s9 + $0x288] ss:$12 sps:$4 sm:$0xff]   ;;  %v3055_v36 = vld [vmem:[%s3327_s9 + $0x2a4] ss:$12 sps:$4 sm:$0xff]  }
  0x1d   : > { %1067 = vmatprep.subr.bf16.mxu0 %v3246_v1  ;;  %2895 = vmatprep.subr.bf16.mxu1 %v3246_v1  ;;  %v3057_v37 = vld [vmem:[%s3327_s9 + $0x60] ss:$12 sps:$4 sm:$0xff]   ;;  %v3060_v39 = vld [vmem:[%s3327_s9 + $0x7c] ss:$12 sps:$4 sm:$0xff]   ;;  %v3064_v41 = vld [vmem:[%s3327_s9 + $0x78] ss:$12 sps:$4 sm:$0xff]  }
  0x1e   : > { %v3058_v38 = vld [vmem:[%s3327_s9 + $0x2a0] ss:$12 sps:$4 sm:$0xff]   ;;  %v3062_v40 = vld [vmem:[%s3327_s9 + $0x2bc] ss:$12 sps:$4 sm:$0xff]   ;;  %v3065_v42 = vld [vmem:[%s3327_s9 + $0x2b8] ss:$12 sps:$4 sm:$0xff]  }
  0x1f   : > { %v3066_v43 = vld [vmem:[%s3327_s9 + $0x94] ss:$12 sps:$4 sm:$0xff]   ;;  %v3070_v45 = vld [vmem:[%s3327_s9 + $0x90] ss:$12 sps:$4 sm:$0xff]   ;;  %v3072_v47 = vld [vmem:[%s3327_s9 + $0xac] ss:$12 sps:$4 sm:$0xff]  }
  0x20   : > { %1068 = vmatpush1.bf16.msra.mxu0 %v3017_v7  ;;  %2911 = vmatpush1.bf16.msra.mxu1 %v3017_v7  ;;  %v3068_v44 = vld [vmem:[%s3327_s9 + $0x2d4] ss:$12 sps:$4 sm:$0xff]   ;;  %v3071_v46 = vld [vmem:[%s3327_s9 + $0x2d0] ss:$12 sps:$4 sm:$0xff]   ;;  %v3074_v48 = vld [vmem:[%s3327_s9 + $0x2ec] ss:$12 sps:$4 sm:$0xff]  }
  0x21   : > { %1069 = vmatprep.subr.bf16.mxu0 %v3246_v1  ;;  %2896 = vmatprep.subr.bf16.mxu1 %v3246_v1  ;;  %v3076_v49 = vld [vmem:[%s3327_s9 + $0xa8] ss:$12 sps:$4 sm:$0xff]   ;;  %v3078_v51 = vld [vmem:[%s3327_s9 + $0xc4] ss:$12 sps:$4 sm:$0xff]   ;;  %v3081_v53 = vld [vmem:[%s3327_s9 + $0xc0] ss:$12 sps:$4 sm:$0xff]  }
  0x22   : > { %v3077_v50 = vld [vmem:[%s3327_s9 + $0x2e8] ss:$12 sps:$4 sm:$0xff]   ;;  %v3082_v54 = vld [vmem:[%s3327_s9 + $0x20] ss:$12 sps:$4 sm:$0xff]   ;;  %v3085_v56 = vld [vmem:[%s3327_s9 + $0x38] ss:$12 sps:$4 sm:$0xff]  }
  0x23   : > { %v3080_v52 = vld [vmem:[%s3327_s9 + $0x8] ss:$12 sps:$4 sm:$0xff]   ;;  %v3086_v57 = vld [vmem:[%s3327_s9 + $0xd8] ss:$12 sps:$4 sm:$0xff]   ;;  %v3087_v58 = vld [vmem:[%s3327_s9 + $0x50] ss:$12 sps:$4 sm:$0xff]  }
  0x24   : > { %1070 = vmatpush1.bf16.msra.mxu0 %v3018_v9  ;;  %2912 = vmatpush1.bf16.msra.mxu1 %v3018_v9  ;;  %v3083_v55 = vld [vmem:[%s3327_s9 + $0xdc] ss:$12 sps:$4 sm:$0xff]   ;;  %v3088_v59 = vld [vmem:[%s3327_s9 + $0xf4] ss:$12 sps:$4 sm:$0xff]   ;;  %v3093_v63 = vld [vmem:[%s3327_s9 + $0x10c] ss:$12 sps:$4 sm:$0xff]  }
  0x25   : > { %1071 = vmatprep.subr.bf16.mxu0 %v3246_v1  ;;  %2897 = vmatprep.subr.bf16.mxu1 %v3246_v1  ;;  %v3090_v60 = vld [vmem:[%s3327_s9 + $0x68] ss:$12 sps:$4 sm:$0xff]   ;;  %v3091_v61 = vld [vmem:[%s3327_s9 + $0xf0] ss:$12 sps:$4 sm:$0xff]   ;;  %v3092_v62 = vld [vmem:[%s3327_s9 + $0x80] ss:$12 sps:$4 sm:$0xff]  }
  0x26   : > { %v3095_v0 = vld [vmem:[%s3327_s9 + $0x98] ss:$12 sps:$4 sm:$0xff]   ;;  %v3097_v2 = vld [vmem:[%s3327_s9 + $0xb0] ss:$12 sps:$4 sm:$0xff]   ;;  %v3100_v4 = vld [vmem:[%s3327_s9 + $0xc8] ss:$12 sps:$4 sm:$0xff]  }
  0x27   : > { %v3098_v3 = vld [vmem:[%s3327_s9 + $0x124] ss:$12 sps:$4 sm:$0xff]   ;;  %v3101_v5 = vld [vmem:[%s3327_s9 + $0x120] ss:$12 sps:$4 sm:$0xff]   ;;  %v3103_v7 = vld [vmem:[%s3327_s9 + $0x13c] ss:$12 sps:$4 sm:$0xff]  }
  0x28   : > { %1072 = vmatpush1.bf16.msra.mxu0 %v3019_v10  ;;  %2913 = vmatpush1.bf16.msra.mxu1 %v3019_v10  ;;  %v3102_v6 = vld [vmem:[%s3327_s9 + $0xe0] ss:$12 sps:$4 sm:$0xff]   ;;  %v3105_v8 = vld [vmem:[%s3327_s9 + $0xf8] ss:$12 sps:$4 sm:$0xff]   ;;  %v3107_v10 = vld [vmem:[%s3327_s9 + $0x110] ss:$12 sps:$4 sm:$0xff]  }
  0x29   : > { %1073 = vmatprep.subr.bf16.mxu0 %v3246_v1  ;;  %2898 = vmatprep.subr.bf16.mxu1 %v3246_v1  ;;  %v3106_v9 = vld [vmem:[%s3327_s9 + $0x138] ss:$12 sps:$4 sm:$0xff]  }
  0x2c   : > { %1074 = vmatpush1.bf16.msra.mxu0 %v3020_v11  ;;  %2914 = vmatpush1.bf16.msra.mxu1 %v3020_v11  ;;  %v3108_v11 = vld [vmem:[%s3327_s9 + $0x154] ss:$12 sps:$4 sm:$0xff]  }
  0x2d   : > { %1075 = vmatprep.subr.bf16.mxu0 %v3246_v1  ;;  %2899 = vmatprep.subr.bf16.mxu1 %v3246_v1 }
  0x30   : > { %1076 = vmatpush1.bf16.msra.mxu0 %v3021_v12  ;;  %2915 = vmatpush1.bf16.msra.mxu1 %v3021_v12  ;;  %v3110_v12 = vld [vmem:[%s3327_s9 + $0x128] ss:$12 sps:$4 sm:$0xff]  }
  0x31   : > { %1077 = vmatprep.subr.bf16.mxu0 %v3246_v1  ;;  %2900 = vmatprep.subr.bf16.mxu1 %v3246_v1 }
  0x34   : > { %1078 = vmatpush1.bf16.msra.mxu0 %v3022_v13  ;;  %2916 = vmatpush1.bf16.msra.mxu1 %v3022_v13  ;;  %v3111_v13 = vld [vmem:[%s3327_s9 + $0x150] ss:$12 sps:$4 sm:$0xff]  }
  0x35   : > { %1079 = vmatprep.subr.bf16.mxu0 %v3246_v1  ;;  %2901 = vmatprep.subr.bf16.mxu1 %v3246_v1 }
  0x38   : > { %1080 = vmatpush1.bf16.msra.mxu0 %v3023_v14  ;;  %2917 = vmatpush1.bf16.msra.mxu1 %v3023_v14  ;;  %v3112_v14 = vld [vmem:[%s3327_s9 + $0x140] ss:$12 sps:$4 sm:$0xff]  }
  0x39   : > { %1081 = vmatprep.subr.bf16.mxu0 %v3246_v1  ;;  %2902 = vmatprep.subr.bf16.mxu1 %v3246_v1 }
  0x3c   : > { %1082 = vmatpush1.bf16.msra.mxu0 %v3024_v15  ;;  %2918 = vmatpush1.bf16.msra.mxu1 %v3024_v15  ;;  %v3113_v15 = vld [vmem:[%s3327_s9 + $0x16c] ss:$12 sps:$4 sm:$0xff]  }
  0x3d   : > { %1083 = vmatprep.subr.bf16.mxu0 %v3246_v1  ;;  %2903 = vmatprep.subr.bf16.mxu1 %v3246_v1 }
  0x40   : > { %1084 = vmatpush1.bf16.msra.mxu0 %v3025_v16  ;;  %2919 = vmatpush1.bf16.msra.mxu1 %v3025_v16  ;;  %v3115_v16 = vld [vmem:[%s3327_s9 + $0x158] ss:$12 sps:$4 sm:$0xff]  }
  0x41   : > { %1085 = vmatprep.subr.bf16.mxu0 %v3246_v1  ;;  %2904 = vmatprep.subr.bf16.mxu1 %v3246_v1 }
  0x44   : > { %1086 = vmatpush1.bf16.msra.mxu0 %v3026_v17  ;;  %2920 = vmatpush1.bf16.msra.mxu1 %v3026_v17  ;;  %v3116_v17 = vld [vmem:[%s3327_s9 + $0x168] ss:$12 sps:$4 sm:$0xff]  }
  0x45   : > { %1087 = vmatprep.subr.bf16.mxu0 %v3246_v1  ;;  %2905 = vmatprep.subr.bf16.mxu1 %v3246_v1  ;;  %v3096_v1 = vld [vmem:[%s3327_s9 + $0x108] ss:$12 sps:$4 sm:$0xff]  }
  0x48   : > { %1088 = vmatpush1.bf16.msra.mxu0 %v3027_v18  ;;  %2921 = vmatpush1.bf16.msra.mxu1 %v3027_v18  ;;  %v3117_v18 = vld [vmem:[%s3327_s9 + $0x170] ss:$12 sps:$4 sm:$0xff]  }
  0x49   : > { %2822 = vmatprep.subr.bf16.mxu1 %v3034_v19 }
  0x4b   : > { %1090 = vmatmul.mubr.bf16.vlgmr.msra.gmra.mrb[0].mxu0 %v3028_v20  ;;  %1282 = vmatmul.mubr.bf16.vlgmr.msra.gmra.mrb[0].mxu1 %v3031_v21  ;;  %v3120_v20 = vld [vmem:[%s3327_s9 + $0x188] ss:$12 sps:$4 sm:$0xff]   ;;  %v3121_v21 = vld [vmem:[%s3327_s9 + $0x180] ss:$12 sps:$4 sm:$0xff]  }
  0x4c   : > { %2823 = vmatpush3.bf16.msra.mxu1 %v3034_v19  ;;  %1097 = vmatprep.mubr.bf16.mxu0 %v3035_v22  ;;  %v3118_v19 = vld [vmem:[%s3327_s9 + $0x184] ss:$12 sps:$4 sm:$0xff]   ;;  %v3122_v22 = vld [vmem:[%s3327_s9 + $0x1a0] ss:$12 sps:$4 sm:$0xff]  }
  0x4d   : > { %1289 = vmatprep.mubr.bf16.mxu1 %v3037_v23  ;;  %2824 = vmatprep.subr.bf16.mxu1 %v3059_v24  ;;  %v3123_v23 = vld [vmem:[%s3327_s9 + $0x19c] ss:$12 sps:$4 sm:$0xff]  }
  0x50   : > { %2825 = vmatpush3.bf16.msra.mxu1 %v3059_v24  ;;  %v3125_v24 = vld [vmem:[%s3327_s9 + $0x1b8] ss:$12 sps:$4 sm:$0xff]  }
  0x53   : > { %1098 = vmatmul.mubr.bf16.gmra.mrb[4].mxu0 %v3039_v25  ;;  %1290 = vmatmul.mubr.bf16.gmra.mrb[4].mxu1 %v3040_v26  ;;  %v3126_v25 = vld [vmem:[%s3327_s9 + $0x198] ss:$12 sps:$4 sm:$0xff]   ;;  %v3127_v26 = vld [vmem:[%s3327_s9 + $0x1d0] ss:$12 sps:$4 sm:$0xff]  }
  0x54   : > { %1105 = vmatprep.mubr.bf16.mxu0 %v3041_v27  ;;  %1297 = vmatprep.mubr.bf16.mxu1 %v3043_v28  ;;  %v3128_v27 = vld [vmem:[%s3327_s9 + $0x1b4] ss:$12 sps:$4 sm:$0xff]  }
  0x55   : > { %v3130_v28 = vld [vmem:[%s3327_s9 + $0x1e8] ss:$12 sps:$4 sm:$0xff]  }
  0x5b   : > { %1106 = vmatmul.mubr.bf16.gmra.mrb[8].mxu0 %v3045_v29  ;;  %1298 = vmatmul.mubr.bf16.gmra.mrb[8].mxu1 %v3046_v30  ;;  %v3131_v29 = vld [vmem:[%s3327_s9 + $0x1b0] ss:$12 sps:$4 sm:$0xff]   ;;  %v3132_v30 = vld [vmem:[%s3327_s9 + $0x200] ss:$12 sps:$4 sm:$0xff]  }
  0x5c   : > { %1113 = vmatprep.mubr.bf16.mxu0 %v3047_v31  ;;  %1305 = vmatprep.mubr.bf16.mxu1 %v3049_v32  ;;  %v3133_v31 = vld [vmem:[%s3327_s9 + $0x1cc] ss:$12 sps:$4 sm:$0xff]  }
  0x5d   : > { %v3135_v32 = vld [vmem:[%s3327_s9 + $0x218] ss:$12 sps:$4 sm:$0xff]  }
  0x63   : > { %1114 = vmatmul.mubr.bf16.gmra.mrb[12].mxu0 %v3051_v33  ;;  %1306 = vmatmul.mubr.bf16.gmra.mrb[12].mxu1 %v3052_v34  ;;  %v3136_v33 = vld [vmem:[%s3327_s9 + $0x1c8] ss:$12 sps:$4 sm:$0xff]   ;;  %v3137_v34 = vld [vmem:[%s3327_s9 + $0x230] ss:$12 sps:$4 sm:$0xff]  }
  0x64   : > { %1121 = vmatprep.mubr.bf16.mxu0 %v3053_v35  ;;  %1313 = vmatprep.mubr.bf16.mxu1 %v3055_v36  ;;  %v3138_v35 = vld [vmem:[%s3327_s9 + $0x1e4] ss:$12 sps:$4 sm:$0xff]   ;;  %v3140_v36 = vld [vmem:[%s3327_s9 + $0x248] ss:$12 sps:$4 sm:$0xff]  }
  0x6b   : > { %1122 = vmatmul.mubr.bf16.gmra.mrb[16].mxu0 %v3057_v37  ;;  %1314 = vmatmul.mubr.bf16.gmra.mrb[16].mxu1 %v3058_v38  ;;  %v3141_v37 = vld [vmem:[%s3327_s9 + $0x1e0] ss:$12 sps:$4 sm:$0xff]  }
  0x6c   : > { %1129 = vmatprep.mubr.bf16.mxu0 %v3060_v39  ;;  %1321 = vmatprep.mubr.bf16.mxu1 %v3062_v40  ;;  %v3142_v38 = vld [vmem:[%s3327_s9 + $0x260] ss:$12 sps:$4 sm:$0xff]   ;;  %v3143_v39 = vld [vmem:[%s3327_s9 + $0x1fc] ss:$12 sps:$4 sm:$0xff]   ;;  %v3145_v40 = vld [vmem:[%s3327_s9 + $0x278] ss:$12 sps:$4 sm:$0xff]  }
  0x73   : > { %1130 = vmatmul.mubr.bf16.gmra.mrb[20].mxu0 %v3064_v41  ;;  %1322 = vmatmul.mubr.bf16.gmra.mrb[20].mxu1 %v3065_v42  ;;  %v3146_v41 = vld [vmem:[%s3327_s9 + $0x1f8] ss:$12 sps:$4 sm:$0xff]   ;;  %v3147_v42 = vld [vmem:[%s3327_s9 + $0x290] ss:$12 sps:$4 sm:$0xff]  }
  0x74   : > { %1137 = vmatprep.mubr.bf16.mxu0 %v3066_v43  ;;  %1329 = vmatprep.mubr.bf16.mxu1 %v3068_v44  ;;  %v3148_v43 = vld [vmem:[%s3327_s9 + $0x214] ss:$12 sps:$4 sm:$0xff]  }
  0x75   : > { %v3150_v44 = vld [vmem:[%s3327_s9 + $0x2a8] ss:$12 sps:$4 sm:$0xff]  }
  0x7b   : > { %1138 = vmatmul.mubr.bf16.gmra.mrb[24].mxu0 %v3070_v45  ;;  %1330 = vmatmul.mubr.bf16.gmra.mrb[24].mxu1 %v3071_v46  ;;  %v3151_v45 = vld [vmem:[%s3327_s9 + $0x210] ss:$12 sps:$4 sm:$0xff]   ;;  %v3152_v46 = vld [vmem:[%s3327_s9 + $0x2c0] ss:$12 sps:$4 sm:$0xff]  }
  0x7c   : > { %1145 = vmatprep.mubr.bf16.mxu0 %v3072_v47  ;;  %1337 = vmatprep.mubr.bf16.mxu1 %v3074_v48  ;;  %v3153_v47 = vld [vmem:[%s3327_s9 + $0x22c] ss:$12 sps:$4 sm:$0xff]  }
  0x7d   : > { %v3155_v48 = vld [vmem:[%s3327_s9 + $0x2d8] ss:$12 sps:$4 sm:$0xff]  }
  0x83   : > { %1146 = vmatmul.mubr.bf16.gmra.mrb[28].mxu0 %v3076_v49  ;;  %1338 = vmatmul.mubr.bf16.gmra.mrb[28].mxu1 %v3077_v50  ;;  %v3156_v49 = vld [vmem:[%s3327_s9 + $0x228] ss:$12 sps:$4 sm:$0xff]   ;;  %v3157_v50 = vld [vmem:[%s3327_s9 + $0x2f0] ss:$12 sps:$4 sm:$0xff]  }
  0x84   : > { %1153 = vmatprep.mubr.bf16.mxu0 %v3078_v51  ;;  %2826 = vmatprep.mubr.msk.bf16.mxu1 %vm960_vm0, %v3080_v52 }
  0x8b   : > { %1154 = vmatmul.mubr.bf16.gmra.mrb[32].mxu0 %v3081_v53  ;;  %2827 = vmatmul.mubr.msk.bf16.vlgmr.msra.gmra.mrb[32].mxu1 %vm960_vm0, %v3082_v54 }
  0x8c   : > { %1161 = vmatprep.mubr.bf16.mxu0 %v3083_v55  ;;  %2830 = vmatprep.mubr.msk.bf16.mxu1 %vm960_vm0, %v3085_v56 }
  0x93   : > { %1162 = vmatmul.mubr.bf16.gmra.mrb[36].mxu0 %v3086_v57  ;;  %2831 = vmatmul.mubr.msk.bf16.gmra.mrb[36].mxu1 %vm960_vm0, %v3087_v58 }
  0x94   : > { %1169 = vmatprep.mubr.bf16.mxu0 %v3088_v59  ;;  %2834 = vmatprep.mubr.msk.bf16.mxu1 %vm960_vm0, %v3090_v60 }
  0x9b   : > { %1170 = vmatmul.mubr.bf16.gmra.mrb[40].mxu0 %v3091_v61  ;;  %2835 = vmatmul.mubr.msk.bf16.gmra.mrb[40].mxu1 %vm960_vm0, %v3092_v62 }
  0x9c   : > { %1177 = vmatprep.mubr.bf16.mxu0 %v3093_v63  ;;  %2838 = vmatprep.mubr.msk.bf16.mxu1 %vm960_vm0, %v3095_v0 }
  0xa3   : > { %1178 = vmatmul.mubr.bf16.gmra.mrb[44].mxu0 %v3096_v1  ;;  %2839 = vmatmul.mubr.msk.bf16.gmra.mrb[44].mxu1 %vm960_vm0, %v3097_v2 }
  0xa4   : > { %1185 = vmatprep.mubr.bf16.mxu0 %v3098_v3  ;;  %2842 = vmatprep.mubr.msk.bf16.mxu1 %vm960_vm0, %v3100_v4 }
  0xab   : > { %1186 = vmatmul.mubr.bf16.gmra.mrb[48].mxu0 %v3101_v5  ;;  %2843 = vmatmul.mubr.msk.bf16.gmra.mrb[48].mxu1 %vm960_vm0, %v3102_v6 }
  0xac   : > { %1193 = vmatprep.mubr.bf16.mxu0 %v3103_v7  ;;  %2846 = vmatprep.mubr.msk.bf16.mxu1 %vm960_vm0, %v3105_v8 }
  0xb3   : > { %1194 = vmatmul.mubr.bf16.gmra.mrb[52].mxu0 %v3106_v9  ;;  %2847 = vmatmul.mubr.msk.bf16.gmra.mrb[52].mxu1 %vm960_vm0, %v3107_v10 }
  0xb4   : > { %1201 = vmatprep.mubr.bf16.mxu0 %v3108_v11  ;;  %2850 = vmatprep.mubr.msk.bf16.mxu1 %vm960_vm0, %v3110_v12 }
  0xbb   : > { %1202 = vmatmul.mubr.bf16.gmra.mrb[56].mxu0 %v3111_v13  ;;  %2851 = vmatmul.mubr.msk.bf16.gmra.mrb[56].mxu1 %vm960_vm0, %v3112_v14 }
  0xbc   : > { %1209 = vmatprep.mubr.bf16.mxu0 %v3113_v15  ;;  %2854 = vmatprep.mubr.msk.bf16.mxu1 %vm960_vm0, %v3115_v16 }
  0xc3   : > { %1210 = vmatmul.mubr.bf16.gmra.mrb[60].mxu0 %v3116_v17  ;;  %2855 = vmatmul.mubr.msk.bf16.gmra.mrb[60].mxu1 %vm960_vm0, %v3117_v18 }
  0xc4   : > { %1217 = vmatprep.mubr.bf16.mxu0 %v3118_v19  ;;  %2858 = vmatprep.mubr.msk.bf16.mxu1 %vm960_vm0, %v3120_v20 }
  0xcb   : > { %1218 = vmatmul.mubr.bf16.gmra.mrb[64].mxu0 %v3121_v21  ;;  %2859 = vmatmul.mubr.msk.bf16.gmra.mrb[64].mxu1 %vm960_vm0, %v3122_v22 }
  0xcc   : > { %1225 = vmatprep.mubr.bf16.mxu0 %v3123_v23  ;;  %2862 = vmatprep.mubr.msk.bf16.mxu1 %vm960_vm0, %v3125_v24 }
  0xd3   : > { %1226 = vmatmul.mubr.bf16.gmra.mrb[68].mxu0 %v3126_v25  ;;  %2863 = vmatmul.mubr.msk.bf16.gmra.mrb[68].mxu1 %vm960_vm0, %v3127_v26 }
  0xd4   : > { %1233 = vmatprep.mubr.bf16.mxu0 %v3128_v27  ;;  %2866 = vmatprep.mubr.msk.bf16.mxu1 %vm960_vm0, %v3130_v28 }
  0xdb   : > { %1234 = vmatmul.mubr.bf16.gmra.mrb[72].mxu0 %v3131_v29  ;;  %2867 = vmatmul.mubr.msk.bf16.gmra.mrb[72].mxu1 %vm960_vm0, %v3132_v30 }
  0xdc   : > { %1241 = vmatprep.mubr.bf16.mxu0 %v3133_v31  ;;  %2870 = vmatprep.mubr.msk.bf16.mxu1 %vm960_vm0, %v3135_v32 }
  0xe3   : > { %1242 = vmatmul.mubr.bf16.gmra.mrb[76].mxu0 %v3136_v33  ;;  %2871 = vmatmul.mubr.msk.bf16.gmra.mrb[76].mxu1 %vm960_vm0, %v3137_v34 }
  0xe4   : > { %1249 = vmatprep.mubr.bf16.mxu0 %v3138_v35  ;;  %2874 = vmatprep.mubr.msk.bf16.mxu1 %vm960_vm0, %v3140_v36 }
  0xeb   : > { %1250 = vmatmul.mubr.bf16.gmra.mrb[80].mxu0 %v3141_v37  ;;  %2875 = vmatmul.mubr.msk.bf16.gmra.mrb[80].mxu1 %vm960_vm0, %v3142_v38 }
  0xec   : > { %1257 = vmatprep.mubr.bf16.mxu0 %v3143_v39  ;;  %2878 = vmatprep.mubr.msk.bf16.mxu1 %vm960_vm0, %v3145_v40 }
  0xf3   : > { %1258 = vmatmul.mubr.bf16.gmra.mrb[84].mxu0 %v3146_v41  ;;  %2879 = vmatmul.mubr.msk.bf16.gmra.mrb[84].mxu1 %vm960_vm0, %v3147_v42 }
  0xf4   : > { %1265 = vmatprep.mubr.bf16.mxu0 %v3148_v43  ;;  %2882 = vmatprep.mubr.msk.bf16.mxu1 %vm960_vm0, %v3150_v44 }
  0xfb   : > { %1266 = vmatmul.mubr.bf16.gmra.mrb[88].mxu0 %v3151_v45  ;;  %2883 = vmatmul.mubr.msk.bf16.gmra.mrb[88].mxu1 %vm960_vm0, %v3152_v46 }
  0xfc   : > { %1273 = vmatprep.mubr.bf16.mxu0 %v3153_v47  ;;  %2886 = vmatprep.mubr.msk.bf16.mxu1 %vm960_vm0, %v3155_v48 }
 0x103   : > { %1274 = vmatmul.mubr.bf16.gmra.mrb[92].mxu0 %v3156_v49  ;;  %2887 = vmatmul.mubr.msk.bf16.gmra.mrb[92].mxu1 %vm960_vm0, %v3157_v50 }
 0x11e   : > { %v3520_v51 = vpop.f32.mrb[0].mxu0  ;;  %v3522_v52 = vpop.f32.mrb[0].mxu1 }
 0x11f   : > { %v1093_v53 = vpop.f32.mrb[1].mxu0  ;;  %v1285_v54 = vpop.f32.mrb[1].mxu1 }
 0x120   : > { %v3524_v55 = vpop.f32.mrb[2].mxu0  ;;  %v3526_v56 = vpop.f32.mrb[2].mxu1  ;;  %v3583_v53 = vld [vmem:[%s4047_s2] ss:$0 sm:$0xff] }
 0x121   : > { %v1096_v57 = vpop.f32.mrb[3].mxu0  ;;  %v1288_v58 = vpop.f32.mrb[3].mxu1 }
 0x122   : > { %v1092_v57 = vadd.f32 %v3583_v53, %v3520_v51 }
 0x126   : > { %v1099_v59 = vpop.f32.mrb[4].mxu0  ;;  %v3528_v60 = vpop.f32.mrb[4].mxu1 }
 0x127   : > { %v1101_v61 = vpop.f32.mrb[5].mxu0  ;;  %v1293_v62 = vpop.f32.mrb[5].mxu1  ;;  %v1100_v54 = vadd.f32 %v3583_v53, %v1099_v59 }
 0x128   : > { %v1102_v63 = vpop.f32.mrb[6].mxu0  ;;  %v3530_v0 = vpop.f32.mrb[6].mxu1 }
 0x129   : > { %v1104_v1 = vpop.f32.mrb[7].mxu0  ;;  %v1296_v2 = vpop.f32.mrb[7].mxu1  ;;  %v1103_v62 = vadd.f32 %v3583_v53, %v1102_v63 }
 0x12e   : > { %v3532_v3 = vpop.f32.mrb[8].mxu0  ;;  %v3534_v4 = vpop.f32.mrb[8].mxu1 }
 0x12f   : > { %v1109_v5 = vpop.f32.mrb[9].mxu0  ;;  %v1301_v6 = vpop.f32.mrb[9].mxu1 }
 0x130   : > { %v3536_v7 = vpop.f32.mrb[10].mxu0  ;;  %v3538_v8 = vpop.f32.mrb[10].mxu1  ;;  %v1095_v6 = vadd.f32 %v3583_v53, %v3524_v55 }
 0x131   : > { %v1112_v9 = vpop.f32.mrb[11].mxu0  ;;  %v1304_v10 = vpop.f32.mrb[11].mxu1 }
 0x136   : > { %v3540_v11 = vpop.f32.mrb[12].mxu0  ;;  %v3542_v12 = vpop.f32.mrb[12].mxu1 }
 0x137   : > { %v1117_v13 = vpop.f32.mrb[13].mxu0  ;;  %v1309_v14 = vpop.f32.mrb[13].mxu1 }
 0x138   : > { %v3544_v15 = vpop.f32.mrb[14].mxu0  ;;  %v3546_v16 = vpop.f32.mrb[14].mxu1 }
 0x139   : > { %v1120_v17 = vpop.f32.mrb[15].mxu0  ;;  %v1312_v18 = vpop.f32.mrb[15].mxu1 }
 0x13e   : > { %v3548_v19 = vpop.f32.mrb[16].mxu0  ;;  %v3550_v20 = vpop.f32.mrb[16].mxu1 }
 0x13f   : > { %v1125_v21 = vpop.f32.mrb[17].mxu0  ;;  %v1317_v22 = vpop.f32.mrb[17].mxu1 }
 0x140   : > { %v3552_v23 = vpop.f32.mrb[18].mxu0  ;;  %v3554_v24 = vpop.f32.mrb[18].mxu1 }
 0x141   : > { %v1128_v25 = vpop.f32.mrb[19].mxu0  ;;  %v1320_v26 = vpop.f32.mrb[19].mxu1 }
 0x146   : > { %v3556_v27 = vpop.f32.mrb[20].mxu0  ;;  %v3558_v28 = vpop.f32.mrb[20].mxu1 }
 0x147   : > { %v1133_v29 = vpop.f32.mrb[21].mxu0  ;;  %v1325_v30 = vpop.f32.mrb[21].mxu1 }
 0x148   : > { %v3560_v31 = vpop.f32.mrb[22].mxu0  ;;  %v3562_v32 = vpop.f32.mrb[22].mxu1  ;;  %v1116_v29 = vadd.f32 %v3583_v53, %v3540_v11  ;;  %v1108_v30 = vadd.f32 %v3583_v53, %v3532_v3  ;;  %v1119_v11 = vadd.f32 %v3583_v53, %v3544_v15 }
 0x149   : > { %v1136_v33 = vpop.f32.mrb[23].mxu0  ;;  %v1328_v34 = vpop.f32.mrb[23].mxu1 }
 0x14e   : > { %v3564_v35 = vpop.f32.mrb[24].mxu0  ;;  %v3566_v36 = vpop.f32.mrb[24].mxu1 }
 0x14f   : > { %v1141_v37 = vpop.f32.mrb[25].mxu0  ;;  %v1333_v38 = vpop.f32.mrb[25].mxu1 }
 0x150   : > { %v3568_v39 = vpop.f32.mrb[26].mxu0  ;;  %v3570_v40 = vpop.f32.mrb[26].mxu1 }
 0x151   : > { %v1144_v41 = vpop.f32.mrb[27].mxu0  ;;  %v1336_v42 = vpop.f32.mrb[27].mxu1 }
 0x156   : > { %v3572_v43 = vpop.f32.mrb[28].mxu0  ;;  %v3574_v44 = vpop.f32.mrb[28].mxu1 }
 0x157   : > { %v1149_v45 = vpop.f32.mrb[29].mxu0  ;;  %v1341_v46 = vpop.f32.mrb[29].mxu1 }
 0x158   : > { %v3576_v47 = vpop.f32.mrb[30].mxu0  ;;  %v3578_v48 = vpop.f32.mrb[30].mxu1  ;;  %v1111_v45 = vadd.f32 %v3583_v53, %v3536_v7 }
 0x159   : > { %v1152_v49 = vpop.f32.mrb[31].mxu0  ;;  %v1344_v50 = vpop.f32.mrb[31].mxu1 }
 0x15e   : > { %v3589_v58 = vpop.f32.mrb[32].mxu0  ;;  %v2828_v61 = vpop.f32.mrb[32].mxu1 }
 0x15f   : > { %v1389_v1 = vadd.f32 %v2828_v61, %v1100_v54  ;;  %v1157_v2 = vpop.f32.mrb[33].mxu0  ;;  %v1380_v5 = vpop.f32.mrb[33].mxu1 }
 0x160   : > { %v1381_v9 = vadd.f32 %v1380_v5, %v1092_v57  ;;  %v3594_v10 = vpop.f32.mrb[34].mxu0  ;;  %v2829_v13 = vpop.f32.mrb[34].mxu1 }
 0x161   : > { %v1637_v59 = vmax.f32 %v1389_v1, 0.0  ;;  %v1392_v14 = vadd.f32 %v2829_v13, %v1103_v62  ;;  %v1160_v17 = vpop.f32.mrb[35].mxu0  ;;  %v1383_v51 = vpop.f32.mrb[35].mxu1  ;;  %v1124_v13 = vadd.f32 %v3583_v53, %v3548_v19 }
 0x162   : > { %v1635_v18 = vmax.f32 %v1381_v9, 0.0  ;;  %v1384_v21 = vadd.f32 %v1383_v51, %v1095_v6  ;;  %v1132_v6 = vadd.f32 %v3583_v53, %v3556_v27  ;;  %v1135_v51 = vadd.f32 %v3583_v53, %v3560_v31 }
 0x163   : > { %v2723_v22 = vpack.c.bf16 %v1637_v59, %v1637_v59  ;;  %v1638_v63 = vmax.f32 %v1392_v14, 0.0 }
 0x164   : > { %v2721_v25 = vpack.c.bf16 %v1635_v18, %v1635_v18  ;;  %v1636_v26 = vmax.f32 %v1384_v21, 0.0 }
 0x165   : > { %1958 = vst.msk [vmem:[%s3598_s12 + $0x8] sm:$0xf] %vm1955_vm1, %v2723_v22  ;;  %v2724_v55 = vpack.c.bf16 %v1638_v63, %v1638_v63  ;;  %v1127_v22 = vadd.f32 %v3583_v53, %v3552_v23 }
 0x166   : > { %1956 = vst.msk [vmem:[%s3598_s12] sm:$0xf] %vm1955_vm1, %v2721_v25  ;;  %v2722_v33 = vpack.c.bf16 %v1636_v26, %v1636_v26  ;;  %v3606_v34 = vpop.f32.mrb[36].mxu0  ;;  %v2832_v37 = vpop.f32.mrb[36].mxu1 }
 0x167   : > { %1959 = vst.msk [vmem:[%s3598_s12 + $0xc] sm:$0xf] %vm1955_vm1, %v2724_v55  ;;  %v1405_v38 = vadd.f32 %v2832_v37, %v1116_v29  ;;  %v1165_v41 = vpop.f32.mrb[37].mxu0  ;;  %v1396_v42 = vpop.f32.mrb[37].mxu1 }
 0x168   : > { %1957 = vst.msk [vmem:[%s3598_s12 + $0x4] sm:$0xf] %vm1955_vm1, %v2722_v33  ;;  %v1397_v3 = vadd.f32 %v1396_v42, %v1108_v30  ;;  %v3616_v46 = vpop.f32.mrb[38].mxu0  ;;  %v2833_v49 = vpop.f32.mrb[38].mxu1  ;;  %v1148_v41 = vadd.f32 %v3583_v53, %v3572_v43  ;;  %v1143_v43 = vadd.f32 %v3583_v53, %v3568_v39  ;;  %v1164_v39 = vadd.f32 %v3583_v53, %v3606_v34 }
 0x169   : > { %v1641_v50 = vmax.f32 %v1405_v38, 0.0  ;;  %v1408_v54 = vadd.f32 %v2833_v49, %v1119_v11  ;;  %v1168_v57 = vpop.f32.mrb[39].mxu0  ;;  %v1399_v15 = vpop.f32.mrb[39].mxu1  ;;  %v1159_v34 = vadd.f32 %v3583_v53, %v3594_v10 }
 0x16a   : > { %v1639_v61 = vmax.f32 %v1397_v3, 0.0  ;;  %v1400_v62 = vadd.f32 %v1399_v15, %v1111_v45  ;;  %v1140_v45 = vadd.f32 %v3583_v53, %v3564_v35 }
 0x16b   : > { %v2727_v1 = vpack.c.bf16 %v1641_v50, %v1641_v50  ;;  %v1642_v2 = vmax.f32 %v1408_v54, 0.0  ;;  %v1151_v54 = vadd.f32 %v3583_v53, %v3576_v47 }
 0x16c   : > { %v2725_v5 = vpack.c.bf16 %v1639_v61, %v1639_v61  ;;  %v1640_v7 = vmax.f32 %v1400_v62, 0.0 }
 0x16d   : > { %1962 = vst.msk [vmem:[%s3598_s12 + $0x18] sm:$0xf] %vm1955_vm1, %v2727_v1  ;;  %v2728_v9 = vpack.c.bf16 %v1642_v2, %v1642_v2 }
 0x16e   : > { %1960 = vst.msk [vmem:[%s3598_s12 + $0x10] sm:$0xf] %vm1955_vm1, %v2725_v5  ;;  %v2726_v59 = vpack.c.bf16 %v1640_v7, %v1640_v7  ;;  %v3626_v14 = vpop.f32.mrb[40].mxu0  ;;  %v2836_v17 = vpop.f32.mrb[40].mxu1 }
 0x16f   : > { %1963 = vst.msk [vmem:[%s3598_s12 + $0x1c] sm:$0xf] %vm1955_vm1, %v2728_v9  ;;  %v1421_v18 = vadd.f32 %v2836_v17, %v1132_v6  ;;  %v1173_v21 = vpop.f32.mrb[41].mxu0  ;;  %v1412_v27 = vpop.f32.mrb[41].mxu1 }
 0x170   : > { %1961 = vst.msk [vmem:[%s3598_s12 + $0x14] sm:$0xf] %vm1955_vm1, %v2726_v59  ;;  %v1413_v19 = vadd.f32 %v1412_v27, %v1124_v13  ;;  %v3636_v63 = vpop.f32.mrb[42].mxu0  ;;  %v2837_v25 = vpop.f32.mrb[42].mxu1  ;;  %v1156_v21 = vadd.f32 %v3583_v53, %v3589_v58 }
 0x171   : > { %v1645_v26 = vmax.f32 %v1421_v18, 0.0  ;;  %v1424_v29 = vadd.f32 %v2837_v25, %v1135_v51  ;;  %v1176_v55 = vpop.f32.mrb[43].mxu0  ;;  %v1415_v31 = vpop.f32.mrb[43].mxu1  ;;  %v1167_v25 = vadd.f32 %v3583_v53, %v3616_v46 }
 0x172   : > { %v1643_v30 = vmax.f32 %v1413_v19, 0.0  ;;  %v1416_v33 = vadd.f32 %v1415_v31, %v1127_v22 }
 0x173   : > { %v2731_v37 = vpack.c.bf16 %v1645_v26, %v1645_v26  ;;  %v1646_v11 = vmax.f32 %v1424_v29, 0.0 }
 0x174   : > { %v2729_v38 = vpack.c.bf16 %v1643_v30, %v1643_v30  ;;  %v1644_v23 = vmax.f32 %v1416_v33, 0.0 }
 0x175   : > { %1966 = vst.msk [vmem:[%s3598_s12 + $0x28] sm:$0xf] %vm1955_vm1, %v2731_v37  ;;  %v2732_v42 = vpack.c.bf16 %v1646_v11, %v1646_v11 }
 0x176   : > { %1964 = vst.msk [vmem:[%s3598_s12 + $0x20] sm:$0xf] %vm1955_vm1, %v2729_v38  ;;  %v2730_v3 = vpack.c.bf16 %v1644_v23, %v1644_v23  ;;  %v1179_v49 = vpop.f32.mrb[44].mxu0  ;;  %v2840_v50 = vpop.f32.mrb[44].mxu1 }
 0x177   : > { %1967 = vst.msk [vmem:[%s3598_s12 + $0x2c] sm:$0xf] %vm1955_vm1, %v2732_v42  ;;  %v1437_v57 = vadd.f32 %v2840_v50, %v1148_v41  ;;  %v1181_v15 = vpop.f32.mrb[45].mxu0  ;;  %v1428_v61 = vpop.f32.mrb[45].mxu1  ;;  %v1180_v10 = vadd.f32 %v3583_v53, %v1179_v49  ;;  %v1175_v49 = vadd.f32 %v3583_v53, %v3636_v63 }
 0x178   : > { %1965 = vst.msk [vmem:[%s3598_s12 + $0x24] sm:$0xf] %vm1955_vm1, %v2730_v3  ;;  %v1429_v35 = vadd.f32 %v1428_v61, %v1140_v45  ;;  %v1182_v62 = vpop.f32.mrb[46].mxu0  ;;  %v2841_v1 = vpop.f32.mrb[46].mxu1 }
 0x179   : > { %v1649_v2 = vmax.f32 %v1437_v57, 0.0  ;;  %v1440_v5 = vadd.f32 %v2841_v1, %v1151_v54  ;;  %v1184_v7 = vpop.f32.mrb[47].mxu0  ;;  %v1431_v6 = vpop.f32.mrb[47].mxu1  ;;  %v1172_v54 = vadd.f32 %v3583_v53, %v3626_v14 }
 0x17a   : > { %v1647_v47 = vmax.f32 %v1429_v35, 0.0  ;;  %v1432_v9 = vadd.f32 %v1431_v6, %v1143_v43  ;;  %v1183_v43 = vadd.f32 %v3583_v53, %v1182_v62 }
 0x17b   : > { %v2735_v13 = vpack.c.bf16 %v1649_v2, %v1649_v2  ;;  %v1650_v59 = vmax.f32 %v1440_v5, 0.0 }
 0x17c   : > { %v2733_v17 = vpack.c.bf16 %v1647_v47, %v1647_v47  ;;  %v1648_v51 = vmax.f32 %v1432_v9, 0.0 }
 0x17d   : > { %1970 = vst.msk [vmem:[%s3598_s12 + $0x38] sm:$0xf] %vm1955_vm1, %v2735_v13  ;;  %v2736_v18 = vpack.c.bf16 %v1650_v59, %v1650_v59 }
 0x17e   : > { %1968 = vst.msk [vmem:[%s3598_s12 + $0x30] sm:$0xf] %vm1955_vm1, %v2733_v17  ;;  %v2734_v27 = vpack.c.bf16 %v1648_v51, %v1648_v51  ;;  %v1187_v22 = vpop.f32.mrb[48].mxu0  ;;  %v2844_v19 = vpop.f32.mrb[48].mxu1 }
 0x17f   : > { %1971 = vst.msk [vmem:[%s3598_s12 + $0x3c] sm:$0xf] %vm1955_vm1, %v2736_v18  ;;  %v1453_v26 = vadd.f32 %v2844_v19, %v1164_v39  ;;  %v1189_v29 = vpop.f32.mrb[49].mxu0  ;;  %v1444_v55 = vpop.f32.mrb[49].mxu1 }
 0x180   : > { %1969 = vst.msk [vmem:[%s3598_s12 + $0x34] sm:$0xf] %vm1955_vm1, %v2734_v27  ;;  %v1445_v58 = vadd.f32 %v1444_v55, %v1156_v21  ;;  %v1190_v31 = vpop.f32.mrb[50].mxu0  ;;  %v2845_v30 = vpop.f32.mrb[50].mxu1  ;;  %v1188_v27 = vadd.f32 %v3583_v53, %v1187_v22 }
 0x181   : > { %v1653_v33 = vmax.f32 %v1453_v26, 0.0  ;;  %v1456_v37 = vadd.f32 %v2845_v30, %v1167_v25  ;;  %v1192_v11 = vpop.f32.mrb[51].mxu0  ;;  %v1447_v38 = vpop.f32.mrb[51].mxu1  ;;  %v1191_v30 = vadd.f32 %v3583_v53, %v1190_v31 }
 0x182   : > { %v1651_v46 = vmax.f32 %v1445_v58, 0.0  ;;  %v1448_v23 = vadd.f32 %v1447_v38, %v1159_v34 }
 0x183   : > { %v2739_v41 = vpack.c.bf16 %v1653_v33, %v1653_v33  ;;  %v1654_v42 = vmax.f32 %v1456_v37, 0.0 }
 0x184   : > { %v2737_v45 = vpack.c.bf16 %v1651_v46, %v1651_v46  ;;  %v1652_v3 = vmax.f32 %v1448_v23, 0.0 }
 0x185   : > { %1974 = vst.msk [vmem:[%s3598_s12 + $0x48] sm:$0xf] %vm1955_vm1, %v2739_v41  ;;  %v2740_v50 = vpack.c.bf16 %v1654_v42, %v1654_v42 }
 0x186   : > { %1972 = vst.msk [vmem:[%s3598_s12 + $0x40] sm:$0xf] %vm1955_vm1, %v2737_v45  ;;  %v2738_v57 = vpack.c.bf16 %v1652_v3, %v1652_v3  ;;  %v1195_v15 = vpop.f32.mrb[52].mxu0  ;;  %v2848_v61 = vpop.f32.mrb[52].mxu1 }
 0x187   : > { %1975 = vst.msk [vmem:[%s3598_s12 + $0x4c] sm:$0xf] %vm1955_vm1, %v2740_v50  ;;  %v1469_v35 = vadd.f32 %v2848_v61, %v1180_v10  ;;  %v1197_v1 = vpop.f32.mrb[53].mxu0  ;;  %v1460_v2 = vpop.f32.mrb[53].mxu1  ;;  %v1196_v63 = vadd.f32 %v3583_v53, %v1195_v15 }
 0x188   : > { %1973 = vst.msk [vmem:[%s3598_s12 + $0x44] sm:$0xf] %vm1955_vm1, %v2738_v57  ;;  %v1461_v5 = vadd.f32 %v1460_v2, %v1172_v54  ;;  %v1198_v14 = vpop.f32.mrb[54].mxu0  ;;  %v2849_v7 = vpop.f32.mrb[54].mxu1 }
 0x189   : > { %v1657_v6 = vmax.f32 %v1469_v35, 0.0  ;;  %v1472_v47 = vadd.f32 %v2849_v7, %v1183_v43  ;;  %v1200_v9 = vpop.f32.mrb[55].mxu0  ;;  %v1463_v13 = vpop.f32.mrb[55].mxu1  ;;  %v1199_v29 = vadd.f32 %v3583_v53, %v1198_v14 }
 0x18a   : > { %v1655_v62 = vmax.f32 %v1461_v5, 0.0  ;;  %v1464_v59 = vadd.f32 %v1463_v13, %v1175_v49 }
 0x18b   : > { %v2743_v17 = vpack.c.bf16 %v1657_v6, %v1657_v6  ;;  %v1658_v51 = vmax.f32 %v1472_v47, 0.0 }
 0x18c   : > { %v2741_v39 = vpack.c.bf16 %v1655_v62, %v1655_v62  ;;  %v1656_v18 = vmax.f32 %v1464_v59, 0.0 }
 0x18d   : > { %1978 = vst.msk [vmem:[%s3598_s12 + $0x58] sm:$0xf] %vm1955_vm1, %v2743_v17  ;;  %v2744_v21 = vpack.c.bf16 %v1658_v51, %v1658_v51 }
 0x18e   : > { %1976 = vst.msk [vmem:[%s3598_s12 + $0x50] sm:$0xf] %vm1955_vm1, %v2741_v39  ;;  %v2742_v19 = vpack.c.bf16 %v1656_v18, %v1656_v18  ;;  %v1203_v25 = vpop.f32.mrb[56].mxu0  ;;  %v2852_v26 = vpop.f32.mrb[56].mxu1 }
 0x18f   : > { %1979 = vst.msk [vmem:[%s3598_s12 + $0x5c] sm:$0xf] %vm1955_vm1, %v2744_v21  ;;  %v1485_v55 = vadd.f32 %v2852_v26, %v1196_v63  ;;  %v1205_v34 = vpop.f32.mrb[57].mxu0  ;;  %v1476_v58 = vpop.f32.mrb[57].mxu1  ;;  %v1204_v54 = vadd.f32 %v3583_v53, %v1203_v25 }
 0x190   : > { %1977 = vst.msk [vmem:[%s3598_s12 + $0x54] sm:$0xf] %vm1955_vm1, %v2742_v19  ;;  %v1477_v33 = vadd.f32 %v1476_v58, %v1188_v27  ;;  %v1206_v22 = vpop.f32.mrb[58].mxu0  ;;  %v2853_v37 = vpop.f32.mrb[58].mxu1 }
 0x191   : > { %v1661_v11 = vmax.f32 %v1485_v55, 0.0  ;;  %v1488_v38 = vadd.f32 %v2853_v37, %v1199_v29  ;;  %v1208_v46 = vpop.f32.mrb[59].mxu0  ;;  %v1479_v23 = vpop.f32.mrb[59].mxu1  ;;  %v1207_v2 = vadd.f32 %v3583_v53, %v1206_v22 }
 0x192   : > { %v1659_v41 = vmax.f32 %v1477_v33, 0.0  ;;  %v1480_v42 = vadd.f32 %v1479_v23, %v1191_v30 }
 0x193   : > { %v2747_v45 = vpack.c.bf16 %v1661_v11, %v1661_v11  ;;  %v1662_v3 = vmax.f32 %v1488_v38, 0.0 }
 0x194   : > { %v2745_v10 = vpack.c.bf16 %v1659_v41, %v1659_v41  ;;  %v1660_v50 = vmax.f32 %v1480_v42, 0.0 }
 0x195   : > { %1982 = vst.msk [vmem:[%s3598_s12 + $0x68] sm:$0xf] %vm1955_vm1, %v2747_v45  ;;  %v2748_v31 = vpack.c.bf16 %v1662_v3, %v1662_v3 }
 0x196   : > { %1980 = vst.msk [vmem:[%s3598_s12 + $0x60] sm:$0xf] %vm1955_vm1, %v2745_v10  ;;  %v2746_v57 = vpack.c.bf16 %v1660_v50, %v1660_v50  ;;  %v1211_v15 = vpop.f32.mrb[60].mxu0  ;;  %v2856_v61 = vpop.f32.mrb[60].mxu1 }
 0x197   : > { %1983 = vst.msk [vmem:[%s3598_s12 + $0x6c] sm:$0xf] %vm1955_vm1, %v2748_v31  ;;  %v1212_v43 = vadd.f32 %v3583_v53, %v1211_v15  ;;  %v1213_v35 = vpop.f32.mrb[61].mxu0  ;;  %v1492_v1 = vpop.f32.mrb[61].mxu1 }
 0x198   : > { %1981 = vst.msk [vmem:[%s3598_s12 + $0x64] sm:$0xf] %vm1955_vm1, %v2746_v57  ;;  %v1493_v49 = vadd.f32 %v1492_v1, %v1204_v54  ;;  %v1214_v5 = vpop.f32.mrb[62].mxu0  ;;  %v2857_v14 = vpop.f32.mrb[62].mxu1 }
 0x199   : > { %v1501_v7 = vadd.f32 %v2856_v61, %v1212_v43  ;;  %v1215_v6 = vadd.f32 %v3583_v53, %v1214_v5  ;;  %v1216_v47 = vpop.f32.mrb[63].mxu0  ;;  %v1495_v9 = vpop.f32.mrb[63].mxu1 }
 0x19a   : > { %v1663_v13 = vmax.f32 %v1493_v49, 0.0  ;;  %v1496_v62 = vadd.f32 %v1495_v9, %v1207_v2 }
 0x19b   : > { %v1665_v59 = vmax.f32 %v1501_v7, 0.0  ;;  %v1504_v17 = vadd.f32 %v2857_v14, %v1215_v6 }
 0x19c   : > { %v2749_v51 = vpack.c.bf16 %v1663_v13, %v1663_v13  ;;  %v1664_v39 = vmax.f32 %v1496_v62, 0.0 }
 0x19d   : > { %v2751_v18 = vpack.c.bf16 %v1665_v59, %v1665_v59  ;;  %v1666_v63 = vmax.f32 %v1504_v17, 0.0 }
 0x19e   : > { %1984 = vst.msk [vmem:[%s3598_s12 + $0x70] sm:$0xf] %vm1955_vm1, %v2749_v51  ;;  %v2750_v21 = vpack.c.bf16 %v1664_v39, %v1664_v39  ;;  %v1219_v27 = vpop.f32.mrb[64].mxu0  ;;  %v2860_v19 = vpop.f32.mrb[64].mxu1 }
 0x19f   : > { %1986 = vst.msk [vmem:[%s3598_s12 + $0x78] sm:$0xf] %vm1955_vm1, %v2751_v18  ;;  %v2752_v25 = vpack.c.bf16 %v1666_v63, %v1666_v63  ;;  %v1220_v26 = vadd.f32 %v3583_v53, %v1219_v27  ;;  %v1221_v29 = vpop.f32.mrb[65].mxu0  ;;  %v1508_v55 = vpop.f32.mrb[65].mxu1 }
 0x1a0   : > { %1985 = vst.msk [vmem:[%s3598_s12 + $0x74] sm:$0xf] %vm1955_vm1, %v2750_v21  ;;  %v1222_v34 = vpop.f32.mrb[66].mxu0  ;;  %v2861_v58 = vpop.f32.mrb[66].mxu1 }
 0x1a1   : > { %1987 = vst.msk [vmem:[%s3598_s12 + $0x7c] sm:$0xf] %vm1955_vm1, %v2752_v25  ;;  %v1509_v30 = vadd.f32 %v1508_v55, %v1220_v26  ;;  %v1223_v33 = vadd.f32 %v3583_v53, %v1222_v34  ;;  %v1224_v22 = vpop.f32.mrb[67].mxu0  ;;  %v1511_v37 = vpop.f32.mrb[67].mxu1 }
 0x1a3   : > { %v1667_v11 = vmax.f32 %v1509_v30, 0.0  ;;  %v1512_v38 = vadd.f32 %v1511_v37, %v1223_v33 }
 0x1a5   : > { %v2753_v46 = vpack.c.bf16 %v1667_v11, %v1667_v11  ;;  %v1668_v23 = vmax.f32 %v1512_v38, 0.0 }
 0x1a6   : > { %v1227_v41 = vpop.f32.mrb[68].mxu0  ;;  %v2864_v42 = vpop.f32.mrb[68].mxu1 }
 0x1a7   : > { %1988 = vst.msk [vmem:[%s3598_s12 + $0x80] sm:$0xf] %vm1955_vm1, %v2753_v46  ;;  %v2754_v45 = vpack.c.bf16 %v1668_v23, %v1668_v23  ;;  %v1228_v3 = vadd.f32 %v3583_v53, %v1227_v41  ;;  %v1229_v10 = vpop.f32.mrb[69].mxu0  ;;  %v1524_v50 = vpop.f32.mrb[69].mxu1  ;;  %v1292_v23 = vadd.f32 %v3583_v53, %v3528_v60  ;;  %v1287_v60 = vadd.f32 %v3583_v53, %v3526_v56 }
 0x1a8   : > { %v1230_v31 = vpop.f32.mrb[70].mxu0  ;;  %v2865_v54 = vpop.f32.mrb[70].mxu1 }
 0x1a9   : > { %1989 = vst.msk [vmem:[%s3598_s12 + $0x84] sm:$0xf] %vm1955_vm1, %v2754_v45  ;;  %v1517_v57 = vadd.f32 %v2860_v19, %v1228_v3  ;;  %v1231_v15 = vadd.f32 %v3583_v53, %v1230_v31  ;;  %v1232_v61 = vpop.f32.mrb[71].mxu0  ;;  %v1527_v43 = vpop.f32.mrb[71].mxu1  ;;  %v1284_v3 = vadd.f32 %v3583_v53, %v3522_v52 }
 0x1ab   : > { %v1669_v35 = vmax.f32 %v1517_v57, 0.0  ;;  %v1520_v1 = vadd.f32 %v2861_v58, %v1231_v15 }
 0x1ad   : > { %v2755_v2 = vpack.c.bf16 %v1669_v35, %v1669_v35  ;;  %v1670_v49 = vmax.f32 %v1520_v1, 0.0 }
 0x1ae   : > { %v1235_v5 = vpop.f32.mrb[72].mxu0  ;;  %v3724_v14 = vpop.f32.mrb[72].mxu1 }
 0x1af   : > { %1990 = vst.msk [vmem:[%s3598_s12 + $0x88] sm:$0xf] %vm1955_vm1, %v2755_v2  ;;  %v2756_v7 = vpack.c.bf16 %v1670_v49, %v1670_v49  ;;  %v1236_v6 = vadd.f32 %v3583_v53, %v1235_v5  ;;  %v1237_v47 = vpop.f32.mrb[73].mxu0  ;;  %v1540_v9 = vpop.f32.mrb[73].mxu1 }
 0x1b0   : > { %v1238_v13 = vpop.f32.mrb[74].mxu0  ;;  %v3729_v62 = vpop.f32.mrb[74].mxu1 }
 0x1b1   : > { %1991 = vst.msk [vmem:[%s3598_s12 + $0x8c] sm:$0xf] %vm1955_vm1, %v2756_v7  ;;  %v1525_v59 = vadd.f32 %v1524_v50, %v1236_v6  ;;  %v1239_v17 = vadd.f32 %v3583_v53, %v1238_v13  ;;  %v1240_v51 = vpop.f32.mrb[75].mxu0  ;;  %v1543_v39 = vpop.f32.mrb[75].mxu1 }
 0x1b3   : > { %v1671_v18 = vmax.f32 %v1525_v59, 0.0  ;;  %v1528_v63 = vadd.f32 %v1527_v43, %v1239_v17 }
 0x1b5   : > { %v2757_v21 = vpack.c.bf16 %v1671_v18, %v1671_v18  ;;  %v1672_v27 = vmax.f32 %v1528_v63, 0.0 }
 0x1b6   : > { %v1243_v19 = vpop.f32.mrb[76].mxu0  ;;  %v3734_v25 = vpop.f32.mrb[76].mxu1 }
 0x1b7   : > { %1992 = vst.msk [vmem:[%s3598_s12 + $0x90] sm:$0xf] %vm1955_vm1, %v2757_v21  ;;  %v2758_v26 = vpack.c.bf16 %v1672_v27, %v1672_v27  ;;  %v1244_v29 = vadd.f32 %v3583_v53, %v1243_v19  ;;  %v1245_v55 = vpop.f32.mrb[77].mxu0  ;;  %v3739_v34 = vpop.f32.mrb[77].mxu1  ;;  %v1300_v19 = vadd.f32 %v3583_v53, %v3534_v4  ;;  %v1303_v4 = vadd.f32 %v3583_v53, %v3538_v8 }
 0x1b8   : > { %v1246_v58 = vpop.f32.mrb[78].mxu0  ;;  %v3741_v30 = vpop.f32.mrb[78].mxu1  ;;  %v1311_v55 = vadd.f32 %v3583_v53, %v3546_v16 }
 0x1b9   : > { %1993 = vst.msk [vmem:[%s3598_s12 + $0x94] sm:$0xf] %vm1955_vm1, %v2758_v26  ;;  %v1533_v33 = vadd.f32 %v2864_v42, %v1244_v29  ;;  %v1247_v22 = vadd.f32 %v3583_v53, %v1246_v58  ;;  %v1248_v37 = vpop.f32.mrb[79].mxu0  ;;  %v3746_v11 = vpop.f32.mrb[79].mxu1  ;;  %v1295_v42 = vadd.f32 %v3583_v53, %v3530_v0 }
 0x1bb   : > { %v1673_v38 = vmax.f32 %v1533_v33, 0.0  ;;  %v1536_v46 = vadd.f32 %v2865_v54, %v1247_v22 }
 0x1bd   : > { %v2759_v41 = vpack.c.bf16 %v1673_v38, %v1673_v38  ;;  %v1674_v45 = vmax.f32 %v1536_v46, 0.0 }
 0x1be   : > { %v1251_v10 = vpop.f32.mrb[80].mxu0  ;;  %v2876_v50 = vpop.f32.mrb[80].mxu1 }
 0x1bf   : > { %1994 = vst.msk [vmem:[%s3598_s12 + $0x98] sm:$0xf] %vm1955_vm1, %v2759_v41  ;;  %v2760_v31 = vpack.c.bf16 %v1674_v45, %v1674_v45  ;;  %v1252_v57 = vadd.f32 %v3583_v53, %v1251_v10  ;;  %v1581_v54 = vadd.f32 %v2876_v50, %v1292_v23  ;;  %v1253_v15 = vpop.f32.mrb[81].mxu0  ;;  %v1572_v61 = vpop.f32.mrb[81].mxu1 }
 0x1c0   : > { %v1573_v43 = vadd.f32 %v1572_v61, %v1284_v3  ;;  %v1254_v35 = vpop.f32.mrb[82].mxu0  ;;  %v2877_v1 = vpop.f32.mrb[82].mxu1 }
 0x1c1   : > { %1995 = vst.msk [vmem:[%s3598_s12 + $0x9c] sm:$0xf] %vm1955_vm1, %v2760_v31  ;;  %v1541_v52 = vadd.f32 %v1540_v9, %v1252_v57  ;;  %v1685_v2 = vmax.f32 %v1581_v54, 0.0  ;;  %v1255_v0 = vadd.f32 %v3583_v53, %v1254_v35  ;;  %v1584_v49 = vadd.f32 %v2877_v1, %v1295_v42  ;;  %v1256_v5 = vpop.f32.mrb[83].mxu0  ;;  %v1575_v7 = vpop.f32.mrb[83].mxu1 }
 0x1c2   : > { %v1683_v6 = vmax.f32 %v1573_v43, 0.0  ;;  %v1576_v47 = vadd.f32 %v1575_v7, %v1287_v60  ;;  %v1308_v9 = vadd.f32 %v3583_v53, %v3542_v12 }
 0x1c3   : > { %v1675_v13 = vmax.f32 %v1541_v52, 0.0  ;;  %v2771_v59 = vpack.c.bf16 %v1685_v2, %v1685_v2  ;;  %v1544_v56 = vadd.f32 %v1543_v39, %v1255_v0  ;;  %v1686_v17 = vmax.f32 %v1584_v49, 0.0 }
 0x1c4   : > { %v2769_v51 = vpack.c.bf16 %v1683_v6, %v1683_v6  ;;  %v1684_v18 = vmax.f32 %v1576_v47, 0.0  ;;  %v1316_v52 = vadd.f32 %v3583_v53, %v3550_v20  ;;  %v1327_v49 = vadd.f32 %v3583_v53, %v3562_v32 }
 0x1c5   : > { %v2761_v63 = vpack.c.bf16 %v1675_v13, %v1675_v13  ;;  %2006 = vst.msk [vmem:[%s3598_s12 + $0xc8] sm:$0xf] %vm1955_vm1, %v2771_v59  ;;  %v1676_v21 = vmax.f32 %v1544_v56, 0.0  ;;  %v2772_v27 = vpack.c.bf16 %v1686_v17, %v1686_v17  ;;  %v1319_v20 = vadd.f32 %v3583_v53, %v3554_v24 }
 0x1c6   : > { %2004 = vst.msk [vmem:[%s3598_s12 + $0xc0] sm:$0xf] %vm1955_vm1, %v2769_v51  ;;  %v2770_v26 = vpack.c.bf16 %v1684_v18, %v1684_v18  ;;  %v1259_v39 = vpop.f32.mrb[84].mxu0  ;;  %v2880_v29 = vpop.f32.mrb[84].mxu1 }
 0x1c7   : > { %1996 = vst.msk [vmem:[%s3598_s12 + $0xa0] sm:$0xf] %vm1955_vm1, %v2761_v63  ;;  %v2762_v12 = vpack.c.bf16 %v1676_v21, %v1676_v21  ;;  %2007 = vst.msk [vmem:[%s3598_s12 + $0xcc] sm:$0xf] %vm1955_vm1, %v2772_v27  ;;  %v1260_v58 = vadd.f32 %v3583_v53, %v1259_v39  ;;  %v1597_v33 = vadd.f32 %v2880_v29, %v1308_v9  ;;  %v1261_v22 = vpop.f32.mrb[85].mxu0  ;;  %v1588_v37 = vpop.f32.mrb[85].mxu1 }
 0x1c8   : > { %2005 = vst.msk [vmem:[%s3598_s12 + $0xc4] sm:$0xf] %vm1955_vm1, %v2770_v26  ;;  %v1589_v38 = vadd.f32 %v1588_v37, %v1300_v19  ;;  %v1262_v46 = vpop.f32.mrb[86].mxu0  ;;  %v2881_v23 = vpop.f32.mrb[86].mxu1  ;;  %v1332_v22 = vadd.f32 %v3583_v53, %v3566_v36  ;;  %v1335_v36 = vadd.f32 %v3583_v53, %v3570_v40 }
 0x1c9   : > { %1997 = vst.msk [vmem:[%s3598_s12 + $0xa4] sm:$0xf] %vm1955_vm1, %v2762_v12  ;;  %v1549_v16 = vadd.f32 %v3724_v14, %v1260_v58  ;;  %v1689_v41 = vmax.f32 %v1597_v33, 0.0  ;;  %v1263_v45 = vadd.f32 %v3583_v53, %v1262_v46  ;;  %v1600_v3 = vadd.f32 %v2881_v23, %v1311_v55  ;;  %v1264_v10 = vpop.f32.mrb[87].mxu0  ;;  %v1591_v50 = vpop.f32.mrb[87].mxu1 }
 0x1ca   : > { %v1687_v42 = vmax.f32 %v1589_v38, 0.0  ;;  %v1592_v31 = vadd.f32 %v1591_v50, %v1303_v4  ;;  %v1324_v14 = vadd.f32 %v3583_v53, %v3558_v28  ;;  %v1343_v38 = vadd.f32 %v3583_v53, %v3578_v48 }
 0x1cb   : > { %v1677_v8 = vmax.f32 %v1549_v16, 0.0  ;;  %v2775_v57 = vpack.c.bf16 %v1689_v41, %v1689_v41  ;;  %v1552_v54 = vadd.f32 %v3729_v62, %v1263_v45  ;;  %v1690_v15 = vmax.f32 %v1600_v3, 0.0 }
 0x1cc   : > { %v2773_v61 = vpack.c.bf16 %v1687_v42, %v1687_v42  ;;  %v1688_v60 = vmax.f32 %v1592_v31, 0.0 }
 0x1cd   : > { %v2763_v43 = vpack.c.bf16 %v1677_v8, %v1677_v8  ;;  %2010 = vst.msk [vmem:[%s3598_s12 + $0xd8] sm:$0xf] %vm1955_vm1, %v2775_v57  ;;  %v1678_v35 = vmax.f32 %v1552_v54, 0.0  ;;  %v2776_v1 = vpack.c.bf16 %v1690_v15, %v1690_v15 }
 0x1ce   : > { %2008 = vst.msk [vmem:[%s3598_s12 + $0xd0] sm:$0xf] %vm1955_vm1, %v2773_v61  ;;  %v2774_v2 = vpack.c.bf16 %v1688_v60, %v1688_v60  ;;  %v1267_v62 = vpop.f32.mrb[88].mxu0  ;;  %v2884_v0 = vpop.f32.mrb[88].mxu1 }
 0x1cf   : > { %1998 = vst.msk [vmem:[%s3598_s12 + $0xa8] sm:$0xf] %vm1955_vm1, %v2763_v43  ;;  %v2764_v28 = vpack.c.bf16 %v1678_v35, %v1678_v35  ;;  %2011 = vst.msk [vmem:[%s3598_s12 + $0xdc] sm:$0xf] %vm1955_vm1, %v2776_v1  ;;  %v1268_v5 = vadd.f32 %v3583_v53, %v1267_v62  ;;  %v1613_v7 = vadd.f32 %v2884_v0, %v1324_v14  ;;  %v1269_v6 = vpop.f32.mrb[89].mxu0  ;;  %v1604_v47 = vpop.f32.mrb[89].mxu1 }
 0x1d0   : > { %2009 = vst.msk [vmem:[%s3598_s12 + $0xd4] sm:$0xf] %vm1955_vm1, %v2774_v2  ;;  %v1605_v13 = vadd.f32 %v1604_v47, %v1316_v52  ;;  %v1270_v59 = vpop.f32.mrb[90].mxu0  ;;  %v2885_v56 = vpop.f32.mrb[90].mxu1 }
 0x1d1   : > { %1999 = vst.msk [vmem:[%s3598_s12 + $0xac] sm:$0xf] %vm1955_vm1, %v2764_v28  ;;  %v1557_v32 = vadd.f32 %v3739_v34, %v1268_v5  ;;  %v1693_v17 = vmax.f32 %v1613_v7, 0.0  ;;  %v1271_v51 = vadd.f32 %v3583_v53, %v1270_v59  ;;  %v1616_v18 = vadd.f32 %v2885_v56, %v1327_v49  ;;  %v1272_v9 = vpop.f32.mrb[91].mxu0  ;;  %v1607_v63 = vpop.f32.mrb[91].mxu1 }
 0x1d2   : > { %v1691_v21 = vmax.f32 %v1605_v13, 0.0  ;;  %v1608_v27 = vadd.f32 %v1607_v63, %v1319_v20  ;;  %v1340_v34 = vadd.f32 %v3583_v53, %v3574_v44 }
 0x1d3   : > { %v1679_v24 = vmax.f32 %v1557_v32, 0.0  ;;  %v2779_v19 = vpack.c.bf16 %v1693_v17, %v1693_v17  ;;  %v1560_v26 = vadd.f32 %v3746_v11, %v1271_v51  ;;  %v1694_v39 = vmax.f32 %v1616_v18, 0.0 }
 0x1d4   : > { %v2777_v29 = vpack.c.bf16 %v1691_v21, %v1691_v21  ;;  %v1692_v55 = vmax.f32 %v1608_v27, 0.0 }
 0x1d5   : > { %v2765_v12 = vpack.c.bf16 %v1679_v24, %v1679_v24  ;;  %2014 = vst.msk [vmem:[%s3598_s12 + $0xe8] sm:$0xf] %vm1955_vm1, %v2779_v19  ;;  %v1680_v58 = vmax.f32 %v1560_v26, 0.0  ;;  %v2780_v33 = vpack.c.bf16 %v1694_v39, %v1694_v39 }
 0x1d6   : > { %2012 = vst.msk [vmem:[%s3598_s12 + $0xe0] sm:$0xf] %vm1955_vm1, %v2777_v29  ;;  %v2778_v37 = vpack.c.bf16 %v1692_v55, %v1692_v55  ;;  %v1275_v11 = vpop.f32.mrb[92].mxu0  ;;  %v2888_v4 = vpop.f32.mrb[92].mxu1 }
 0x1d7   : > { %2000 = vst.msk [vmem:[%s3598_s12 + $0xb0] sm:$0xf] %vm1955_vm1, %v2765_v12  ;;  %v2766_v44 = vpack.c.bf16 %v1680_v58, %v1680_v58  ;;  %2015 = vst.msk [vmem:[%s3598_s12 + $0xec] sm:$0xf] %vm1955_vm1, %v2780_v33  ;;  %v1276_v46 = vadd.f32 %v3583_v53, %v1275_v11  ;;  %v1629_v23 = vadd.f32 %v2888_v4, %v1340_v34  ;;  %v1277_v16 = vpop.f32.mrb[93].mxu0  ;;  %v1620_v41 = vpop.f32.mrb[93].mxu1 }
 0x1d8   : > { %2013 = vst.msk [vmem:[%s3598_s12 + $0xe4] sm:$0xf] %vm1955_vm1, %v2778_v37  ;;  %v1621_v45 = vadd.f32 %v1620_v41, %v1332_v22  ;;  %v1278_v3 = vpop.f32.mrb[94].mxu0  ;;  %v2889_v10 = vpop.f32.mrb[94].mxu1 }
 0x1d9   : > { %2001 = vst.msk [vmem:[%s3598_s12 + $0xb4] sm:$0xf] %vm1955_vm1, %v2766_v44  ;;  %v1565_v48 = vadd.f32 %v3734_v25, %v1276_v46  ;;  %v1697_v50 = vmax.f32 %v1629_v23, 0.0  ;;  %v1279_v42 = vadd.f32 %v3583_v53, %v1278_v3  ;;  %v1632_v31 = vadd.f32 %v2889_v10, %v1343_v38  ;;  %v1280_v8 = vpop.f32.mrb[95].mxu0  ;;  %v1623_v57 = vpop.f32.mrb[95].mxu1 }
 0x1da   : > { %v1695_v54 = vmax.f32 %v1621_v45, 0.0  ;;  %v1624_v40 = vadd.f32 %v1623_v57, %v1335_v36 }
 0x1db   : > { %v1681_v15 = vmax.f32 %v1565_v48, 0.0  ;;  %v2783_v61 = vpack.c.bf16 %v1697_v50, %v1697_v50  ;;  %v1568_v60 = vadd.f32 %v3741_v30, %v1279_v42  ;;  %v1698_v14 = vmax.f32 %v1632_v31, 0.0  ;;  %2026 = sbr.rel (!%p3292_p4) target bundleno = 573 (0x23d), region = 36 }
 0x1dc   : > { %v2781_v43 = vpack.c.bf16 %v1695_v54, %v1695_v54  ;;  %v1696_v25 = vmax.f32 %v1624_v40, 0.0 }
 0x1dd   : > { %v2767_v35 = vpack.c.bf16 %v1681_v15, %v1681_v15  ;;  %2018 = vst.msk [vmem:[%s3598_s12 + $0xf8] sm:$0xf] %vm1955_vm1, %v2783_v61  ;;  %v1682_v53 = vmax.f32 %v1568_v60, 0.0  ;;  %v2784_v1 = vpack.c.bf16 %v1698_v14, %v1698_v14 }
 0x1de   : > { %2016 = vst.msk [vmem:[%s3598_s12 + $0xf0] sm:$0xf] %vm1955_vm1, %v2781_v43  ;;  %v2782_v52 = vpack.c.bf16 %v1696_v25, %v1696_v25 }
 0x1df   : > { %2002 = vst.msk [vmem:[%s3598_s12 + $0xb8] sm:$0xf] %vm1955_vm1, %v2767_v35  ;;  %v2768_v2 = vpack.c.bf16 %v1682_v53, %v1682_v53  ;;  %2019 = vst.msk [vmem:[%s3598_s12 + $0xfc] sm:$0xf] %vm1955_vm1, %v2784_v1 }
 0x1e0   : > { %2017 = vst.msk [vmem:[%s3598_s12 + $0xf4] sm:$0xf] %vm1955_vm1, %v2782_v52 }
 0x1e1   : > { %2003 = vst.msk [vmem:[%s3598_s12 + $0xbc] sm:$0xf] %vm1955_vm1, %v2768_v2 }
 0x1e2   : > { %s4057_s27 = smov (!%p2029_p8, %s2028_s27), 64 }
 0x1e3   : > { %s2706_s5 = sshll.u32 %s4057_s27, 6 }
 0x1e4   : > { %p2709_p9 = scmp.eq.s32.totalorder %s2706_s5, 0 }
 0x1e5   : > { %s3859_s6 = sshrl.u32 (!%p2709_p9), %s4057_s27, 6 }
 0x1e6   : > { %2037 = sbr.rel (%p2709_p9) target bundleno = 573 (0x23d), region = 40  ;;  %p2710_p10 = scmp.le.s32.totalorder (!%p2709_p9), %s3859_s6, 0 }
 0x1ed   : > { %2442 = sbr.rel (%p2710_p10) target bundleno = 552 (0x228), region = 112  ;;  %s4050_s15 = smov (!%p2710_p10), %s3853_s4 }
 0x1ee   : > { %s4051_s20 = smov (!%p2710_p10), %s3598_s12  ;;  %s3868_s23 = smov (!%p2710_p10), 0  }
 0x1ef   : > { %s3870_s7 = smov (!%p2710_p10), 0  }
 0x1f4 LB: >> { %v2053_v30 = vld [vmem:[%s3220_s20] sm:$0xf]  ;;  %v2055_v62 = vld [vmem:[%s3220_s20 + $0x4] sm:$0xf]  ;;  %v2057_v0 = vld [vmem:[%s3220_s20 + $0x8] sm:$0xf]  ;;  %s3228_s7 = sphi %s3870_s7, %s2047_s7   ;;  %s3224_s23 = sphi %s3868_s23, %s4052_s23   ;;  %s3220_s20 = sphi %s4051_s20, %s2186_s20   ;;  %s3216_s15 = sphi %s4050_s15, %s2187_s15  }
 0x1f5   : >> { %2054 = vst [vmem:[%s3216_s15] sm:$0xf] %v2053_v30  ;;  %2056 = vst [vmem:[%s3216_s15 + $0x4] sm:$0xf] %v2055_v62  ;;  %v2059_v49 = vld [vmem:[%s3220_s20 + $0xc] sm:$0xf]  ;;  %s2181_s8 = sadd.s32 1, %s3224_s23 }
 0x1f6   : >> { %2058 = vst [vmem:[%s3216_s15 + $0x8] sm:$0xf] %v2057_v0  ;;  %v2061_v28 = vld [vmem:[%s3220_s20 + $0x10] sm:$0xf]  ;;  %v2063_v5 = vld [vmem:[%s3220_s20 + $0x14] sm:$0xf]  ;;  %p2182_p11 = scmp.ge.s32.totalorder %s2181_s8, %s3859_s6 }
 0x1f7   : >> { %2060 = vst [vmem:[%s3216_s15 + $0xc] sm:$0xf] %v2059_v49  ;;  %2062 = vst [vmem:[%s3216_s15 + $0x10] sm:$0xf] %v2061_v28  ;;  %v2065_v7 = vld [vmem:[%s3220_s20 + $0x18] sm:$0xf] }
 0x1f8   : >> { %2064 = vst [vmem:[%s3216_s15 + $0x14] sm:$0xf] %v2063_v5  ;;  %v2067_v6 = vld [vmem:[%s3220_s20 + $0x1c] sm:$0xf]  ;;  %v2069_v47 = vld [vmem:[%s3220_s20 + $0x20] sm:$0xf] }
 0x1f9   : >> { %2066 = vst [vmem:[%s3216_s15 + $0x18] sm:$0xf] %v2065_v7  ;;  %2068 = vst [vmem:[%s3216_s15 + $0x1c] sm:$0xf] %v2067_v6  ;;  %v2071_v20 = vld [vmem:[%s3220_s20 + $0x24] sm:$0xf] }
 0x1fa   : >> { %2070 = vst [vmem:[%s3216_s15 + $0x20] sm:$0xf] %v2069_v47  ;;  %v2073_v13 = vld [vmem:[%s3220_s20 + $0x28] sm:$0xf]  ;;  %v2075_v59 = vld [vmem:[%s3220_s20 + $0x2c] sm:$0xf] }
 0x1fb   : >> { %2072 = vst [vmem:[%s3216_s15 + $0x24] sm:$0xf] %v2071_v20  ;;  %2074 = vst [vmem:[%s3216_s15 + $0x28] sm:$0xf] %v2073_v13  ;;  %v2077_v56 = vld [vmem:[%s3220_s20 + $0x30] sm:$0xf] }
 0x1fc   : >> { %2076 = vst [vmem:[%s3216_s15 + $0x2c] sm:$0xf] %v2075_v59  ;;  %v2079_v32 = vld [vmem:[%s3220_s20 + $0x34] sm:$0xf]  ;;  %v2081_v17 = vld [vmem:[%s3220_s20 + $0x38] sm:$0xf] }
 0x1fd   : >> { %2078 = vst [vmem:[%s3216_s15 + $0x30] sm:$0xf] %v2077_v56  ;;  %2080 = vst [vmem:[%s3216_s15 + $0x34] sm:$0xf] %v2079_v32  ;;  %v2083_v51 = vld [vmem:[%s3220_s20 + $0x3c] sm:$0xf] }
 0x1fe   : >> { %2082 = vst [vmem:[%s3216_s15 + $0x38] sm:$0xf] %v2081_v17  ;;  %v2085_v18 = vld [vmem:[%s3220_s20 + $0x40] sm:$0xf]  ;;  %v2087_v9 = vld [vmem:[%s3220_s20 + $0x44] sm:$0xf] }
 0x1ff   : >> { %2084 = vst [vmem:[%s3216_s15 + $0x3c] sm:$0xf] %v2083_v51  ;;  %2086 = vst [vmem:[%s3216_s15 + $0x40] sm:$0xf] %v2085_v18  ;;  %v2089_v63 = vld [vmem:[%s3220_s20 + $0x48] sm:$0xf] }
 0x200   : >> { %2088 = vst [vmem:[%s3216_s15 + $0x44] sm:$0xf] %v2087_v9  ;;  %v2091_v21 = vld [vmem:[%s3220_s20 + $0x4c] sm:$0xf]  ;;  %v2093_v27 = vld [vmem:[%s3220_s20 + $0x50] sm:$0xf] }
 0x201   : >> { %2090 = vst [vmem:[%s3216_s15 + $0x48] sm:$0xf] %v2089_v63  ;;  %2092 = vst [vmem:[%s3216_s15 + $0x4c] sm:$0xf] %v2091_v21  ;;  %v2095_v24 = vld [vmem:[%s3220_s20 + $0x54] sm:$0xf] }
 0x202   : >> { %2094 = vst [vmem:[%s3216_s15 + $0x50] sm:$0xf] %v2093_v27  ;;  %v2097_v19 = vld [vmem:[%s3220_s20 + $0x58] sm:$0xf]  ;;  %v2099_v26 = vld [vmem:[%s3220_s20 + $0x5c] sm:$0xf] }
 0x203   : >> { %2096 = vst [vmem:[%s3216_s15 + $0x54] sm:$0xf] %v2095_v24  ;;  %2098 = vst [vmem:[%s3216_s15 + $0x58] sm:$0xf] %v2097_v19  ;;  %v2101_v39 = vld [vmem:[%s3220_s20 + $0x60] sm:$0xf] }
 0x204   : >> { %2100 = vst [vmem:[%s3216_s15 + $0x5c] sm:$0xf] %v2099_v26  ;;  %v2103_v29 = vld [vmem:[%s3220_s20 + $0x64] sm:$0xf]  ;;  %v2105_v55 = vld [vmem:[%s3220_s20 + $0x68] sm:$0xf] }
 0x205   : >> { %2102 = vst [vmem:[%s3216_s15 + $0x60] sm:$0xf] %v2101_v39  ;;  %2104 = vst [vmem:[%s3216_s15 + $0x64] sm:$0xf] %v2103_v29  ;;  %v2107_v34 = vld [vmem:[%s3220_s20 + $0x6c] sm:$0xf] }
 0x206   : >> { %2106 = vst [vmem:[%s3216_s15 + $0x68] sm:$0xf] %v2105_v55  ;;  %v2109_v12 = vld [vmem:[%s3220_s20 + $0x70] sm:$0xf]  ;;  %v2111_v58 = vld [vmem:[%s3220_s20 + $0x74] sm:$0xf] }
 0x207   : >> { %2108 = vst [vmem:[%s3216_s15 + $0x6c] sm:$0xf] %v2107_v34  ;;  %2110 = vst [vmem:[%s3216_s15 + $0x70] sm:$0xf] %v2109_v12  ;;  %v2113_v33 = vld [vmem:[%s3220_s20 + $0x78] sm:$0xf] }
 0x208   : >> { %2112 = vst [vmem:[%s3216_s15 + $0x74] sm:$0xf] %v2111_v58  ;;  %v2115_v22 = vld [vmem:[%s3220_s20 + $0x7c] sm:$0xf]  ;;  %v2117_v37 = vld [vmem:[%s3220_s20 + $0x80] sm:$0xf] }
 0x209   : >> { %2114 = vst [vmem:[%s3216_s15 + $0x78] sm:$0xf] %v2113_v33  ;;  %2116 = vst [vmem:[%s3216_s15 + $0x7c] sm:$0xf] %v2115_v22  ;;  %v2119_v11 = vld [vmem:[%s3220_s20 + $0x84] sm:$0xf] }
 0x20a   : >> { %2118 = vst [vmem:[%s3216_s15 + $0x80] sm:$0xf] %v2117_v37  ;;  %v2121_v4 = vld [vmem:[%s3220_s20 + $0x88] sm:$0xf]  ;;  %v2123_v38 = vld [vmem:[%s3220_s20 + $0x8c] sm:$0xf] }
 0x20b   : >> { %2120 = vst [vmem:[%s3216_s15 + $0x84] sm:$0xf] %v2119_v11  ;;  %2122 = vst [vmem:[%s3216_s15 + $0x88] sm:$0xf] %v2121_v4  ;;  %v2125_v44 = vld [vmem:[%s3220_s20 + $0x90] sm:$0xf] }
 0x20c   : >> { %2124 = vst [vmem:[%s3216_s15 + $0x8c] sm:$0xf] %v2123_v38  ;;  %v2127_v46 = vld [vmem:[%s3220_s20 + $0x94] sm:$0xf]  ;;  %v2129_v23 = vld [vmem:[%s3220_s20 + $0x98] sm:$0xf] }
 0x20d   : >> { %2126 = vst [vmem:[%s3216_s15 + $0x90] sm:$0xf] %v2125_v44  ;;  %2128 = vst [vmem:[%s3216_s15 + $0x94] sm:$0xf] %v2127_v46  ;;  %v2131_v16 = vld [vmem:[%s3220_s20 + $0x9c] sm:$0xf] }
 0x20e   : >> { %2130 = vst [vmem:[%s3216_s15 + $0x98] sm:$0xf] %v2129_v23  ;;  %v2133_v41 = vld [vmem:[%s3220_s20 + $0xa0] sm:$0xf]  ;;  %v2135_v36 = vld [vmem:[%s3220_s20 + $0xa4] sm:$0xf] }
 0x20f   : >> { %2132 = vst [vmem:[%s3216_s15 + $0x9c] sm:$0xf] %v2131_v16  ;;  %2134 = vst [vmem:[%s3216_s15 + $0xa0] sm:$0xf] %v2133_v41  ;;  %v2137_v45 = vld [vmem:[%s3220_s20 + $0xa8] sm:$0xf] }
 0x210   : >> { %2136 = vst [vmem:[%s3216_s15 + $0xa4] sm:$0xf] %v2135_v36  ;;  %v2139_v3 = vld [vmem:[%s3220_s20 + $0xac] sm:$0xf]  ;;  %v2141_v10 = vld [vmem:[%s3220_s20 + $0xb0] sm:$0xf] }
 0x211   : >> { %2138 = vst [vmem:[%s3216_s15 + $0xa8] sm:$0xf] %v2137_v45  ;;  %2140 = vst [vmem:[%s3216_s15 + $0xac] sm:$0xf] %v2139_v3  ;;  %v2143_v48 = vld [vmem:[%s3220_s20 + $0xb4] sm:$0xf] }
 0x212   : >> { %2142 = vst [vmem:[%s3216_s15 + $0xb0] sm:$0xf] %v2141_v10  ;;  %v2145_v50 = vld [vmem:[%s3220_s20 + $0xb8] sm:$0xf]  ;;  %v2147_v42 = vld [vmem:[%s3220_s20 + $0xbc] sm:$0xf] }
 0x213   : >> { %2144 = vst [vmem:[%s3216_s15 + $0xb4] sm:$0xf] %v2143_v48  ;;  %2146 = vst [vmem:[%s3216_s15 + $0xb8] sm:$0xf] %v2145_v50  ;;  %v2149_v31 = vld [vmem:[%s3220_s20 + $0xc0] sm:$0xf] }
 0x214   : >> { %2148 = vst [vmem:[%s3216_s15 + $0xbc] sm:$0xf] %v2147_v42  ;;  %v2151_v8 = vld [vmem:[%s3220_s20 + $0xc4] sm:$0xf]  ;;  %v2153_v57 = vld [vmem:[%s3220_s20 + $0xc8] sm:$0xf] }
 0x215   : >> { %2150 = vst [vmem:[%s3216_s15 + $0xc0] sm:$0xf] %v2149_v31  ;;  %2152 = vst [vmem:[%s3216_s15 + $0xc4] sm:$0xf] %v2151_v8  ;;  %v2155_v54 = vld [vmem:[%s3220_s20 + $0xcc] sm:$0xf] }
 0x216   : >> { %2154 = vst [vmem:[%s3216_s15 + $0xc8] sm:$0xf] %v2153_v57  ;;  %v2157_v40 = vld [vmem:[%s3220_s20 + $0xd0] sm:$0xf]  ;;  %v2159_v15 = vld [vmem:[%s3220_s20 + $0xd4] sm:$0xf] }
 0x217   : >> { %2156 = vst [vmem:[%s3216_s15 + $0xcc] sm:$0xf] %v2155_v54  ;;  %2158 = vst [vmem:[%s3216_s15 + $0xd0] sm:$0xf] %v2157_v40  ;;  %v2161_v61 = vld [vmem:[%s3220_s20 + $0xd8] sm:$0xf] }
 0x218   : >> { %2160 = vst [vmem:[%s3216_s15 + $0xd4] sm:$0xf] %v2159_v15  ;;  %v2163_v60 = vld [vmem:[%s3220_s20 + $0xdc] sm:$0xf]  ;;  %v2165_v14 = vld [vmem:[%s3220_s20 + $0xe0] sm:$0xf] }
 0x219   : >> { %2162 = vst [vmem:[%s3216_s15 + $0xd8] sm:$0xf] %v2161_v61  ;;  %2164 = vst [vmem:[%s3216_s15 + $0xdc] sm:$0xf] %v2163_v60  ;;  %v2167_v43 = vld [vmem:[%s3220_s20 + $0xe4] sm:$0xf] }
 0x21a   : >> { %2166 = vst [vmem:[%s3216_s15 + $0xe0] sm:$0xf] %v2165_v14  ;;  %v2169_v25 = vld [vmem:[%s3220_s20 + $0xe8] sm:$0xf]  ;;  %v2171_v35 = vld [vmem:[%s3220_s20 + $0xec] sm:$0xf] }
 0x21b   : >> { %2168 = vst [vmem:[%s3216_s15 + $0xe4] sm:$0xf] %v2167_v43  ;;  %2170 = vst [vmem:[%s3216_s15 + $0xe8] sm:$0xf] %v2169_v25  ;;  %v2173_v53 = vld [vmem:[%s3220_s20 + $0xf0] sm:$0xf] }
 0x21c   : >> { %2172 = vst [vmem:[%s3216_s15 + $0xec] sm:$0xf] %v2171_v35  ;;  %v2175_v1 = vld [vmem:[%s3220_s20 + $0xf4] sm:$0xf]  ;;  %v2177_v52 = vld [vmem:[%s3220_s20 + $0xf8] sm:$0xf] }
 0x21d   : >> { %2174 = vst [vmem:[%s3216_s15 + $0xf0] sm:$0xf] %v2173_v53  ;;  %2176 = vst [vmem:[%s3216_s15 + $0xf4] sm:$0xf] %v2175_v1  ;;  %v2179_v2 = vld [vmem:[%s3220_s20 + $0xfc] sm:$0xf] }
 0x21e   : >> { %2178 = vst [vmem:[%s3216_s15 + $0xf8] sm:$0xf] %v2177_v52  ;;  %2180 = vst [vmem:[%s3216_s15 + $0xfc] sm:$0xf] %v2179_v2  ;;  %s4059_s8 = smov (%p2182_p11, %s2181_s8), 0  ;;  %s2047_s7 = sadd.s32 1, %s3228_s7  }
 0x21f   : >> { %s2711_s10 = sshll.u32 %s4059_s8, 8  ;;  %p2046_p12 = scmp.ge.s32.totalorder %s2047_s7, %s3859_s6 }
 0x220   : >> { %s2186_s20 = scalar_lea.vmem %s3598_s12, %s2711_s10 [#allocation2]   ;;  %s2187_s15 = scalar_lea.vmem %s3853_s4, %s2711_s10  }
 0x221   : >> { %s4052_s23 = smov %s4059_s8  ;;  %2049 = sbr.rel (!%p2046_p12) target bundleno = 500 (0x1f4), region = 118 }
 0x228 PF: > { %s4027_s11 = sand.u32 63, %s4057_s27   ;;  %s2786_s14 = sshll.u32 %s3859_s6, 8 }
 0x229   : > { %s2192_s17 = scalar_lea.vmem %s3598_s12, %s2786_s14 [#allocation2]   ;;  %s2194_s18 = scalar_lea.vmem %s3853_s4, %s2786_s14  }
 0x22a   : > { %p2716_p13 = scmp.le.s32.totalorder %s4027_s11, 0 }
 0x22b   : > { %s3230_s21 = smov (!%p2716_p13), %s2194_s18   ;;  %s3234_s22 = smov (!%p2716_p13), %s2192_s17  }
 0x22c   : > { %2456 = sbr.rel (%p2716_p13) target bundleno = 573 (0x23d), region = 123  ;;  %s3238_s9 = smov (!%p2716_p13), 0  }
 0x22d   : > { %s3242_s24 = smov (!%p2716_p13), 0  }
 0x233 LB: >> { %v2204_v30 = vld [vmem:[%s3236_s22] sm:$0xf]  ;;  %s2206_s25 = sadd.s32 1, %s3240_s9  ;;  %s2198_s24 = sadd.s32 1, %s3244_s24   ;;  %s3244_s24 = sphi %s3242_s24, %s2198_s24   ;;  %s3240_s9 = sphi %s3238_s9, %s3239_s9   ;;  %s3236_s22 = sphi %s3234_s22, %s2211_s22   ;;  %s3232_s21 = sphi %s3230_s21, %s2212_s21  }
 0x234   : >> { %2205 = vst [vmem:[%s3232_s21] sm:$0xf] %v2204_v30  ;;  %p2207_p0 = scmp.ge.s32.totalorder %s2206_s25, %s4027_s11  ;;  %p2197_p1 = scmp.ge.s32.totalorder %s2198_s24, %s4027_s11 }
 0x236   : >> { %s4061_s25 = smov (%p2207_p0, %s2206_s25), 0  ;;  %2200 = sbr.rel (!%p2197_p1) target bundleno = 563 (0x233), region = 129 }
 0x237   : >> { %s2717_s26 = sshll.u32 %s4061_s25, 2  ;;  %s3239_s9 = smov %s4061_s25  }
 0x238   : >> { %s2211_s22 = scalar_lea.vmem %s2192_s17, %s2717_s26 [#allocation2]   ;;  %s2212_s21 = scalar_lea.vmem %s2194_s18, %s2717_s26  }
 0x23d PF: > { %p10_p2 = scmp.ge.s32.totalorder %s3282_s16, 5   ;;  %s4053_s12 = smov %s3208_s13 }
 0x23e   : > { %s4054_s13 = smov %s3290_s19  ;;  %s4055_s14 = smov %s3282_s16 }
 0x23f   :  { %12 = sbr.rel (!%p10_p2) target bundleno = 2 (0x2), region = 140 }

// kernel: sym_image_critic_forward.7
= control target key start
LH: loop header
LB: loop body
LE: loop exit
PB: predicated region body
PF: predicated region fallthrough
CT: control target
= control target key end

     0   :  { %vm795_vm0 = vcmask 523264   ;;  %vm1355_vm1 = vcmask 261120   ;;  %vm1386_vm2 = vcmask 254976   ;;  %s2640_s1 = inlined_call_operand.vmem [shape: bf16[576,32], index: 1, kind: input, shape index: {}]   ;;  %s2641_s0 = inlined_call_operand.vmem [shape: bf16[242,576], index: 0, kind: input, shape index: {}]   ;;  %s2642_s2 = inlined_call_operand.vmem [shape: f32[1,32], index: 2, kind: input, shape index: {}]   ;;  %s2643_s3 = inlined_call_operand.vmem [shape: f32[242,32], index: 3, kind: output, shape index: {}]  }
   0x1   :  { %v1825_v0 = vld [vmem:[%s2640_s1 + $0x40] sm:$0xff]   ;;  %v1827_v2 = vld [vmem:[%s2640_s1 + $0x48] sm:$0xff]   ;;  %v1829_v4 = vld [vmem:[%s2640_s1 + $0x50] sm:$0xff]  }
   0x2   :  { %v1826_v1 = vld [vmem:[%s2640_s1] sm:$0xff]   ;;  %1525 = vmatprep.subr.bf16.mxu0 %v1825_v0  ;;  %1809 = vmatprep.subr.bf16.mxu1 %v1825_v0  ;;  %v1828_v3 = vld [vmem:[%s2640_s1 + $0x8] sm:$0xff]   ;;  %v1830_v5 = vld [vmem:[%s2640_s1 + $0x10] sm:$0xff]  }
   0x3   :  { %1526 = vmatpush3.bf16.msra.mxu0 %v1826_v1  ;;  %1817 = vmatpush3.bf16.msra.mxu1 %v1826_v1  ;;  %v1831_v6 = vld [vmem:[%s2640_s1 + $0x58] sm:$0xff]   ;;  %v1833_v8 = vld [vmem:[%s2640_s1 + $0x60] sm:$0xff]   ;;  %v1835_v10 = vld [vmem:[%s2640_s1 + $0x68] sm:$0xff]  }
   0x4   :  { %1527 = vmatprep.subr.bf16.mxu0 %v1827_v2  ;;  %1810 = vmatprep.subr.bf16.mxu1 %v1827_v2  ;;  %v1832_v7 = vld [vmem:[%s2640_s1 + $0x18] sm:$0xff]   ;;  %v1834_v9 = vld [vmem:[%s2640_s1 + $0x20] sm:$0xff]   ;;  %v1836_v13 = vld [vmem:[%s2640_s1 + $0x28] sm:$0xff]  }
   0x5   :  { %v1843_v11 = vld [vmem:[%s2641_s0 + $0x4] ss:$20 sps:$4 sm:$0xff]   ;;  %v1837_v14 = vld [vmem:[%s2640_s1 + $0x70] sm:$0xff]   ;;  %v1850_v23 = vld [vmem:[%s2640_s1 + $0xc8] sm:$0xff]  }
   0x6   :  { %v1846_v12 = vld [vmem:[%s2641_s0 + $0x1e4] ss:$20 sps:$4 sm:$0xff]   ;;  %876 = vmatprep.mubr.bf16.mxu0 %v1843_v11  ;;  %v1838_v15 = vld [vmem:[%s2640_s1 + $0x30] sm:$0xff]   ;;  %v1852_v24 = vld [vmem:[%s2641_s0 + $0x2c] ss:$20 sps:$4 sm:$0xff]  }
   0x7   :  { %1528 = vmatpush3.bf16.msra.mxu0 %v1828_v3  ;;  %1818 = vmatpush3.bf16.msra.mxu1 %v1828_v3  ;;  %v1839_v16 = vld [vmem:[%s2640_s1 + $0x78] sm:$0xff]   ;;  %v1847_v18 = vld [vmem:[%s2640_s1 + $0xc0] sm:$0xff]   ;;  %v1851_v26 = vld [vmem:[%s2640_s1 + $0x88] sm:$0xff]  }
   0x8   :  { %1529 = vmatprep.subr.bf16.mxu0 %v1829_v4  ;;  %1811 = vmatprep.subr.bf16.mxu1 %v1829_v4  ;;  %v1840_v17 = vld [vmem:[%s2640_s1 + $0x38] sm:$0xff]   ;;  %v1849_v19 = vld [vmem:[%s2640_s1 + $0x100] sm:$0xff]   ;;  %v1858_v28 = vld [vmem:[%s2640_s1 + $0xd0] sm:$0xff]  }
   0x9   :  { %972 = vmatprep.mubr.bf16.mxu1 %v1846_v12  ;;  %v1841_v20 = vld [vmem:[%s2641_s0] ss:$20 sps:$4 sm:$0xff]   ;;  %v1856_v27 = vld [vmem:[%s2641_s0 + $0x28] ss:$20 sps:$4 sm:$0xff]   ;;  %v1866_v36 = vld [vmem:[%s2641_s0 + $0x50] ss:$20 sps:$4 sm:$0xff]  }
   0xa   :  { %v1844_v21 = vld [vmem:[%s2641_s0 + $0x1e0] ss:$20 sps:$4 sm:$0xff]   ;;  %v1857_v29 = vld [vmem:[%s2641_s0 + $0x208] ss:$20 sps:$4 sm:$0xff]   ;;  %v1867_v38 = vld [vmem:[%s2641_s0 + $0x230] ss:$20 sps:$4 sm:$0xff]  }
   0xb   :  { %1530 = vmatpush3.bf16.msra.mxu0 %v1830_v5  ;;  %1819 = vmatpush3.bf16.msra.mxu1 %v1830_v5  ;;  %v1848_v22 = vld [vmem:[%s2640_s1 + $0x80] sm:$0xff]   ;;  %v1859_v30 = vld [vmem:[%s2640_s1 + $0x90] sm:$0xff]   ;;  %v1860_v31 = vld [vmem:[%s2640_s1 + $0xd8] sm:$0xff]  }
   0xc   :  { %1531 = vmatprep.subr.bf16.mxu0 %v1831_v6  ;;  %1812 = vmatprep.subr.bf16.mxu1 %v1831_v6  ;;  %v1854_v25 = vld [vmem:[%s2641_s0 + $0x20c] ss:$20 sps:$4 sm:$0xff]   ;;  %v1862_v32 = vld [vmem:[%s2641_s0 + $0x54] ss:$20 sps:$4 sm:$0xff]   ;;  %v1861_v35 = vld [vmem:[%s2640_s1 + $0x98] sm:$0xff]  }
   0xd   :  { %v1864_v33 = vld [vmem:[%s2641_s0 + $0x234] ss:$20 sps:$4 sm:$0xff]   ;;  %v1868_v37 = vld [vmem:[%s2640_s1 + $0xe0] sm:$0xff]   ;;  %v105_v39 = vld [vmem:[%s2641_s0 + $0x258] sm:$0x11] }
   0xe   :  { %v1879_v34 = vld [vmem:[%s2640_s1 + $0x108] sm:$0xff]   ;;  %v1869_v40 = vld [vmem:[%s2640_s1 + $0xa0] sm:$0xff]   ;;  %v1872_v41 = vld [vmem:[%s2641_s0 + $0x7c] ss:$20 sps:$4 sm:$0xff]   ;;  %v1469_v43 = vcombine.high %v105_v39, %v105_v39  ;;  %v1468_v48 = vcombine.low %v105_v39, %v105_v39 }
   0xf   :  { %1532 = vmatpush3.bf16.msra.mxu0 %v1832_v7  ;;  %1820 = vmatpush3.bf16.msra.mxu1 %v1832_v7  ;;  %v1870_v42 = vld [vmem:[%s2640_s1 + $0xe8] sm:$0xff]   ;;  %v1877_v45 = vld [vmem:[%s2640_s1 + $0xf0] sm:$0xff]   ;;  %v1880_v50 = vld [vmem:[%s2640_s1 + $0xf8] sm:$0xff]  }
  0x10   :  { %1533 = vmatprep.subr.bf16.mxu0 %v1833_v8  ;;  %1813 = vmatprep.subr.bf16.mxu1 %v1833_v8  ;;  %v1871_v44 = vld [vmem:[%s2640_s1 + $0xa8] sm:$0xff]   ;;  %v1900_v46 = vld [vmem:[%s2640_s1 + $0x110] sm:$0xff]   ;;  %v1882_v51 = vld [vmem:[%s2641_s0 + $0xa4] ss:$20 sps:$4 sm:$0xff]  }
  0x11   :  { %v1875_v47 = vld [vmem:[%s2641_s0 + $0x78] ss:$20 sps:$4 sm:$0xff]   ;;  %v1878_v49 = vld [vmem:[%s2640_s1 + $0xb0] sm:$0xff]   ;;  %v1884_v54 = vld [vmem:[%s2641_s0 + $0x8] ss:$20 sps:$4 sm:$0xff]  }
  0x12   :  { %v1886_v52 = vld [vmem:[%s2641_s0 + $0xc] ss:$20 sps:$4 sm:$0xff]   ;;  %v1881_v53 = vld [vmem:[%s2640_s1 + $0xb8] sm:$0xff]   ;;  %v1890_v58 = vld [vmem:[%s2641_s0 + $0x34] ss:$20 sps:$4 sm:$0xff]  }
  0x13   :  { %1534 = vmatpush3.bf16.msra.mxu0 %v1834_v9  ;;  %1821 = vmatpush3.bf16.msra.mxu1 %v1834_v9  ;;  %v1919_v55 = vld [vmem:[%s2640_s1 + $0x118] sm:$0xff]   ;;  %v1887_v56 = vld [vmem:[%s2641_s0 + $0xa0] ss:$20 sps:$4 sm:$0xff]   ;;  %v1893_v60 = vld [vmem:[%s2641_s0 + $0x30] ss:$20 sps:$4 sm:$0xff]  }
  0x14   :  { %1535 = vmatprep.subr.bf16.mxu0 %v1835_v10  ;;  %1814 = vmatprep.subr.bf16.mxu1 %v1835_v10  ;;  %v1888_v57 = vld [vmem:[%s2641_s0 + $0xcc] ss:$20 sps:$4 sm:$0xff]   ;;  %v1892_v59 = vld [vmem:[%s2641_s0 + $0xc8] ss:$20 sps:$4 sm:$0xff]   ;;  %v1898_v63 = vld [vmem:[%s2641_s0 + $0xf0] ss:$20 sps:$4 sm:$0xff]  }
  0x15   :  { %v1894_v61 = vld [vmem:[%s2641_s0 + $0xf4] ss:$20 sps:$4 sm:$0xff]   ;;  %v1896_v62 = vld [vmem:[%s2641_s0 + $0x5c] ss:$20 sps:$4 sm:$0xff]   ;;  %v1899_v0 = vld [vmem:[%s2641_s0 + $0x58] ss:$20 sps:$4 sm:$0xff]  }
  0x16   :  { %v1901_v1 = vld [vmem:[%s2641_s0 + $0x11c] ss:$20 sps:$4 sm:$0xff]   ;;  %v1903_v2 = vld [vmem:[%s2641_s0 + $0x84] ss:$20 sps:$4 sm:$0xff]   ;;  %v1906_v4 = vld [vmem:[%s2641_s0 + $0x80] ss:$20 sps:$4 sm:$0xff]  }
  0x17   :  { %1536 = vmatpush3.bf16.msra.mxu0 %v1836_v13  ;;  %1822 = vmatpush3.bf16.msra.mxu1 %v1836_v13  ;;  %v1905_v3 = vld [vmem:[%s2641_s0 + $0x118] ss:$20 sps:$4 sm:$0xff]   ;;  %v1911_v7 = vld [vmem:[%s2641_s0 + $0x140] ss:$20 sps:$4 sm:$0xff]   ;;  %v1912_v8 = vld [vmem:[%s2641_s0 + $0xa8] ss:$20 sps:$4 sm:$0xff]  }
  0x18   :  { %1537 = vmatprep.subr.bf16.mxu0 %v1837_v14  ;;  %1815 = vmatprep.subr.bf16.mxu1 %v1837_v14  ;;  %v1907_v5 = vld [vmem:[%s2641_s0 + $0x144] ss:$20 sps:$4 sm:$0xff]   ;;  %v1909_v6 = vld [vmem:[%s2641_s0 + $0xac] ss:$20 sps:$4 sm:$0xff]   ;;  %v1915_v10 = vld [vmem:[%s2641_s0 + $0xd4] ss:$20 sps:$4 sm:$0xff]  }
  0x19   :  { %v1913_v9 = vld [vmem:[%s2641_s0 + $0x16c] ss:$20 sps:$4 sm:$0xff]   ;;  %v1917_v11 = vld [vmem:[%s2641_s0 + $0x168] ss:$20 sps:$4 sm:$0xff]   ;;  %v1918_v12 = vld [vmem:[%s2641_s0 + $0xd0] ss:$20 sps:$4 sm:$0xff]  }
  0x1a   :  { %v1920_v13 = vld [vmem:[%s2641_s0 + $0x194] ss:$20 sps:$4 sm:$0xff]   ;;  %v1922_v14 = vld [vmem:[%s2641_s0 + $0xfc] ss:$20 sps:$4 sm:$0xff]  }
  0x1b   :  { %1538 = vmatpush3.bf16.msra.mxu0 %v1838_v15  ;;  %1823 = vmatpush3.bf16.msra.mxu1 %v1838_v15  ;;  %v1924_v15 = vld [vmem:[%s2641_s0 + $0x190] ss:$20 sps:$4 sm:$0xff]   ;;  %v1955_v39 = vld [vmem:[%s2641_s0 + $0x1e8] ss:$20 sps:$4 sm:$0xff]  }
  0x1c   :  { %1539 = vmatprep.subr.bf16.mxu0 %v1839_v16  ;;  %1816 = vmatprep.subr.bf16.mxu1 %v1839_v16  ;;  %v1925_v16 = vld [vmem:[%s2641_s0 + $0xf8] ss:$20 sps:$4 sm:$0xff]  }
  0x1f   :  { %1540 = vmatpush3.bf16.msra.mxu0 %v1840_v17  ;;  %1824 = vmatpush3.bf16.msra.mxu1 %v1840_v17  ;;  %v1926_v17 = vld [vmem:[%s2641_s0 + $0x1bc] ss:$20 sps:$4 sm:$0xff]  }
  0x20   :  { %1637 = vmatprep.subr.bf16.mxu1 %v1847_v18  ;;  %1769 = vmatprep.subr.bf16.mxu0 %v1849_v19  ;;  %v1928_v18 = vld [vmem:[%s2641_s0 + $0x124] ss:$20 sps:$4 sm:$0xff]  }
  0x22   :  { %877 = vmatmul.mubr.bf16.vlgmr.msra.gmra.mrb[0].mxu0 %v1841_v20  ;;  %973 = vmatmul.mubr.bf16.vlgmr.msra.gmra.mrb[0].mxu1 %v1844_v21  ;;  %v1931_v20 = vld [vmem:[%s2641_s0 + $0x120] ss:$20 sps:$4 sm:$0xff]  }
  0x23   :  { %1638 = vmatpush3.bf16.msra.mxu1 %v1848_v22  ;;  %1770 = vmatpush3.bf16.msra.mxu0 %v1849_v19  ;;  %v1930_v19 = vld [vmem:[%s2641_s0 + $0x1b8] ss:$20 sps:$4 sm:$0xff]   ;;  %v1934_v22 = vld [vmem:[%s2641_s0 + $0x10] ss:$20 sps:$4 sm:$0xff]  }
  0x24   :  { %1639 = vmatprep.subr.bf16.mxu1 %v1850_v23  ;;  %884 = vmatprep.mubr.bf16.mxu0 %v1852_v24  ;;  %v1932_v21 = vld [vmem:[%s2641_s0 + $0x14c] ss:$20 sps:$4 sm:$0xff]   ;;  %v1935_v23 = vld [vmem:[%s2641_s0 + $0x148] ss:$20 sps:$4 sm:$0xff]  }
  0x25   :  { %980 = vmatprep.mubr.bf16.mxu1 %v1854_v25  ;;  %1771 = vmatprep.subr.bf16.mxu0 %v1879_v34  ;;  %v1936_v24 = vld [vmem:[%s2641_s0 + $0x38] ss:$20 sps:$4 sm:$0xff]   ;;  %v1937_v25 = vld [vmem:[%s2641_s0 + $0x174] ss:$20 sps:$4 sm:$0xff]  }
  0x27   :  { %1640 = vmatpush3.bf16.msra.mxu1 %v1851_v26  ;;  %1772 = vmatpush3.bf16.msra.mxu0 %v1879_v34  ;;  %v1939_v26 = vld [vmem:[%s2641_s0 + $0x60] ss:$20 sps:$4 sm:$0xff]  }
  0x28   :  { %1641 = vmatprep.subr.bf16.mxu1 %v1858_v28  ;;  %1773 = vmatprep.subr.bf16.mxu0 %v1900_v46  ;;  %v1941_v28 = vld [vmem:[%s2641_s0 + $0x88] ss:$20 sps:$4 sm:$0xff]   ;;  %v1949_v34 = vld [vmem:[%s2641_s0 + $0x100] ss:$20 sps:$4 sm:$0xff]  }
  0x2a   :  { %885 = vmatmul.mubr.bf16.gmra.mrb[4].mxu0 %v1856_v27  ;;  %981 = vmatmul.mubr.bf16.gmra.mrb[4].mxu1 %v1857_v29  ;;  %v1940_v27 = vld [vmem:[%s2641_s0 + $0x170] ss:$20 sps:$4 sm:$0xff]  }
  0x2b   :  { %1642 = vmatpush3.bf16.msra.mxu1 %v1859_v30  ;;  %892 = vmatprep.mubr.bf16.mxu0 %v1862_v32  ;;  %v1942_v29 = vld [vmem:[%s2641_s0 + $0x19c] ss:$20 sps:$4 sm:$0xff]   ;;  %v1946_v32 = vld [vmem:[%s2641_s0 + $0xd8] ss:$20 sps:$4 sm:$0xff]  }
  0x2c   :  { %1643 = vmatprep.subr.bf16.mxu1 %v1860_v31  ;;  %988 = vmatprep.mubr.bf16.mxu1 %v1864_v33  ;;  %v1944_v30 = vld [vmem:[%s2641_s0 + $0xb0] ss:$20 sps:$4 sm:$0xff]   ;;  %v1945_v31 = vld [vmem:[%s2641_s0 + $0x198] ss:$20 sps:$4 sm:$0xff]  }
  0x2d   :  { %1774 = vmatpush3.bf16.msra.mxu0 %v1900_v46  ;;  %v1947_v33 = vld [vmem:[%s2641_s0 + $0x1c4] ss:$20 sps:$4 sm:$0xff]  }
  0x2e   :  { %1775 = vmatprep.subr.bf16.mxu0 %v1919_v55  ;;  %v1964_v46 = vld [vmem:[%s2641_s0 + $0x1f0] ss:$20 sps:$4 sm:$0xff]  }
  0x2f   :  { %1644 = vmatpush3.bf16.msra.mxu1 %v1861_v35  ;;  %v1950_v35 = vld [vmem:[%s2641_s0 + $0x1c0] ss:$20 sps:$4 sm:$0xff]  }
  0x30   :  { %1645 = vmatprep.subr.bf16.mxu1 %v1868_v37  ;;  %v1952_v37 = vld [vmem:[%s2641_s0 + $0x1ec] ss:$20 sps:$4 sm:$0xff]  }
  0x31   :  { %1776 = vmatpush3.bf16.msra.mxu0 %v1919_v55 }
  0x32   :  { %893 = vmatmul.mubr.bf16.gmra.mrb[8].mxu0 %v1866_v36  ;;  %989 = vmatmul.mubr.bf16.gmra.mrb[8].mxu1 %v1867_v38  ;;  %v1951_v36 = vld [vmem:[%s2641_s0 + $0x128] ss:$20 sps:$4 sm:$0xff]   ;;  %v1954_v38 = vld [vmem:[%s2641_s0 + $0x150] ss:$20 sps:$4 sm:$0xff]  }
  0x33   :  { %1646 = vmatpush3.bf16.msra.mxu1 %v1869_v40  ;;  %900 = vmatprep.mubr.bf16.mxu0 %v1872_v41  ;;  %v1956_v40 = vld [vmem:[%s2641_s0 + $0x178] ss:$20 sps:$4 sm:$0xff]   ;;  %v1957_v41 = vld [vmem:[%s2641_s0 + $0x214] ss:$20 sps:$4 sm:$0xff]  }
  0x34   :  { %1647 = vmatprep.subr.bf16.mxu1 %v1870_v42  ;;  %996 = vmatprep.mubr.bf16.mxu1 %v1469_v43  ;;  %v1959_v42 = vld [vmem:[%s2641_s0 + $0x1a0] ss:$20 sps:$4 sm:$0xff]   ;;  %v1960_v43 = vld [vmem:[%s2641_s0 + $0x210] ss:$20 sps:$4 sm:$0xff]  }
  0x37   :  { %1648 = vmatpush3.bf16.msra.mxu1 %v1871_v44  ;;  %v1961_v44 = vld [vmem:[%s2641_s0 + $0x1c8] ss:$20 sps:$4 sm:$0xff]  }
  0x38   :  { %1649 = vmatprep.subr.bf16.mxu1 %v1877_v45  ;;  %v1962_v45 = vld [vmem:[%s2641_s0 + $0x23c] ss:$20 sps:$4 sm:$0xff]  }
  0x3a   :  { %901 = vmatmul.mubr.bf16.gmra.mrb[12].mxu0 %v1875_v47  ;;  %997 = vmatmul.mubr.bf16.gmra.mrb[12].mxu1 %v1468_v48  ;;  %v106_v47 = vld [vmem:[%s2641_s0 + $0x260] sm:$0x11]  ;;  %v1965_v48 = vld [vmem:[%s2641_s0 + $0x238] ss:$20 sps:$4 sm:$0xff]  }
  0x3b   :  { %1650 = vmatpush3.bf16.msra.mxu1 %v1878_v49  ;;  %908 = vmatprep.mubr.bf16.mxu0 %v1882_v51  ;;  %v1966_v49 = vld [vmem:[%s2641_s0 + $0x218] ss:$20 sps:$4 sm:$0xff]   ;;  %v1968_v51 = vld [vmem:[%s2641_s0 + $0x240] ss:$20 sps:$4 sm:$0xff]  }
  0x3c   :  { %1651 = vmatprep.subr.bf16.mxu1 %v1880_v50  ;;  %1036 = vmatprep.mubr.bf16.mxu1 %v1886_v52  ;;  %v1471_v50 = vcombine.high %v106_v47, %v106_v47  ;;  %v1470_v52 = vcombine.low %v106_v47, %v106_v47 }
  0x3f   :  { %1652 = vmatpush3.bf16.msra.mxu1 %v1881_v53  ;;  %v1970_v53 = vld [vmem:[%s2641_s0 + $0x268] ss:$0 sps:$4 sm:$0x11]  }
  0x42   :  { %909 = vmatmul.mubr.bf16.gmra.mrb[16].mxu0 %v1887_v56  ;;  %1037 = vmatmul.mubr.bf16.vlgmr.msra.gmra.mrb[16].mxu1 %v1884_v54 }
  0x43   :  { %916 = vmatprep.mubr.bf16.mxu0 %v1888_v57  ;;  %1044 = vmatprep.mubr.bf16.mxu1 %v1890_v58 }
  0x4a   :  { %917 = vmatmul.mubr.bf16.gmra.mrb[20].mxu0 %v1892_v59  ;;  %1045 = vmatmul.mubr.bf16.gmra.mrb[20].mxu1 %v1893_v60 }
  0x4b   :  { %924 = vmatprep.mubr.bf16.mxu0 %v1894_v61  ;;  %1052 = vmatprep.mubr.bf16.mxu1 %v1896_v62 }
  0x52   :  { %925 = vmatmul.mubr.bf16.gmra.mrb[24].mxu0 %v1898_v63  ;;  %1053 = vmatmul.mubr.bf16.gmra.mrb[24].mxu1 %v1899_v0 }
  0x53   :  { %932 = vmatprep.mubr.bf16.mxu0 %v1901_v1  ;;  %1060 = vmatprep.mubr.bf16.mxu1 %v1903_v2 }
  0x5a   :  { %933 = vmatmul.mubr.bf16.gmra.mrb[28].mxu0 %v1905_v3  ;;  %1061 = vmatmul.mubr.bf16.gmra.mrb[28].mxu1 %v1906_v4 }
  0x5b   :  { %940 = vmatprep.mubr.bf16.mxu0 %v1907_v5  ;;  %1068 = vmatprep.mubr.bf16.mxu1 %v1909_v6 }
  0x62   :  { %941 = vmatmul.mubr.bf16.gmra.mrb[32].mxu0 %v1911_v7  ;;  %1069 = vmatmul.mubr.bf16.gmra.mrb[32].mxu1 %v1912_v8 }
  0x63   :  { %948 = vmatprep.mubr.bf16.mxu0 %v1913_v9  ;;  %1076 = vmatprep.mubr.bf16.mxu1 %v1915_v10 }
  0x6a   :  { %949 = vmatmul.mubr.bf16.gmra.mrb[36].mxu0 %v1917_v11  ;;  %1077 = vmatmul.mubr.bf16.gmra.mrb[36].mxu1 %v1918_v12 }
  0x6b   :  { %956 = vmatprep.mubr.bf16.mxu0 %v1920_v13  ;;  %1084 = vmatprep.mubr.bf16.mxu1 %v1922_v14 }
  0x72   :  { %957 = vmatmul.mubr.bf16.gmra.mrb[40].mxu0 %v1924_v15  ;;  %1085 = vmatmul.mubr.bf16.gmra.mrb[40].mxu1 %v1925_v16 }
  0x73   :  { %964 = vmatprep.mubr.bf16.mxu0 %v1926_v17  ;;  %1092 = vmatprep.mubr.bf16.mxu1 %v1928_v18 }
  0x7a   :  { %965 = vmatmul.mubr.bf16.gmra.mrb[44].mxu0 %v1930_v19  ;;  %1093 = vmatmul.mubr.bf16.gmra.mrb[44].mxu1 %v1931_v20 }
  0x7b   :  { %1100 = vmatprep.mubr.bf16.mxu1 %v1932_v21  ;;  %1777 = vmatprep.mubr.msk.bf16.mxu0 %vm795_vm0, %v1934_v22 }
  0x82   :  { %1101 = vmatmul.mubr.bf16.gmra.mrb[48].mxu1 %v1935_v23  ;;  %1778 = vmatmul.mubr.msk.bf16.vlgmr.msra.gmra.mrb[48].mxu0 %vm795_vm0, %v1936_v24 }
  0x83   :  { %1108 = vmatprep.mubr.bf16.mxu1 %v1937_v25  ;;  %1781 = vmatprep.mubr.msk.bf16.mxu0 %vm795_vm0, %v1939_v26 }
  0x8a   :  { %1109 = vmatmul.mubr.bf16.gmra.mrb[52].mxu1 %v1940_v27  ;;  %1782 = vmatmul.mubr.msk.bf16.gmra.mrb[52].mxu0 %vm795_vm0, %v1941_v28 }
  0x8b   :  { %1116 = vmatprep.mubr.bf16.mxu1 %v1942_v29  ;;  %1785 = vmatprep.mubr.msk.bf16.mxu0 %vm795_vm0, %v1944_v30 }
  0x92   :  { %1117 = vmatmul.mubr.bf16.gmra.mrb[56].mxu1 %v1945_v31  ;;  %1786 = vmatmul.mubr.msk.bf16.gmra.mrb[56].mxu0 %vm795_vm0, %v1946_v32 }
  0x93   :  { %1124 = vmatprep.mubr.bf16.mxu1 %v1947_v33  ;;  %1789 = vmatprep.mubr.msk.bf16.mxu0 %vm795_vm0, %v1949_v34 }
  0x9a   :  { %1125 = vmatmul.mubr.bf16.gmra.mrb[60].mxu1 %v1950_v35  ;;  %1790 = vmatmul.mubr.msk.bf16.gmra.mrb[60].mxu0 %vm795_vm0, %v1951_v36 }
  0x9b   :  { %1132 = vmatprep.mubr.bf16.mxu1 %v1952_v37  ;;  %1793 = vmatprep.mubr.msk.bf16.mxu0 %vm795_vm0, %v1954_v38  ;;  %v2366_v37 = vld [vmem:[%s2642_s2] ss:$0 sm:$0xff] }
  0xa2   :  { %1133 = vmatmul.mubr.bf16.gmra.mrb[64].mxu1 %v1955_v39  ;;  %1794 = vmatmul.mubr.msk.bf16.gmra.mrb[64].mxu0 %vm795_vm0, %v1956_v40 }
  0xa3   :  { %1140 = vmatprep.mubr.bf16.mxu1 %v1957_v41  ;;  %1797 = vmatprep.mubr.msk.bf16.mxu0 %vm795_vm0, %v1959_v42 }
  0xaa   :  { %1141 = vmatmul.mubr.bf16.gmra.mrb[68].mxu1 %v1960_v43  ;;  %1798 = vmatmul.mubr.msk.bf16.gmra.mrb[68].mxu0 %vm795_vm0, %v1961_v44 }
  0xab   :  { %1148 = vmatprep.mubr.bf16.mxu1 %v1962_v45  ;;  %1801 = vmatprep.mubr.msk.bf16.mxu0 %vm795_vm0, %v1964_v46 }
  0xb2   :  { %1149 = vmatmul.mubr.bf16.gmra.mrb[72].mxu1 %v1965_v48  ;;  %1802 = vmatmul.mubr.msk.bf16.gmra.mrb[72].mxu0 %vm795_vm0, %v1966_v49 }
  0xb3   :  { %1156 = vmatprep.mubr.bf16.mxu1 %v1471_v50  ;;  %1805 = vmatprep.mubr.msk.bf16.mxu0 %vm795_vm0, %v1968_v51 }
  0xba   :  { %1157 = vmatmul.mubr.bf16.gmra.mrb[76].mxu1 %v1470_v52  ;;  %1806 = vmatmul.mubr.msk.bf16.gmra.mrb[76].mxu0 %vm795_vm0, %v1970_v53 }
  0xf5   :  { %v1541_v54 = vpop.f32.mrb[0].mxu0  ;;  %v1613_v55 = vpop.f32.mrb[0].mxu1 }
  0xf6   :  { %v1542_v56 = vpop.f32.mrb[1].mxu0  ;;  %v1614_v57 = vpop.f32.mrb[1].mxu1 }
  0xf7   :  { %v1543_v58 = vadd.f32 %v1542_v56, %v1541_v54  ;;  %v2349_v59 = vadd.f32 %v1614_v57, %v1613_v55  ;;  %v1544_v60 = vpop.f32.mrb[2].mxu0  ;;  %v1616_v61 = vpop.f32.mrb[2].mxu1 }
  0xf8   :  { %v1545_v62 = vpop.f32.mrb[3].mxu0  ;;  %v1617_v63 = vpop.f32.mrb[3].mxu1 }
  0xf9   :  { %v1546_v0 = vadd.f32 %v1545_v62, %v1544_v60  ;;  %v2351_v1 = vadd.f32 %v1617_v63, %v1616_v61  ;;  %v879_v42 = vadd.f32 %v1543_v58, %v2366_v37 }
  0xfb   :  { %v882_v49 = vadd.f32 %v1546_v0, %v2366_v37 }
  0xfd   :  { %v1547_v2 = vpop.f32.mrb[4].mxu0  ;;  %v1619_v3 = vpop.f32.mrb[4].mxu1 }
  0xfe   :  { %v1548_v4 = vpop.f32.mrb[5].mxu0  ;;  %v1620_v5 = vpop.f32.mrb[5].mxu1 }
  0xff   :  { %v1549_v6 = vadd.f32 %v1548_v4, %v1547_v2  ;;  %v2353_v7 = vadd.f32 %v1620_v5, %v1619_v3  ;;  %v1550_v8 = vpop.f32.mrb[6].mxu0  ;;  %v1622_v9 = vpop.f32.mrb[6].mxu1 }
 0x100   :  { %v1551_v10 = vpop.f32.mrb[7].mxu0  ;;  %v1623_v11 = vpop.f32.mrb[7].mxu1 }
 0x101   :  { %v1552_v12 = vadd.f32 %v1551_v10, %v1550_v8  ;;  %v2355_v13 = vadd.f32 %v1623_v11, %v1622_v9  ;;  %v887_v58 = vadd.f32 %v1549_v6, %v2366_v37 }
 0x103   :  { %v890_v3 = vadd.f32 %v1552_v12, %v2366_v37 }
 0x105   :  { %v1553_v14 = vpop.f32.mrb[8].mxu0  ;;  %v1625_v15 = vpop.f32.mrb[8].mxu1 }
 0x106   :  { %v1554_v16 = vpop.f32.mrb[9].mxu0  ;;  %v1626_v17 = vpop.f32.mrb[9].mxu1 }
 0x107   :  { %v1555_v18 = vadd.f32 %v1554_v16, %v1553_v14  ;;  %v2357_v19 = vadd.f32 %v1626_v17, %v1625_v15  ;;  %v1556_v20 = vpop.f32.mrb[10].mxu0  ;;  %v1628_v21 = vpop.f32.mrb[10].mxu1 }
 0x108   :  { %v1557_v22 = vpop.f32.mrb[11].mxu0  ;;  %v1629_v23 = vpop.f32.mrb[11].mxu1 }
 0x109   :  { %v1558_v24 = vadd.f32 %v1557_v22, %v1556_v20  ;;  %v2359_v25 = vadd.f32 %v1629_v23, %v1628_v21  ;;  %v895_v15 = vadd.f32 %v1555_v18, %v2366_v37 }
 0x10b   :  { %v898_v23 = vadd.f32 %v1558_v24, %v2366_v37 }
 0x10d   :  { %v1559_v26 = vpop.f32.mrb[12].mxu0  ;;  %v1631_v27 = vpop.f32.mrb[12].mxu1 }
 0x10e   :  { %v1560_v28 = vpop.f32.mrb[13].mxu0  ;;  %v1632_v29 = vpop.f32.mrb[13].mxu1 }
 0x10f   :  { %v1561_v30 = vadd.f32 %v1560_v28, %v1559_v26  ;;  %v2361_v31 = vadd.f32 %v1632_v29, %v1631_v27  ;;  %v1562_v32 = vpop.f32.mrb[14].mxu0  ;;  %v1634_v33 = vpop.f32.mrb[14].mxu1 }
 0x110   :  { %v1563_v34 = vpop.f32.mrb[15].mxu0  ;;  %v1635_v35 = vpop.f32.mrb[15].mxu1 }
 0x111   :  { %v1564_v36 = vadd.f32 %v1563_v34, %v1562_v32  ;;  %v903_v35 = vadd.f32 %v1561_v30, %v2366_v37 }
 0x115   :  { %v1565_v38 = vpop.f32.mrb[16].mxu0  ;;  %v1653_v39 = vpop.f32.mrb[16].mxu1 }
 0x116   :  { %v1566_v40 = vpop.f32.mrb[17].mxu0  ;;  %v1654_v41 = vpop.f32.mrb[17].mxu1 }
 0x117   :  { %v2369_v43 = vadd.f32 %v1566_v40, %v1565_v38  ;;  %v1655_v44 = vadd.f32 %v1654_v41, %v1653_v39  ;;  %v1568_v45 = vpop.f32.mrb[18].mxu0  ;;  %v1656_v46 = vpop.f32.mrb[18].mxu1 }
 0x118   :  { %v1569_v47 = vpop.f32.mrb[19].mxu0  ;;  %v1657_v48 = vpop.f32.mrb[19].mxu1 }
 0x119   :  { %v2372_v50 = vadd.f32 %v1569_v47, %v1568_v45  ;;  %v1658_v51 = vadd.f32 %v1657_v48, %v1656_v46  ;;  %v2374_v52 = vadd.f32 %v1655_v44, %v879_v42  ;;  %v906_v44 = vadd.f32 %v1564_v36, %v2366_v37 }
 0x11b   :  { %v2376_v53 = vadd.f32 %v1658_v51, %v882_v49 }
 0x11d   :  { %v1571_v54 = vpop.f32.mrb[20].mxu0  ;;  %v1659_v55 = vpop.f32.mrb[20].mxu1 }
 0x11e   :  { %v1572_v56 = vpop.f32.mrb[21].mxu0  ;;  %v1660_v57 = vpop.f32.mrb[21].mxu1 }
 0x11f   :  { %v2379_v60 = vadd.f32 %v1572_v56, %v1571_v54  ;;  %v1661_v61 = vadd.f32 %v1660_v57, %v1659_v55  ;;  %v1574_v62 = vpop.f32.mrb[22].mxu0  ;;  %v1662_v63 = vpop.f32.mrb[22].mxu1  ;;  %v911_v55 = vadd.f32 %v2369_v43, %v2366_v37 }
 0x120   :  { %v1575_v2 = vpop.f32.mrb[23].mxu0  ;;  %v1663_v0 = vpop.f32.mrb[23].mxu1 }
 0x121   :  { %v2382_v4 = vadd.f32 %v1575_v2, %v1574_v62  ;;  %v1664_v5 = vadd.f32 %v1663_v0, %v1662_v63  ;;  %v2384_v8 = vadd.f32 %v1661_v61, %v887_v58  ;;  %v914_v63 = vadd.f32 %v2372_v50, %v2366_v37 }
 0x123   :  { %v2386_v9 = vadd.f32 %v1664_v5, %v890_v3 }
 0x125   :  { %v1577_v10 = vpop.f32.mrb[24].mxu0  ;;  %v1665_v11 = vpop.f32.mrb[24].mxu1 }
 0x126   :  { %v1578_v14 = vpop.f32.mrb[25].mxu0  ;;  %v1666_v6 = vpop.f32.mrb[25].mxu1 }
 0x127   :  { %v2389_v16 = vadd.f32 %v1578_v14, %v1577_v10  ;;  %v1667_v17 = vadd.f32 %v1666_v6, %v1665_v11  ;;  %v1580_v20 = vpop.f32.mrb[26].mxu0  ;;  %v1668_v21 = vpop.f32.mrb[26].mxu1  ;;  %v919_v6 = vadd.f32 %v2379_v60, %v2366_v37 }
 0x128   :  { %v1581_v22 = vpop.f32.mrb[27].mxu0  ;;  %v1669_v12 = vpop.f32.mrb[27].mxu1 }
 0x129   :  { %v2392_v26 = vadd.f32 %v1581_v22, %v1580_v20  ;;  %v1670_v27 = vadd.f32 %v1669_v12, %v1668_v21  ;;  %v2394_v28 = vadd.f32 %v1667_v17, %v895_v15  ;;  %v922_v12 = vadd.f32 %v2382_v4, %v2366_v37 }
 0x12b   :  { %v2396_v29 = vadd.f32 %v1670_v27, %v898_v23 }
 0x12d   :  { %v1583_v32 = vpop.f32.mrb[28].mxu0  ;;  %v1671_v33 = vpop.f32.mrb[28].mxu1 }
 0x12e   :  { %v1584_v34 = vpop.f32.mrb[29].mxu0  ;;  %v1672_v18 = vpop.f32.mrb[29].mxu1 }
 0x12f   :  { %v2399_v38 = vadd.f32 %v1584_v34, %v1583_v32  ;;  %v1673_v39 = vadd.f32 %v1672_v18, %v1671_v33  ;;  %v1586_v40 = vpop.f32.mrb[30].mxu0  ;;  %v1674_v41 = vpop.f32.mrb[30].mxu1 }
 0x130   :  { %v1587_v42 = vpop.f32.mrb[31].mxu0  ;;  %v1675_v24 = vpop.f32.mrb[31].mxu1 }
 0x131   :  { %v2402_v45 = vadd.f32 %v1587_v42, %v1586_v40  ;;  %v1676_v46 = vadd.f32 %v1675_v24, %v1674_v41  ;;  %v2404_v47 = vadd.f32 %v1673_v39, %v903_v35  ;;  %v927_v39 = vadd.f32 %v2389_v16, %v2366_v37 }
 0x133   :  { %v2406_v48 = vadd.f32 %v1676_v46, %v906_v44  ;;  %v930_v46 = vadd.f32 %v2392_v26, %v2366_v37 }
 0x135   :  { %v1589_v49 = vpop.f32.mrb[32].mxu0  ;;  %v1677_v51 = vpop.f32.mrb[32].mxu1 }
 0x136   :  { %v1590_v54 = vpop.f32.mrb[33].mxu0  ;;  %v1678_v30 = vpop.f32.mrb[33].mxu1 }
 0x137   :  { %v2410_v56 = vadd.f32 %v1590_v54, %v1589_v49  ;;  %v1679_v57 = vadd.f32 %v1678_v30, %v1677_v51  ;;  %v1592_v58 = vpop.f32.mrb[34].mxu0  ;;  %v1680_v61 = vpop.f32.mrb[34].mxu1 }
 0x138   :  { %v1593_v36 = vpop.f32.mrb[35].mxu0  ;;  %v1681_v62 = vpop.f32.mrb[35].mxu1 }
 0x139   :  { %v2414_v2 = vadd.f32 %v1593_v36, %v1592_v58  ;;  %v1682_v0 = vadd.f32 %v1681_v62, %v1680_v61  ;;  %v2416_v3 = vadd.f32 %v1679_v57, %v911_v55  ;;  %v935_v61 = vadd.f32 %v2399_v38, %v2366_v37 }
 0x13b   :  { %v2418_v5 = vadd.f32 %v1682_v0, %v914_v63 }
 0x13d   :  { %v1595_v10 = vpop.f32.mrb[36].mxu0  ;;  %v1683_v11 = vpop.f32.mrb[36].mxu1 }
 0x13e   :  { %v1596_v43 = vpop.f32.mrb[37].mxu0  ;;  %v1684_v14 = vpop.f32.mrb[37].mxu1 }
 0x13f   :  { %v2422_v15 = vadd.f32 %v1596_v43, %v1595_v10  ;;  %v1685_v17 = vadd.f32 %v1684_v14, %v1683_v11  ;;  %v1598_v20 = vpop.f32.mrb[38].mxu0  ;;  %v1686_v21 = vpop.f32.mrb[38].mxu1  ;;  %v938_v11 = vadd.f32 %v2402_v45, %v2366_v37 }
 0x140   :  { %v1599_v50 = vpop.f32.mrb[39].mxu0  ;;  %v1687_v22 = vpop.f32.mrb[39].mxu1 }
 0x141   :  { %v2426_v23 = vadd.f32 %v1599_v50, %v1598_v20  ;;  %v1688_v27 = vadd.f32 %v1687_v22, %v1686_v21  ;;  %v2428_v32 = vadd.f32 %v1685_v17, %v919_v6 }
 0x143   :  { %v2430_v33 = vadd.f32 %v1688_v27, %v922_v12  ;;  %v943_v12 = vadd.f32 %v2410_v56, %v2366_v37 }
 0x145   :  { %v1601_v34 = vpop.f32.mrb[40].mxu0  ;;  %v1689_v18 = vpop.f32.mrb[40].mxu1 }
 0x146   :  { %v1602_v60 = vpop.f32.mrb[41].mxu0  ;;  %v1690_v35 = vpop.f32.mrb[41].mxu1 }
 0x147   :  { %v2434_v40 = vadd.f32 %v1602_v60, %v1601_v34  ;;  %v1691_v41 = vadd.f32 %v1690_v35, %v1689_v18  ;;  %v1604_v42 = vpop.f32.mrb[42].mxu0  ;;  %v1692_v24 = vpop.f32.mrb[42].mxu1  ;;  %v946_v60 = vadd.f32 %v2414_v2, %v2366_v37 }
 0x148   :  { %v1605_v4 = vpop.f32.mrb[43].mxu0  ;;  %v1693_v44 = vpop.f32.mrb[43].mxu1 }
 0x149   :  { %v2438_v49 = vadd.f32 %v1605_v4, %v1604_v42  ;;  %v1694_v51 = vadd.f32 %v1693_v44, %v1692_v24  ;;  %v2440_v54 = vadd.f32 %v1691_v41, %v927_v39 }
 0x14b   :  { %v2442_v30 = vadd.f32 %v1694_v51, %v930_v46 }
 0x14d   :  { %v1607_v55 = vpop.f32.mrb[44].mxu0  ;;  %v1695_v57 = vpop.f32.mrb[44].mxu1 }
 0x14e   :  { %v1608_v16 = vpop.f32.mrb[45].mxu0  ;;  %v1696_v58 = vpop.f32.mrb[45].mxu1 }
 0x14f   :  { %v2446_v36 = vadd.f32 %v1608_v16, %v1607_v55  ;;  %v1697_v62 = vadd.f32 %v1696_v58, %v1695_v57  ;;  %v1610_v63 = vpop.f32.mrb[46].mxu0  ;;  %v1698_v0 = vpop.f32.mrb[46].mxu1  ;;  %v951_v57 = vadd.f32 %v2422_v15, %v2366_v37 }
 0x150   :  { %v1611_v26 = vpop.f32.mrb[47].mxu0  ;;  %v1699_v10 = vpop.f32.mrb[47].mxu1 }
 0x151   :  { %v2450_v43 = vadd.f32 %v1611_v26, %v1610_v63  ;;  %v1700_v14 = vadd.f32 %v1699_v10, %v1698_v0  ;;  %v2452_v6 = vadd.f32 %v1697_v62, %v935_v61  ;;  %v954_v63 = vadd.f32 %v2426_v23, %v2366_v37 }
 0x153   :  { %v2454_v17 = vadd.f32 %v1700_v14, %v938_v11 }
 0x155   :  { %v1701_v20 = vpop.f32.mrb[48].mxu1  ;;  %v1779_v21 = vpop.f32.mrb[48].mxu0 }
 0x156   :  { %v1207_v38 = vadd.f32 %v1779_v21, %v2384_v8  ;;  %v1702_v50 = vpop.f32.mrb[49].mxu1  ;;  %v1198_v22 = vpop.f32.mrb[49].mxu0 }
 0x157   :  { %v1703_v27 = vadd.f32 %v1702_v50, %v1701_v20  ;;  %v1199_v45 = vadd.f32 %v1198_v22, %v2374_v52  ;;  %v1704_v34 = vpop.f32.mrb[50].mxu1  ;;  %v1780_v18 = vpop.f32.mrb[50].mxu0 }
 0x158   :  { %v1326_v35 = vmax.f32 %v1207_v38, 0.0  ;;  %v1210_v39 = vadd.f32 %v1780_v18, %v2386_v9  ;;  %v1705_v41 = vpop.f32.mrb[51].mxu1  ;;  %v1201_v42 = vpop.f32.mrb[51].mxu0 }
 0x159   :  { %v1324_v8 = vmax.f32 %v1199_v45, 0.0  ;;  %v1706_v24 = vadd.f32 %v1705_v41, %v1704_v34  ;;  %v1202_v4 = vadd.f32 %v1201_v42, %v2376_v53  ;;  %v2464_v44 = vadd.f32 %v1703_v27, %v943_v12 }
 0x15a   :  { %1358 = vst.msk [vmem:[%s2643_s3 + $0x10] sm:$0xff] %vm1355_vm1, %v1326_v35  ;;  %v1327_v52 = vmax.f32 %v1210_v39, 0.0  ;;  %v959_v12 = vadd.f32 %v2434_v40, %v2366_v37 }
 0x15b   :  { %1356 = vst.msk [vmem:[%s2643_s3] sm:$0xff] %vm1355_vm1, %v1324_v8  ;;  %v1325_v9 = vmax.f32 %v1202_v4, 0.0  ;;  %v2474_v56 = vadd.f32 %v1706_v24, %v946_v60  ;;  %v962_v60 = vadd.f32 %v2438_v49, %v2366_v37 }
 0x15c   :  { %1359 = vst.msk [vmem:[%s2643_s3 + $0x18] sm:$0xff] %vm1355_vm1, %v1327_v52 }
 0x15d   :  { %1357 = vst.msk [vmem:[%s2643_s3 + $0x8] sm:$0xff] %vm1355_vm1, %v1325_v9  ;;  %v1707_v53 = vpop.f32.mrb[52].mxu1  ;;  %v1783_v2 = vpop.f32.mrb[52].mxu0 }
 0x15e   :  { %v1223_v46 = vadd.f32 %v1783_v2, %v2404_v47  ;;  %v1708_v51 = vpop.f32.mrb[53].mxu1  ;;  %v1214_v55 = vpop.f32.mrb[53].mxu0  ;;  %v967_v2 = vadd.f32 %v2446_v36, %v2366_v37 }
 0x15f   :  { %v1709_v16 = vadd.f32 %v1708_v51, %v1707_v53  ;;  %v1215_v58 = vadd.f32 %v1214_v55, %v2394_v28  ;;  %v1710_v61 = vpop.f32.mrb[54].mxu1  ;;  %v1784_v62 = vpop.f32.mrb[54].mxu0 }
 0x160   :  { %v1330_v0 = vmax.f32 %v1223_v46, 0.0  ;;  %v1226_v26 = vadd.f32 %v1784_v62, %v2406_v48  ;;  %v1711_v10 = vpop.f32.mrb[55].mxu1  ;;  %v1217_v11 = vpop.f32.mrb[55].mxu0 }
 0x161   :  { %v1328_v14 = vmax.f32 %v1215_v58, 0.0  ;;  %v1712_v47 = vadd.f32 %v1711_v10, %v1710_v61  ;;  %v1218_v20 = vadd.f32 %v1217_v11, %v2396_v29  ;;  %v1111_v21 = vadd.f32 %v1709_v16, %v951_v57 }
 0x162   :  { %1362 = vst.msk [vmem:[%s2643_s3 + $0x30] sm:$0xff] %vm1355_vm1, %v1330_v0  ;;  %v1331_v28 = vmax.f32 %v1226_v26, 0.0  ;;  %v970_v16 = vadd.f32 %v2450_v43, %v2366_v37 }
 0x163   :  { %1360 = vst.msk [vmem:[%s2643_s3 + $0x20] sm:$0xff] %vm1355_vm1, %v1328_v14  ;;  %v1329_v15 = vmax.f32 %v1218_v20, 0.0  ;;  %v2500_v48 = vadd.f32 %v1712_v47, %v954_v63  ;;  %v975_v20 = vadd.f32 %v2349_v59, %v2366_v37 }
 0x164   :  { %1363 = vst.msk [vmem:[%s2643_s3 + $0x38] sm:$0xff] %vm1355_vm1, %v1331_v28 }
 0x165   :  { %1361 = vst.msk [vmem:[%s2643_s3 + $0x28] sm:$0xff] %vm1355_vm1, %v1329_v15  ;;  %v1713_v29 = vpop.f32.mrb[56].mxu1  ;;  %v1787_v23 = vpop.f32.mrb[56].mxu0 }
 0x166   :  { %v1239_v38 = vadd.f32 %v1787_v23, %v2428_v32  ;;  %v1714_v50 = vpop.f32.mrb[57].mxu1  ;;  %v1230_v22 = vpop.f32.mrb[57].mxu0 }
 0x167   :  { %v1715_v27 = vadd.f32 %v1714_v50, %v1713_v29  ;;  %v1231_v45 = vadd.f32 %v1230_v22, %v2416_v3  ;;  %v1716_v34 = vpop.f32.mrb[58].mxu1  ;;  %v1788_v18 = vpop.f32.mrb[58].mxu0 }
 0x168   :  { %v1334_v35 = vmax.f32 %v1239_v38, 0.0  ;;  %v1242_v39 = vadd.f32 %v1788_v18, %v2430_v33  ;;  %v1717_v41 = vpop.f32.mrb[59].mxu1  ;;  %v1233_v42 = vpop.f32.mrb[59].mxu0  ;;  %v978_v38 = vadd.f32 %v2351_v1, %v2366_v37 }
 0x169   :  { %v1332_v8 = vmax.f32 %v1231_v45, 0.0  ;;  %v1718_v32 = vadd.f32 %v1717_v41, %v1716_v34  ;;  %v1234_v24 = vadd.f32 %v1233_v42, %v2418_v5  ;;  %v2518_v4 = vadd.f32 %v1715_v27, %v959_v12 }
 0x16a   :  { %1366 = vst.msk [vmem:[%s2643_s3 + $0x50] sm:$0xff] %vm1355_vm1, %v1334_v35  ;;  %v1335_v3 = vmax.f32 %v1242_v39, 0.0  ;;  %v983_v41 = vadd.f32 %v2353_v7, %v2366_v37 }
 0x16b   :  { %1364 = vst.msk [vmem:[%s2643_s3 + $0x40] sm:$0xff] %vm1355_vm1, %v1332_v8  ;;  %v1333_v33 = vmax.f32 %v1234_v24, 0.0  ;;  %v2528_v40 = vadd.f32 %v1718_v32, %v962_v60 }
 0x16c   :  { %1367 = vst.msk [vmem:[%s2643_s3 + $0x58] sm:$0xff] %vm1355_vm1, %v1335_v3  ;;  %v986_v3 = vadd.f32 %v2355_v13, %v2366_v37 }
 0x16d   :  { %1365 = vst.msk [vmem:[%s2643_s3 + $0x48] sm:$0xff] %vm1355_vm1, %v1333_v33  ;;  %v1719_v5 = vpop.f32.mrb[60].mxu1  ;;  %v1791_v49 = vpop.f32.mrb[60].mxu0 }
 0x16e   :  { %v1255_v52 = vadd.f32 %v1791_v49, %v2452_v6  ;;  %v1720_v9 = vpop.f32.mrb[61].mxu1  ;;  %v1246_v53 = vpop.f32.mrb[61].mxu0 }
 0x16f   :  { %v1721_v46 = vadd.f32 %v1720_v9, %v1719_v5  ;;  %v1247_v51 = vadd.f32 %v1246_v53, %v2440_v54  ;;  %v1722_v55 = vpop.f32.mrb[62].mxu1  ;;  %v1792_v57 = vpop.f32.mrb[62].mxu0 }
 0x170   :  { %v1338_v58 = vmax.f32 %v1255_v52, 0.0  ;;  %v1258_v61 = vadd.f32 %v1792_v57, %v2454_v17  ;;  %v1723_v62 = vpop.f32.mrb[63].mxu1  ;;  %v1249_v63 = vpop.f32.mrb[63].mxu0 }
 0x171   :  { %v1336_v0 = vmax.f32 %v1247_v51, 0.0  ;;  %v1724_v6 = vadd.f32 %v1723_v62, %v1722_v55  ;;  %v1250_v26 = vadd.f32 %v1249_v63, %v2442_v30  ;;  %v1127_v10 = vadd.f32 %v1721_v46, %v967_v2 }
 0x172   :  { %1370 = vst.msk [vmem:[%s2643_s3 + $0x70] sm:$0xff] %vm1355_vm1, %v1338_v58  ;;  %v1339_v54 = vmax.f32 %v1258_v61, 0.0  ;;  %v991_v58 = vadd.f32 %v2357_v19, %v2366_v37 }
 0x173   :  { %1368 = vst.msk [vmem:[%s2643_s3 + $0x60] sm:$0xff] %vm1355_vm1, %v1336_v0  ;;  %v1337_v36 = vmax.f32 %v1250_v26, 0.0  ;;  %v1130_v43 = vadd.f32 %v1724_v6, %v970_v16  ;;  %v994_v6 = vadd.f32 %v2359_v25, %v2366_v37 }
 0x174   :  { %1371 = vst.msk [vmem:[%s2643_s3 + $0x78] sm:$0xff] %vm1355_vm1, %v1339_v54 }
 0x175   :  { %1369 = vst.msk [vmem:[%s2643_s3 + $0x68] sm:$0xff] %vm1355_vm1, %v1337_v36  ;;  %v1725_v30 = vpop.f32.mrb[64].mxu1  ;;  %v1795_v17 = vpop.f32.mrb[64].mxu0 }
 0x176   :  { %v1271_v11 = vadd.f32 %v1795_v17, %v1111_v21  ;;  %v1726_v14 = vpop.f32.mrb[65].mxu1  ;;  %v1262_v47 = vpop.f32.mrb[65].mxu0 }
 0x177   :  { %v1727_v28 = vadd.f32 %v1726_v14, %v1725_v30  ;;  %v1263_v15 = vadd.f32 %v1262_v47, %v2464_v44  ;;  %v1728_v29 = vpop.f32.mrb[66].mxu1  ;;  %v1796_v23 = vpop.f32.mrb[66].mxu0 }
 0x178   :  { %v1342_v50 = vmax.f32 %v1271_v11, 0.0  ;;  %v1274_v22 = vadd.f32 %v1796_v23, %v2500_v48  ;;  %v1729_v12 = vpop.f32.mrb[67].mxu1  ;;  %v1265_v27 = vpop.f32.mrb[67].mxu0 }
 0x179   :  { %v1340_v45 = vmax.f32 %v1263_v15, 0.0  ;;  %v1730_v21 = vadd.f32 %v1729_v12, %v1728_v29  ;;  %v1266_v34 = vadd.f32 %v1265_v27, %v2474_v56  ;;  %v1135_v18 = vadd.f32 %v1727_v28, %v975_v20 }
 0x17a   :  { %1374 = vst.msk [vmem:[%s2643_s3 + $0x90] sm:$0xff] %vm1355_vm1, %v1342_v50  ;;  %v1343_v59 = vmax.f32 %v1274_v22, 0.0  ;;  %v999_v29 = vadd.f32 %v2361_v31, %v2366_v37 }
 0x17b   :  { %1372 = vst.msk [vmem:[%s2643_s3 + $0x80] sm:$0xff] %vm1355_vm1, %v1340_v45  ;;  %v1341_v1 = vmax.f32 %v1266_v34, 0.0  ;;  %v1138_v44 = vadd.f32 %v1730_v21, %v978_v38 }
 0x17c   :  { %1375 = vst.msk [vmem:[%s2643_s3 + $0x98] sm:$0xff] %vm1355_vm1, %v1343_v59 }
 0x17d   :  { %1373 = vst.msk [vmem:[%s2643_s3 + $0x88] sm:$0xff] %vm1355_vm1, %v1341_v1  ;;  %v1731_v56 = vpop.f32.mrb[68].mxu1  ;;  %v1799_v48 = vpop.f32.mrb[68].mxu0 }
 0x17e   :  { %v1287_v60 = vadd.f32 %v1799_v48, %v1127_v10  ;;  %v1732_v35 = vpop.f32.mrb[69].mxu1  ;;  %v1278_v39 = vpop.f32.mrb[69].mxu0 }
 0x17f   :  { %v1733_v42 = vadd.f32 %v1732_v35, %v1731_v56  ;;  %v1279_v8 = vadd.f32 %v1278_v39, %v2518_v4  ;;  %v1734_v32 = vpop.f32.mrb[70].mxu1  ;;  %v1800_v24 = vpop.f32.mrb[70].mxu0 }
 0x180   :  { %v1346_v33 = vmax.f32 %v1287_v60, 0.0  ;;  %v1290_v5 = vadd.f32 %v1800_v24, %v1130_v43  ;;  %v1735_v49 = vpop.f32.mrb[71].mxu1  ;;  %v1281_v52 = vpop.f32.mrb[71].mxu0 }
 0x181   :  { %v1344_v9 = vmax.f32 %v1279_v8, 0.0  ;;  %v1736_v53 = vadd.f32 %v1735_v49, %v1734_v32  ;;  %v1282_v2 = vadd.f32 %v1281_v52, %v2528_v40  ;;  %v1143_v46 = vadd.f32 %v1733_v42, %v983_v41 }
 0x182   :  { %1378 = vst.msk [vmem:[%s2643_s3 + $0xb0] sm:$0xff] %vm1355_vm1, %v1346_v33  ;;  %v1347_v7 = vmax.f32 %v1290_v5, 0.0 }
 0x183   :  { %1376 = vst.msk [vmem:[%s2643_s3 + $0xa0] sm:$0xff] %vm1355_vm1, %v1344_v9  ;;  %v1345_v13 = vmax.f32 %v1282_v2, 0.0  ;;  %v1146_v4 = vadd.f32 %v1736_v53, %v986_v3 }
 0x184   :  { %1379 = vst.msk [vmem:[%s2643_s3 + $0xb8] sm:$0xff] %vm1355_vm1, %v1347_v7 }
 0x185   :  { %1377 = vst.msk [vmem:[%s2643_s3 + $0xa8] sm:$0xff] %vm1355_vm1, %v1345_v13  ;;  %v1737_v40 = vpop.f32.mrb[72].mxu1  ;;  %v1803_v51 = vpop.f32.mrb[72].mxu0 }
 0x186   :  { %v1303_v55 = vadd.f32 %v1803_v51, %v1143_v46  ;;  %v1738_v57 = vpop.f32.mrb[73].mxu1  ;;  %v1294_v16 = vpop.f32.mrb[73].mxu0 }
 0x187   :  { %v1739_v61 = vadd.f32 %v1738_v57, %v1737_v40  ;;  %v1295_v62 = vadd.f32 %v1294_v16, %v1135_v18  ;;  %v1740_v63 = vpop.f32.mrb[74].mxu1  ;;  %v1804_v0 = vpop.f32.mrb[74].mxu0 }
 0x188   :  { %v1350_v26 = vmax.f32 %v1303_v55, 0.0  ;;  %v1306_v10 = vadd.f32 %v1804_v0, %v1146_v4  ;;  %v1741_v54 = vpop.f32.mrb[75].mxu1  ;;  %v1297_v36 = vpop.f32.mrb[75].mxu0 }
 0x189   :  { %v1348_v43 = vmax.f32 %v1295_v62, 0.0  ;;  %v1742_v30 = vadd.f32 %v1741_v54, %v1740_v63  ;;  %v1298_v17 = vadd.f32 %v1297_v36, %v1138_v44  ;;  %v1151_v11 = vadd.f32 %v1739_v61, %v991_v58 }
 0x18a   :  { %1382 = vst.msk [vmem:[%s2643_s3 + $0xd0] sm:$0xff] %vm1355_vm1, %v1350_v26  ;;  %v1351_v19 = vmax.f32 %v1306_v10, 0.0 }
 0x18b   :  { %1380 = vst.msk [vmem:[%s2643_s3 + $0xc0] sm:$0xff] %vm1355_vm1, %v1348_v43  ;;  %v1349_v25 = vmax.f32 %v1298_v17, 0.0  ;;  %v1154_v14 = vadd.f32 %v1742_v30, %v994_v6 }
 0x18c   :  { %1383 = vst.msk [vmem:[%s2643_s3 + $0xd8] sm:$0xff] %vm1355_vm1, %v1351_v19 }
 0x18d   :  { %1381 = vst.msk [vmem:[%s2643_s3 + $0xc8] sm:$0xff] %vm1355_vm1, %v1349_v25  ;;  %v1743_v47 = vpop.f32.mrb[76].mxu1  ;;  %v1807_v20 = vpop.f32.mrb[76].mxu0 }
 0x18e   :  { %v1744_v28 = vpop.f32.mrb[77].mxu1  ;;  %v1310_v15 = vpop.f32.mrb[77].mxu0 }
 0x18f   :  { %v1745_v23 = vadd.f32 %v1744_v28, %v1743_v47  ;;  %v1311_v38 = vadd.f32 %v1310_v15, %v1151_v11  ;;  %v1746_v50 = vpop.f32.mrb[78].mxu1  ;;  %v1808_v22 = vpop.f32.mrb[78].mxu0 }
 0x190   :  { %v1747_v12 = vpop.f32.mrb[79].mxu1  ;;  %v1313_v27 = vpop.f32.mrb[79].mxu0 }
 0x191   :  { %v1159_v45 = vadd.f32 %v1745_v23, %v999_v29  ;;  %v1352_v21 = vmax.f32 %v1311_v38, 0.0  ;;  %v1314_v34 = vadd.f32 %v1313_v27, %v1154_v14 }
 0x193   :  { %v1319_v18 = vadd.f32 %v1807_v20, %v1159_v45  ;;  %1384 = vst.msk [vmem:[%s2643_s3 + $0xe0] sm:$0xff] %vm1355_vm1, %v1352_v21  ;;  %v1353_v59 = vmax.f32 %v1314_v34, 0.0 }
 0x195   :  { %v1354_v1 = vmax.f32 %v1319_v18, 0.0  ;;  %1385 = vst.msk [vmem:[%s2643_s3 + $0xe8] sm:$0xff] %vm1355_vm1, %v1353_v59 }
 0x197   :  { %1387 = vst.msk [vmem:[%s2643_s3 + $0xf0] sm:$0x3] %vm1386_vm2, %v1354_v1 }

// kernel: sym_image_critic_forward.8
= control target key start
LH: loop header
LB: loop body
LE: loop exit
PB: predicated region body
PF: predicated region fallthrough
CT: control target
= control target key end

     0   :  { %v791_v0 = vmov 0.0|0.0   ;;  %vm792_vm0 = vmmov 0   ;;  %v793_v6 = vmov 0.0   ;;  %vm122_vm1 = vcmask 261120   ;;  %s1346_s1 = inlined_call_operand.vmem [shape: f32[288,1], index: 1, kind: input, shape index: {}]   ;;  %s1347_s0 = inlined_call_operand.vmem [shape: f32[162,288], index: 0, kind: input, shape index: {}]   ;;  %s1348_s2 = inlined_call_operand.<no memory space> [shape: f32[1,1], index: 2, kind: input, shape index: {}]   ;;  %s1349_s3 = inlined_call_operand.vmem [shape: f32[162,1], index: 3, kind: output, shape index: {}]  }
   0x1   :  { %692 = vmatprep.subr.bf16.mxu1 %v791_v0  ;;  %v79_v1 = vld [vmem:[%s1346_s1] sm:$0xff]  ;;  %v80_v2 = vld [vmem:[%s1346_s1 + $0x8] sm:$0xff]  ;;  %v81_v3 = vld [vmem:[%s1346_s1 + $0x10] sm:$0xff]  ;;  %740 = vmatprep.subr.bf16.mxu0 %v791_v0  ;;  %v8_v28 = vstv %s1348_s2  ;;  %vm547_vm2 = vcmask 7168   ;;  %vm568_vm3 = vcmask 1024  }
   0x2   :  { %v693_v4 = vpack.c.bf16 %v80_v2, %v79_v1  ;;  %v82_v5 = vld [vmem:[%s1346_s1 + $0x18] sm:$0xff]  ;;  %629 = vmatprep.mubr.msk.f32.mxu0 %vm792_vm0, %v793_v6  ;;  %v83_v8 = vld [vmem:[%s1346_s1 + $0x20] sm:$0xff]  ;;  %v84_v9 = vld [vmem:[%s1346_s1 + $0x28] sm:$0xff]  ;;  %9 = vst [vmem:[#allocation2] sm:$0x1] %v8_v28 }
   0x3   :  { %v696_v7 = vpack.c.bf16 %v82_v5, %v81_v3  ;;  %v699_v10 = vpack.c.bf16 %v84_v9, %v83_v8  ;;  %v85_v11 = vld [vmem:[%s1346_s1 + $0x30] sm:$0xff]  ;;  %v86_v12 = vld [vmem:[%s1346_s1 + $0x38] sm:$0xff]  ;;  %v111_v13 = vld [vmem:[%s1346_s1 + $0x100] sm:$0xff] }
   0x4   :  { %694 = vmatpush1.bf16.msra.mxu1 %v693_v4  ;;  %v112_v14 = vld [vmem:[%s1346_s1 + $0x108] sm:$0xff]  ;;  %v702_v15 = vpack.c.bf16 %v86_v12, %v85_v11  ;;  %v113_v17 = vld [vmem:[%s1346_s1 + $0x110] sm:$0xff]  ;;  %v114_v18 = vld [vmem:[%s1346_s1 + $0x118] sm:$0xff] }
   0x5   :  { %695 = vmatprep.subr.bf16.mxu1 %v791_v0  ;;  %v741_v16 = vpack.c.bf16 %v112_v14, %v111_v13  ;;  %v87_v19 = vld [vmem:[%s1346_s1 + $0x40] sm:$0xff]  ;;  %v88_v20 = vld [vmem:[%s1346_s1 + $0x48] sm:$0xff]  ;;  %v744_v22 = vpack.c.bf16 %v114_v18, %v113_v17  ;;  %v89_v24 = vld [vmem:[%s1346_s1 + $0x50] sm:$0xff] }
   0x6   :  { %v17_v21 = vld [vmem:[%s1347_s0 + $0x8] sm:$0xff]  ;;  %v705_v23 = vpack.c.bf16 %v88_v20, %v87_v19  ;;  %v90_v25 = vld [vmem:[%s1346_s1 + $0x58] sm:$0xff]  ;;  %v18_v26 = vld [vmem:[%s1347_s0 + $0x10] sm:$0xff] }
   0x7   :  { %742 = vmatpush3.bf16.msra.mxu0 %v741_v16  ;;  %250 = vmatprep.mubr.f32.mxu1 %v17_v21  ;;  %v708_v27 = vpack.c.bf16 %v90_v25, %v89_v24  ;;  %v91_v29 = vld [vmem:[%s1346_s1 + $0x60] sm:$0xff]  ;;  %v92_v30 = vld [vmem:[%s1346_s1 + $0x68] sm:$0xff]  ;;  %v93_v33 = vld [vmem:[%s1346_s1 + $0x70] sm:$0xff] }
   0x8   :  { %697 = vmatpush1.bf16.msra.mxu1 %v696_v7  ;;  %743 = vmatprep.subr.bf16.mxu0 %v791_v0  ;;  %v21_v31 = vld [vmem:[%s1347_s0 + $0x28] sm:$0xff]  ;;  %v711_v32 = vpack.c.bf16 %v92_v30, %v91_v29  ;;  %v94_v34 = vld [vmem:[%s1346_s1 + $0x78] sm:$0xff]  ;;  %v24_v35 = vld [vmem:[%s1347_s0 + $0x40] sm:$0xff] }
   0x9   :  { %698 = vmatprep.subr.bf16.mxu1 %v791_v0  ;;  %v714_v36 = vpack.c.bf16 %v94_v34, %v93_v33  ;;  %v95_v37 = vld [vmem:[%s1346_s1 + $0x80] sm:$0xff]  ;;  %v96_v38 = vld [vmem:[%s1346_s1 + $0x88] sm:$0xff]  ;;  %v27_v39 = vld [vmem:[%s1347_s0 + $0x58] sm:$0xff] }
   0xa   :  { %v717_v40 = vpack.c.bf16 %v96_v38, %v95_v37  ;;  %v97_v41 = vld [vmem:[%s1346_s1 + $0x90] sm:$0xff]  ;;  %v98_v42 = vld [vmem:[%s1346_s1 + $0x98] sm:$0xff]  ;;  %v99_v45 = vld [vmem:[%s1346_s1 + $0xa0] sm:$0xff] }
   0xb   :  { %745 = vmatpush3.bf16.msra.mxu0 %v744_v22  ;;  %v30_v43 = vld [vmem:[%s1347_s0 + $0x70] sm:$0xff]  ;;  %v720_v44 = vpack.c.bf16 %v98_v42, %v97_v41  ;;  %v100_v46 = vld [vmem:[%s1346_s1 + $0xa8] sm:$0xff]  ;;  %v102_v50 = vld [vmem:[%s1346_s1 + $0xb8] sm:$0xff] }
   0xc   :  { %700 = vmatpush1.bf16.msra.mxu1 %v699_v10  ;;  %v33_v47 = vld [vmem:[%s1347_s0 + $0x88] sm:$0xff]  ;;  %v723_v48 = vpack.c.bf16 %v100_v46, %v99_v45  ;;  %v101_v49 = vld [vmem:[%s1346_s1 + $0xb0] sm:$0xff]  ;;  %v36_v51 = vld [vmem:[%s1347_s0 + $0xa0] sm:$0xff] }
   0xd   :  { %701 = vmatprep.subr.bf16.mxu1 %v791_v0  ;;  %v726_v52 = vpack.c.bf16 %v102_v50, %v101_v49  ;;  %v103_v53 = vld [vmem:[%s1346_s1 + $0xc0] sm:$0xff]  ;;  %v104_v54 = vld [vmem:[%s1346_s1 + $0xc8] sm:$0xff]  ;;  %v39_v55 = vld [vmem:[%s1347_s0 + $0xb8] sm:$0xff] }
   0xe   :  { %630 = vmatmul.mubr.msk.f32.vlgmr.msra.gmra.mrb[0].mxu0 %vm122_vm1, %v18_v26  ;;  %v729_v56 = vpack.c.bf16 %v104_v54, %v103_v53  ;;  %v105_v57 = vld [vmem:[%s1346_s1 + $0xd0] sm:$0xff]  ;;  %v106_v58 = vld [vmem:[%s1346_s1 + $0xd8] sm:$0xff]  ;;  %v107_v61 = vld [vmem:[%s1346_s1 + $0xe0] sm:$0xff] }
   0xf   :  { %632 = vmatprep.mubr.msk.f32.mxu0 %vm792_vm0, %v793_v6  ;;  %v42_v59 = vld [vmem:[%s1347_s0 + $0xd0] sm:$0xff]  ;;  %v732_v60 = vpack.c.bf16 %v106_v58, %v105_v57  ;;  %v108_v62 = vld [vmem:[%s1346_s1 + $0xe8] sm:$0xff]  ;;  %v110_v3 = vld [vmem:[%s1346_s1 + $0xf8] sm:$0xff] }
  0x10   :  { %703 = vmatpush1.bf16.msra.mxu1 %v702_v15  ;;  %v45_v63 = vld [vmem:[%s1347_s0 + $0xe8] sm:$0xff]  ;;  %v735_v1 = vpack.c.bf16 %v108_v62, %v107_v61  ;;  %v109_v2 = vld [vmem:[%s1346_s1 + $0xf0] sm:$0xff]  ;;  %v48_v4 = vld [vmem:[%s1347_s0 + $0x100] sm:$0xff] }
  0x11   :  { %704 = vmatprep.subr.bf16.mxu1 %v791_v0  ;;  %v738_v5 = vpack.c.bf16 %v110_v3, %v109_v2  ;;  %v51_v7 = vld [vmem:[%s1347_s0 + $0x118] sm:$0xff]  ;;  %v16_v8 = vld [vmem:[%s1347_s0] sm:$0xff]  ;;  %v57_v12 = vld [vmem:[%s1347_s0 + $0x148] sm:$0xff] }
  0x12   :  { %633 = vmatmul.mubr.msk.f32.gmra.mrb[2].mxu0 %vm122_vm1, %v21_v31  ;;  %v20_v9 = vld [vmem:[%s1347_s0 + $0x20] sm:$0xff]  ;;  %v19_v10 = vld [vmem:[%s1347_s0 + $0x18] sm:$0xff]  ;;  %v22_v13 = vld [vmem:[%s1347_s0 + $0x30] sm:$0xff] }
  0x13   :  { %635 = vmatprep.mubr.msk.f32.mxu0 %vm792_vm0, %v793_v6  ;;  %v23_v11 = vld [vmem:[%s1347_s0 + $0x38] sm:$0xff]  ;;  %v26_v14 = vld [vmem:[%s1347_s0 + $0x50] sm:$0xff]  ;;  %v60_v15 = vld [vmem:[%s1347_s0 + $0x160] sm:$0xff] }
  0x14   :  { %706 = vmatpush1.bf16.msra.mxu1 %v705_v23  ;;  %v25_v16 = vld [vmem:[%s1347_s0 + $0x48] sm:$0xff]  ;;  %v63_v18 = vld [vmem:[%s1347_s0 + $0x178] sm:$0xff]  ;;  %v28_v19 = vld [vmem:[%s1347_s0 + $0x60] sm:$0xff] }
  0x15   :  { %707 = vmatprep.subr.bf16.mxu1 %v791_v0  ;;  %v29_v17 = vld [vmem:[%s1347_s0 + $0x68] sm:$0xff]  ;;  %v32_v20 = vld [vmem:[%s1347_s0 + $0x80] sm:$0xff]  ;;  %v66_v21 = vld [vmem:[%s1347_s0 + $0x190] sm:$0xff] }
  0x16   :  { %636 = vmatmul.mubr.msk.f32.gmra.mrb[4].mxu0 %vm122_vm1, %v24_v35  ;;  %v31_v22 = vld [vmem:[%s1347_s0 + $0x78] sm:$0xff]  ;;  %v69_v24 = vld [vmem:[%s1347_s0 + $0x1a8] sm:$0xff]  ;;  %v34_v25 = vld [vmem:[%s1347_s0 + $0x90] sm:$0xff] }
  0x17   :  { %638 = vmatprep.mubr.msk.f32.mxu0 %vm792_vm0, %v793_v6  ;;  %v35_v23 = vld [vmem:[%s1347_s0 + $0x98] sm:$0xff]  ;;  %v38_v26 = vld [vmem:[%s1347_s0 + $0xb0] sm:$0xff]  ;;  %v37_v28 = vld [vmem:[%s1347_s0 + $0xa8] sm:$0xff] }
  0x18   :  { %709 = vmatpush1.bf16.msra.mxu1 %v708_v27  ;;  %v72_v27 = vld [vmem:[%s1347_s0 + $0x1c0] sm:$0xff]  ;;  %v41_v29 = vld [vmem:[%s1347_s0 + $0xc8] sm:$0xff]  ;;  %v75_v30 = vld [vmem:[%s1347_s0 + $0x1d8] sm:$0xff] }
  0x19   :  { %710 = vmatprep.subr.bf16.mxu1 %v791_v0  ;;  %v40_v31 = vld [vmem:[%s1347_s0 + $0xc0] sm:$0xff]  ;;  %v78_v33 = vld [vmem:[%s1347_s0 + $0x1f0] sm:$0x3]  ;;  %v43_v34 = vld [vmem:[%s1347_s0 + $0xd8] sm:$0xff] }
  0x1a   :  { %639 = vmatmul.mubr.msk.f32.gmra.mrb[6].mxu0 %vm122_vm1, %v27_v39  ;;  %v47_v35 = vld [vmem:[%s1347_s0 + $0xf8] sm:$0xff]  ;;  %v49_v37 = vld [vmem:[%s1347_s0 + $0x108] sm:$0xff]  ;;  %v52_v39 = vld [vmem:[%s1347_s0 + $0x120] sm:$0xff] }
  0x1b   :  { %641 = vmatprep.mubr.msk.f32.mxu0 %vm792_vm0, %v793_v6  ;;  %v53_v38 = vld [vmem:[%s1347_s0 + $0x128] sm:$0xff]  ;;  %v55_v41 = vld [vmem:[%s1347_s0 + $0x138] sm:$0xff] }
  0x1c   :  { %712 = vmatpush1.bf16.msra.mxu1 %v711_v32  ;;  %v44_v32 = vld [vmem:[%s1347_s0 + $0xe0] sm:$0xff]  ;;  %v59_v42 = vld [vmem:[%s1347_s0 + $0x158] sm:$0xff]  ;;  %v61_v45 = vld [vmem:[%s1347_s0 + $0x168] sm:$0xff] }
  0x1d   :  { %713 = vmatprep.subr.bf16.mxu1 %v791_v0  ;;  %v65_v46 = vld [vmem:[%s1347_s0 + $0x188] sm:$0xff]  ;;  %v67_v49 = vld [vmem:[%s1347_s0 + $0x198] sm:$0xff] }
  0x1e   :  { %642 = vmatmul.mubr.msk.f32.gmra.mrb[8].mxu0 %vm122_vm1, %v30_v43  ;;  %v58_v43 = vld [vmem:[%s1347_s0 + $0x150] sm:$0xff]  ;;  %v71_v50 = vld [vmem:[%s1347_s0 + $0x1b8] sm:$0xff]  ;;  %v73_v53 = vld [vmem:[%s1347_s0 + $0x1c8] sm:$0xff] }
  0x1f   :  { %644 = vmatprep.mubr.msk.f32.mxu0 %vm792_vm0, %v793_v6  ;;  %v77_v54 = vld [vmem:[%s1347_s0 + $0x1e8] sm:$0x3] }
  0x20   :  { %715 = vmatpush1.bf16.msra.mxu1 %v714_v36  ;;  %v50_v36 = vld [vmem:[%s1347_s0 + $0x110] sm:$0xff] }
  0x21   :  { %716 = vmatprep.subr.bf16.mxu1 %v791_v0 }
  0x22   :  { %645 = vmatmul.mubr.msk.f32.gmra.mrb[10].mxu0 %vm122_vm1, %v33_v47  ;;  %v64_v47 = vld [vmem:[%s1347_s0 + $0x180] sm:$0xff] }
  0x23   :  { %647 = vmatprep.mubr.msk.f32.mxu0 %vm792_vm0, %v793_v6 }
  0x24   :  { %718 = vmatpush1.bf16.msra.mxu1 %v717_v40  ;;  %v56_v40 = vld [vmem:[%s1347_s0 + $0x140] sm:$0xff] }
  0x25   :  { %719 = vmatprep.subr.bf16.mxu1 %v791_v0 }
  0x26   :  { %648 = vmatmul.mubr.msk.f32.gmra.mrb[12].mxu0 %vm122_vm1, %v36_v51  ;;  %v70_v51 = vld [vmem:[%s1347_s0 + $0x1b0] sm:$0xff] }
  0x27   :  { %650 = vmatprep.mubr.msk.f32.mxu0 %vm792_vm0, %v793_v6 }
  0x28   :  { %721 = vmatpush1.bf16.msra.mxu1 %v720_v44  ;;  %v62_v44 = vld [vmem:[%s1347_s0 + $0x170] sm:$0xff] }
  0x29   :  { %722 = vmatprep.subr.bf16.mxu1 %v791_v0 }
  0x2a   :  { %651 = vmatmul.mubr.msk.f32.gmra.mrb[14].mxu0 %vm122_vm1, %v39_v55  ;;  %v76_v55 = vld [vmem:[%s1347_s0 + $0x1e0] sm:$0x3] }
  0x2b   :  { %653 = vmatprep.mubr.msk.f32.mxu0 %vm792_vm0, %v793_v6 }
  0x2c   :  { %724 = vmatpush1.bf16.msra.mxu1 %v723_v48  ;;  %v68_v48 = vld [vmem:[%s1347_s0 + $0x1a0] sm:$0xff] }
  0x2d   :  { %725 = vmatprep.subr.bf16.mxu1 %v791_v0 }
  0x2e   :  { %654 = vmatmul.mubr.msk.f32.gmra.mrb[16].mxu0 %vm122_vm1, %v42_v59 }
  0x2f   :  { %656 = vmatprep.mubr.msk.f32.mxu0 %vm792_vm0, %v793_v6 }
  0x30   :  { %727 = vmatpush1.bf16.msra.mxu1 %v726_v52  ;;  %v74_v52 = vld [vmem:[%s1347_s0 + $0x1d0] sm:$0xff] }
  0x31   :  { %728 = vmatprep.subr.bf16.mxu1 %v791_v0 }
  0x32   :  { %657 = vmatmul.mubr.msk.f32.gmra.mrb[18].mxu0 %vm122_vm1, %v45_v63 }
  0x33   :  { %659 = vmatprep.mubr.msk.f32.mxu0 %vm792_vm0, %v793_v6 }
  0x34   :  { %730 = vmatpush1.bf16.msra.mxu1 %v729_v56 }
  0x35   :  { %731 = vmatprep.subr.bf16.mxu1 %v791_v0 }
  0x36   :  { %660 = vmatmul.mubr.msk.f32.gmra.mrb[20].mxu0 %vm122_vm1, %v48_v4 }
  0x37   :  { %662 = vmatprep.mubr.msk.f32.mxu0 %vm792_vm0, %v793_v6 }
  0x38   :  { %733 = vmatpush1.bf16.msra.mxu1 %v732_v60 }
  0x39   :  { %734 = vmatprep.subr.bf16.mxu1 %v791_v0 }
  0x3a   :  { %663 = vmatmul.mubr.msk.f32.gmra.mrb[22].mxu0 %vm122_vm1, %v51_v7 }
  0x3b   :  { %665 = vmatprep.mubr.msk.f32.mxu0 %vm792_vm0, %v793_v6 }
  0x3c   :  { %736 = vmatpush1.bf16.msra.mxu1 %v735_v1 }
  0x3d   :  { %737 = vmatprep.subr.bf16.mxu1 %v791_v0  ;;  %v54_v0 = vld [vmem:[%s1347_s0 + $0x130] sm:$0xff] }
  0x3e   :  { %666 = vmatmul.mubr.msk.f32.gmra.mrb[24].mxu0 %vm122_vm1, %v54_v0 }
  0x3f   :  { %668 = vmatprep.mubr.msk.f32.mxu0 %vm792_vm0, %v793_v6 }
  0x40   :  { %739 = vmatpush1.bf16.msra.mxu1 %v738_v5 }
  0x42   :  { %669 = vmatmul.mubr.msk.f32.gmra.mrb[26].mxu0 %vm122_vm1, %v57_v12 }
  0x43   :  { %251 = vmatmul.mubr.f32.vlgmr.msra.gmra.mrb[0].mxu1 %v16_v8  ;;  %671 = vmatprep.mubr.msk.f32.mxu0 %vm792_vm0, %v793_v6 }
  0x44   :  { %255 = vmatprep.mubr.f32.mxu1 %v20_v9 }
  0x46   :  { %672 = vmatmul.mubr.msk.f32.gmra.mrb[28].mxu0 %vm122_vm1, %v60_v15  ;;  %v1205_v15 = vld [vmem:[#allocation2] ss:$0 sm:$0xff] }
  0x47   :  { %256 = vmatmul.mubr.f32.gmra.mrb[2].mxu1 %v19_v10  ;;  %674 = vmatprep.mubr.msk.f32.mxu0 %vm792_vm0, %v793_v6 }
  0x48   :  { %260 = vmatprep.mubr.f32.mxu1 %v23_v11 }
  0x4a   :  { %675 = vmatmul.mubr.msk.f32.gmra.mrb[30].mxu0 %vm122_vm1, %v63_v18 }
  0x4b   :  { %261 = vmatmul.mubr.f32.gmra.mrb[4].mxu1 %v22_v13  ;;  %677 = vmatprep.mubr.msk.f32.mxu0 %vm792_vm0, %v793_v6 }
  0x4c   :  { %265 = vmatprep.mubr.f32.mxu1 %v26_v14 }
  0x4e   :  { %678 = vmatmul.mubr.msk.f32.gmra.mrb[32].mxu0 %vm122_vm1, %v66_v21 }
  0x4f   :  { %266 = vmatmul.mubr.f32.gmra.mrb[6].mxu1 %v25_v16  ;;  %680 = vmatprep.mubr.msk.f32.mxu0 %vm792_vm0, %v793_v6 }
  0x50   :  { %270 = vmatprep.mubr.f32.mxu1 %v29_v17 }
  0x52   :  { %681 = vmatmul.mubr.msk.f32.gmra.mrb[34].mxu0 %vm122_vm1, %v69_v24 }
  0x53   :  { %271 = vmatmul.mubr.f32.gmra.mrb[8].mxu1 %v28_v19  ;;  %683 = vmatprep.mubr.msk.f32.mxu0 %vm792_vm0, %v793_v6 }
  0x54   :  { %275 = vmatprep.mubr.f32.mxu1 %v32_v20 }
  0x56   :  { %684 = vmatmul.mubr.msk.f32.gmra.mrb[36].mxu0 %vm122_vm1, %v72_v27 }
  0x57   :  { %276 = vmatmul.mubr.f32.gmra.mrb[10].mxu1 %v31_v22  ;;  %686 = vmatprep.mubr.msk.f32.mxu0 %vm792_vm0, %v793_v6 }
  0x58   :  { %280 = vmatprep.mubr.f32.mxu1 %v35_v23 }
  0x5a   :  { %687 = vmatmul.mubr.msk.f32.gmra.mrb[38].mxu0 %vm122_vm1, %v75_v30 }
  0x5b   :  { %281 = vmatmul.mubr.f32.gmra.mrb[12].mxu1 %v34_v25  ;;  %689 = vmatprep.mubr.msk.f32.mxu0 %vm792_vm0, %v793_v6  ;;  %v46_v6 = vld [vmem:[%s1347_s0 + $0xf0] sm:$0xff] }
  0x5c   :  { %285 = vmatprep.mubr.f32.mxu1 %v38_v26 }
  0x5e   :  { %690 = vmatmul.mubr.msk.f32.gmra.mrb[40].mxu0 %vm122_vm1, %v78_v33 }
  0x5f   :  { %286 = vmatmul.mubr.f32.gmra.mrb[14].mxu1 %v37_v28 }
  0x60   :  { %290 = vmatprep.mubr.f32.mxu1 %v41_v29 }
  0x63   :  { %291 = vmatmul.mubr.f32.gmra.mrb[16].mxu1 %v40_v31 }
  0x64   :  { %295 = vmatprep.mubr.f32.mxu1 %v44_v32 }
  0x67   :  { %296 = vmatmul.mubr.f32.gmra.mrb[18].mxu1 %v43_v34 }
  0x68   :  { %300 = vmatprep.mubr.f32.mxu1 %v47_v35 }
  0x6b   :  { %301 = vmatmul.mubr.f32.gmra.mrb[20].mxu1 %v46_v6 }
  0x6c   :  { %305 = vmatprep.mubr.f32.mxu1 %v50_v36 }
  0x6f   :  { %306 = vmatmul.mubr.f32.gmra.mrb[22].mxu1 %v49_v37 }
  0x70   :  { %310 = vmatprep.mubr.f32.mxu1 %v53_v38 }
  0x73   :  { %311 = vmatmul.mubr.f32.gmra.mrb[24].mxu1 %v52_v39 }
  0x74   :  { %315 = vmatprep.mubr.f32.mxu1 %v56_v40 }
  0x77   :  { %316 = vmatmul.mubr.f32.gmra.mrb[26].mxu1 %v55_v41 }
  0x78   :  { %320 = vmatprep.mubr.f32.mxu1 %v59_v42 }
  0x7b   :  { %321 = vmatmul.mubr.f32.gmra.mrb[28].mxu1 %v58_v43 }
  0x7c   :  { %325 = vmatprep.mubr.f32.mxu1 %v62_v44 }
  0x7f   :  { %326 = vmatmul.mubr.f32.gmra.mrb[30].mxu1 %v61_v45 }
  0x80   :  { %330 = vmatprep.mubr.f32.mxu1 %v65_v46 }
  0x83   :  { %331 = vmatmul.mubr.f32.gmra.mrb[32].mxu1 %v64_v47 }
  0x84   :  { %335 = vmatprep.mubr.f32.mxu1 %v68_v48 }
  0x87   :  { %336 = vmatmul.mubr.f32.gmra.mrb[34].mxu1 %v67_v49 }
  0x88   :  { %340 = vmatprep.mubr.f32.mxu1 %v71_v50 }
  0x8b   :  { %341 = vmatmul.mubr.f32.gmra.mrb[36].mxu1 %v70_v51 }
  0x8c   :  { %345 = vmatprep.mubr.f32.mxu1 %v74_v52 }
  0x8f   :  { %346 = vmatmul.mubr.f32.gmra.mrb[38].mxu1 %v73_v53 }
  0x90   :  { %350 = vmatprep.mubr.f32.mxu1 %v77_v54 }
  0x93   :  { %351 = vmatmul.mubr.f32.gmra.mrb[40].mxu1 %v76_v55 }
  0xe1   :  { %v422_v56 = vpop.f32.mrb[0].mxu0 }
  0xe2   :  { %v631_v57 = vpop.f32.mrb[1].mxu0 }
  0xe5   :  { %v427_v58 = vpop.f32.mrb[2].mxu0 }
  0xe6   :  { %v634_v59 = vpop.f32.mrb[3].mxu0 }
  0xe9   :  { %v432_v60 = vpop.f32.mrb[4].mxu0 }
  0xea   :  { %v637_v61 = vpop.f32.mrb[5].mxu0 }
  0xed   :  { %v437_v62 = vpop.f32.mrb[6].mxu0 }
  0xee   :  { %v640_v63 = vpop.f32.mrb[7].mxu0 }
  0xf1   :  { %v442_v1 = vpop.f32.mrb[8].mxu0 }
  0xf2   :  { %v643_v2 = vpop.f32.mrb[9].mxu0 }
  0xf5   :  { %v447_v3 = vpop.f32.mrb[10].mxu0 }
  0xf6   :  { %v646_v4 = vpop.f32.mrb[11].mxu0 }
  0xf9   :  { %v1195_v5 = vpop.f32.mrb[12].mxu0 }
  0xfa   :  { %v649_v7 = vpop.f32.mrb[13].mxu0 }
  0xfd   :  { %v1197_v8 = vpop.f32.mrb[14].mxu0 }
  0xfe   :  { %v652_v9 = vpop.f32.mrb[15].mxu0 }
 0x101   :  { %v1199_v0 = vpop.f32.mrb[16].mxu0 }
 0x102   :  { %v655_v10 = vpop.f32.mrb[17].mxu0 }
 0x105   :  { %v1201_v11 = vpop.f32.mrb[18].mxu0 }
 0x106   :  { %v658_v12 = vpop.f32.mrb[19].mxu0 }
 0x109   :  { %v1203_v13 = vpop.f32.mrb[20].mxu0 }
 0x10a   :  { %v661_v14 = vpop.f32.mrb[21].mxu0 }
 0x10d   :  { %v1207_v16 = vpop.f32.mrb[22].mxu0 }
 0x10e   :  { %v664_v17 = vpop.f32.mrb[23].mxu0 }
 0x111   :  { %v1210_v21 = vpop.f32.mrb[24].mxu0 }
 0x112   :  { %v667_v23 = vpop.f32.mrb[25].mxu0 }
 0x115   :  { %v1213_v28 = vpop.f32.mrb[26].mxu0 }
 0x116   :  { %v252_v18 = vpop.f32.mrb[0].mxu1  ;;  %v670_v30 = vpop.f32.mrb[27].mxu0 }
 0x117   :  { %v253_v19 = vadd.f32 %v1205_v15, %v252_v18  ;;  %v254_v20 = vpop.f32.mrb[1].mxu1 }
 0x119   :  { %v423_v22 = vadd.f32 %v422_v56, %v253_v19  ;;  %v1220_v35 = vpop.f32.mrb[28].mxu0 }
 0x11a   :  { %v257_v24 = vpop.f32.mrb[2].mxu1  ;;  %v673_v36 = vpop.f32.mrb[29].mxu0 }
 0x11b   :  { %v526_v25 = vmax.f32 %v423_v22, 0.0  ;;  %v258_v26 = vadd.f32 %v1205_v15, %v257_v24  ;;  %v259_v27 = vpop.f32.mrb[3].mxu1 }
 0x11d   :  { %548 = vst.msk [vmem:[%s1349_s3] sm:$0xff] %vm547_vm2, %v526_v25  ;;  %v428_v29 = vadd.f32 %v427_v58, %v258_v26  ;;  %v1227_v41 = vpop.f32.mrb[30].mxu0 }
 0x11e   :  { %v262_v31 = vpop.f32.mrb[4].mxu1  ;;  %v676_v43 = vpop.f32.mrb[31].mxu0 }
 0x11f   :  { %v527_v32 = vmax.f32 %v428_v29, 0.0  ;;  %v263_v33 = vadd.f32 %v1205_v15, %v262_v31  ;;  %v264_v34 = vpop.f32.mrb[5].mxu1 }
 0x121   :  { %549 = vst.msk [vmem:[%s1349_s3 + $0x8] sm:$0xff] %vm547_vm2, %v527_v32  ;;  %v433_v6 = vadd.f32 %v432_v60, %v263_v33  ;;  %v1234_v48 = vpop.f32.mrb[32].mxu0 }
 0x122   :  { %v267_v37 = vpop.f32.mrb[6].mxu1  ;;  %v679_v50 = vpop.f32.mrb[33].mxu0 }
 0x123   :  { %v528_v38 = vmax.f32 %v433_v6, 0.0  ;;  %v268_v39 = vadd.f32 %v1205_v15, %v267_v37  ;;  %v269_v40 = vpop.f32.mrb[7].mxu1 }
 0x125   :  { %550 = vst.msk [vmem:[%s1349_s3 + $0x10] sm:$0xff] %vm547_vm2, %v528_v38  ;;  %v438_v42 = vadd.f32 %v437_v62, %v268_v39  ;;  %v1241_v55 = vpop.f32.mrb[34].mxu0 }
 0x126   :  { %v272_v44 = vpop.f32.mrb[8].mxu1  ;;  %v682_v57 = vpop.f32.mrb[35].mxu0 }
 0x127   :  { %v529_v45 = vmax.f32 %v438_v42, 0.0  ;;  %v273_v46 = vadd.f32 %v1205_v15, %v272_v44  ;;  %v274_v47 = vpop.f32.mrb[9].mxu1 }
 0x129   :  { %551 = vst.msk [vmem:[%s1349_s3 + $0x18] sm:$0xff] %vm547_vm2, %v529_v45  ;;  %v443_v49 = vadd.f32 %v442_v1, %v273_v46  ;;  %v1248_v62 = vpop.f32.mrb[36].mxu0 }
 0x12a   :  { %v277_v51 = vpop.f32.mrb[10].mxu1  ;;  %v685_v1 = vpop.f32.mrb[37].mxu0 }
 0x12b   :  { %v530_v52 = vmax.f32 %v443_v49, 0.0  ;;  %v278_v53 = vadd.f32 %v1205_v15, %v277_v51  ;;  %v279_v54 = vpop.f32.mrb[11].mxu1 }
 0x12d   :  { %552 = vst.msk [vmem:[%s1349_s3 + $0x20] sm:$0xff] %vm547_vm2, %v530_v52  ;;  %v448_v56 = vadd.f32 %v447_v3, %v278_v53  ;;  %v1256_v9 = vpop.f32.mrb[38].mxu0 }
 0x12e   :  { %v282_v58 = vpop.f32.mrb[12].mxu1  ;;  %v688_v12 = vpop.f32.mrb[39].mxu0 }
 0x12f   :  { %v531_v59 = vmax.f32 %v448_v56, 0.0  ;;  %v283_v60 = vadd.f32 %v1205_v15, %v282_v58  ;;  %v284_v61 = vpop.f32.mrb[13].mxu1 }
 0x131   :  { %553 = vst.msk [vmem:[%s1349_s3 + $0x28] sm:$0xff] %vm547_vm2, %v531_v59  ;;  %v453_v63 = vadd.f32 %v1195_v5, %v283_v60  ;;  %v1264_v19 = vpop.f32.mrb[40].mxu0 }
 0x132   :  { %v287_v2 = vpop.f32.mrb[14].mxu1  ;;  %v691_v22 = vpop.f32.mrb[41].mxu0 }
 0x133   :  { %v532_v4 = vmax.f32 %v453_v63, 0.0  ;;  %v288_v3 = vadd.f32 %v1205_v15, %v287_v2  ;;  %v289_v7 = vpop.f32.mrb[15].mxu1 }
 0x135   :  { %554 = vst.msk [vmem:[%s1349_s3 + $0x30] sm:$0xff] %vm547_vm2, %v532_v4  ;;  %v458_v10 = vadd.f32 %v1197_v8, %v288_v3 }
 0x136   :  { %v292_v14 = vpop.f32.mrb[16].mxu1 }
 0x137   :  { %v533_v17 = vmax.f32 %v458_v10, 0.0  ;;  %v293_v5 = vadd.f32 %v1205_v15, %v292_v14  ;;  %v294_v18 = vpop.f32.mrb[17].mxu1 }
 0x139   :  { %555 = vst.msk [vmem:[%s1349_s3 + $0x38] sm:$0xff] %vm547_vm2, %v533_v17  ;;  %v463_v20 = vadd.f32 %v1199_v0, %v293_v5 }
 0x13a   :  { %v297_v23 = vpop.f32.mrb[18].mxu1 }
 0x13b   :  { %v534_v24 = vmax.f32 %v463_v20, 0.0  ;;  %v298_v8 = vadd.f32 %v1205_v15, %v297_v23  ;;  %v299_v25 = vpop.f32.mrb[19].mxu1 }
 0x13d   :  { %556 = vst.msk [vmem:[%s1349_s3 + $0x40] sm:$0xff] %vm547_vm2, %v534_v24  ;;  %v468_v26 = vadd.f32 %v1201_v11, %v298_v8 }
 0x13e   :  { %v302_v27 = vpop.f32.mrb[20].mxu1 }
 0x13f   :  { %v535_v29 = vmax.f32 %v468_v26, 0.0  ;;  %v303_v30 = vadd.f32 %v1205_v15, %v302_v27  ;;  %v304_v31 = vpop.f32.mrb[21].mxu1 }
 0x141   :  { %557 = vst.msk [vmem:[%s1349_s3 + $0x48] sm:$0xff] %vm547_vm2, %v535_v29  ;;  %v473_v0 = vadd.f32 %v1203_v13, %v303_v30 }
 0x142   :  { %v307_v32 = vpop.f32.mrb[22].mxu1 }
 0x143   :  { %v536_v33 = vmax.f32 %v473_v0, 0.0  ;;  %v308_v34 = vadd.f32 %v1205_v15, %v307_v32  ;;  %v309_v6 = vpop.f32.mrb[23].mxu1 }
 0x145   :  { %558 = vst.msk [vmem:[%s1349_s3 + $0x50] sm:$0xff] %vm547_vm2, %v536_v33  ;;  %v478_v11 = vadd.f32 %v1207_v16, %v308_v34 }
 0x146   :  { %v312_v36 = vpop.f32.mrb[24].mxu1 }
 0x147   :  { %v537_v37 = vmax.f32 %v478_v11, 0.0  ;;  %v313_v38 = vadd.f32 %v1205_v15, %v312_v36  ;;  %v314_v39 = vpop.f32.mrb[25].mxu1 }
 0x149   :  { %559 = vst.msk [vmem:[%s1349_s3 + $0x58] sm:$0xff] %vm547_vm2, %v537_v37  ;;  %v483_v13 = vadd.f32 %v1210_v21, %v313_v38 }
 0x14a   :  { %v317_v40 = vpop.f32.mrb[26].mxu1 }
 0x14b   :  { %v538_v42 = vmax.f32 %v483_v13, 0.0  ;;  %v318_v43 = vadd.f32 %v1205_v15, %v317_v40  ;;  %v319_v44 = vpop.f32.mrb[27].mxu1 }
 0x14d   :  { %560 = vst.msk [vmem:[%s1349_s3 + $0x60] sm:$0xff] %vm547_vm2, %v538_v42  ;;  %v488_v16 = vadd.f32 %v1213_v28, %v318_v43 }
 0x14e   :  { %v322_v45 = vpop.f32.mrb[28].mxu1 }
 0x14f   :  { %v539_v46 = vmax.f32 %v488_v16, 0.0  ;;  %v323_v47 = vadd.f32 %v1205_v15, %v322_v45  ;;  %v324_v49 = vpop.f32.mrb[29].mxu1 }
 0x151   :  { %561 = vst.msk [vmem:[%s1349_s3 + $0x68] sm:$0xff] %vm547_vm2, %v539_v46  ;;  %v493_v21 = vadd.f32 %v1220_v35, %v323_v47 }
 0x152   :  { %v327_v50 = vpop.f32.mrb[30].mxu1 }
 0x153   :  { %v540_v51 = vmax.f32 %v493_v21, 0.0  ;;  %v328_v52 = vadd.f32 %v1205_v15, %v327_v50  ;;  %v329_v53 = vpop.f32.mrb[31].mxu1 }
 0x155   :  { %562 = vst.msk [vmem:[%s1349_s3 + $0x70] sm:$0xff] %vm547_vm2, %v540_v51  ;;  %v498_v28 = vadd.f32 %v1227_v41, %v328_v52 }
 0x156   :  { %v332_v54 = vpop.f32.mrb[32].mxu1 }
 0x157   :  { %v541_v56 = vmax.f32 %v498_v28, 0.0  ;;  %v333_v57 = vadd.f32 %v1205_v15, %v332_v54  ;;  %v334_v58 = vpop.f32.mrb[33].mxu1 }
 0x159   :  { %563 = vst.msk [vmem:[%s1349_s3 + $0x78] sm:$0xff] %vm547_vm2, %v541_v56  ;;  %v503_v35 = vadd.f32 %v1234_v48, %v333_v57 }
 0x15a   :  { %v337_v59 = vpop.f32.mrb[34].mxu1 }
 0x15b   :  { %v542_v60 = vmax.f32 %v503_v35, 0.0  ;;  %v338_v61 = vadd.f32 %v1205_v15, %v337_v59  ;;  %v339_v63 = vpop.f32.mrb[35].mxu1 }
 0x15d   :  { %564 = vst.msk [vmem:[%s1349_s3 + $0x80] sm:$0xff] %vm547_vm2, %v542_v60  ;;  %v508_v41 = vadd.f32 %v1241_v55, %v338_v61 }
 0x15e   :  { %v342_v1 = vpop.f32.mrb[36].mxu1 }
 0x15f   :  { %v543_v2 = vmax.f32 %v508_v41, 0.0  ;;  %v343_v4 = vadd.f32 %v1205_v15, %v342_v1  ;;  %v344_v3 = vpop.f32.mrb[37].mxu1 }
 0x161   :  { %565 = vst.msk [vmem:[%s1349_s3 + $0x88] sm:$0xff] %vm547_vm2, %v543_v2  ;;  %v513_v48 = vadd.f32 %v1248_v62, %v343_v4 }
 0x162   :  { %v347_v7 = vpop.f32.mrb[38].mxu1 }
 0x163   :  { %v544_v10 = vmax.f32 %v513_v48, 0.0  ;;  %v348_v12 = vadd.f32 %v1205_v15, %v347_v7  ;;  %v349_v14 = vpop.f32.mrb[39].mxu1 }
 0x165   :  { %566 = vst.msk [vmem:[%s1349_s3 + $0x90] sm:$0xff] %vm547_vm2, %v544_v10  ;;  %v518_v55 = vadd.f32 %v1256_v9, %v348_v12 }
 0x166   :  { %v352_v17 = vpop.f32.mrb[40].mxu1 }
 0x167   :  { %v545_v5 = vmax.f32 %v518_v55, 0.0  ;;  %v353_v18 = vadd.f32 %v1205_v15, %v352_v17  ;;  %v354_v20 = vpop.f32.mrb[41].mxu1 }
 0x169   :  { %567 = vst.msk [vmem:[%s1349_s3 + $0x98] sm:$0xff] %vm547_vm2, %v545_v5  ;;  %v523_v62 = vadd.f32 %v1264_v19, %v353_v18 }
 0x16b   :  { %v546_v22 = vmax.f32 %v523_v62, 0.0 }
 0x16d   :  { %569 = vst.msk [vmem:[%s1349_s3 + $0xa0] sm:$0x3] %vm568_vm3, %v546_v22 }

// kernel: sym_image_critic_forward.9
= control target key start
LH: loop header
LB: loop body
LE: loop exit
PB: predicated region body
PF: predicated region fallthrough
CT: control target
= control target key end

     0   :  { %vm71_vm0 = vcmask 1041408   ;;  %v1174_v1 = vmov 0   ;;  %vm67_vm1 = vcmask 31744   ;;  %vm178_vm2 = vcmask 1040384   ;;  %s1542_s3 = inlined_call_operand.vmem [shape: bf16[4,256], index: 3, kind: input, shape index: {}]   ;;  %s1543_s2 = inlined_call_operand.vmem [shape: bf16[81,256], index: 2, kind: input, shape index: {}]   ;;  %s1544_s1 = inlined_call_operand.vmem [shape: f32[2,4], index: 1, kind: input, shape index: {}]   ;;  %s1545_s5 = inlined_call_operand.vmem [shape: bf16[256,256], index: 5, kind: input, shape index: {}]   ;;  %s1546_s0 = inlined_call_operand.vmem [shape: f32[2,81], index: 0, kind: input, shape index: {}]   ;;  %s1547_s7 = inlined_call_operand.vmem [shape: bf16[256,256], index: 7, kind: input, shape index: {}]   ;;  %s1548_s4 = inlined_call_operand.vmem [shape: f32[1,256], index: 4, kind: input, shape index: {}]   ;;  %s1549_s9 = inlined_call_operand.vmem [shape: bf16[256,1], index: 9, kind: input, shape index: {}]   ;;  %s1550_s6 = inlined_call_operand.vmem [shape: f32[1,256], index: 6, kind: input, shape index: {}]   ;;  %s1551_s8 = inlined_call_operand.vmem [shape: f32[1,256], index: 8, kind: input, shape index: {}]   ;;  %s1552_s10 = inlined_call_operand.<no memory space> [shape: f32[1,1], index: 10, kind: input, shape index: {}]   ;;  %s1553_s11 = inlined_call_operand.vmem [shape: f32[2,1], index: 11, kind: output, shape index: {}]  }
   0x1   :  { %v925_v0 = vld.sshfl [vmem:[%s1542_s3] sm:$0x33 pattern:$0x76325410]  ;;  %110 = vmatprep.mubr.bf16.mxu1 %v1174_v1  ;;  %v1048_v6 = vld [vmem:[%s1543_s2 + $0x4] ss:$8 sps:$4 sm:$0xff]  }
   0x2   :  { %v66_v2 = vcombine.high %v925_v0, %v925_v0  ;;  %v73_v3 = vsel %vm71_vm0, %v925_v0, 0  ;;  %v43_v4 = vld [vmem:[%s1544_s1] sm:$0x3]  ;;  %v1051_v9 = vld [vmem:[%s1543_s2 + $0x14] ss:$8 sps:$4 sm:$0xff]   ;;  %v180_v25 = vsel %vm178_vm2, 65535, %v1174_v1 }
   0x3   :  { %v44_v5 = vmul.f32 0.5, %v43_v4  ;;  %v1046_v8 = vld [vmem:[%s1543_s2] ss:$8 sps:$4 sm:$0xff]   ;;  %v1049_v10 = vld [vmem:[%s1543_s2 + $0x10] ss:$8 sps:$4 sm:$0xff]   ;;  %vm174_vm3 = vcmask 662528  }
   0x4   :  { %926 = vmatprep.subr.msk.bf16.mxu1 %vm71_vm0, %v66_v2  ;;  %v1054_v11 = vld [vmem:[%s1543_s2 + $0x24] ss:$8 sps:$4 sm:$0xff]   ;;  %v1064_v13 = vld [vmem:[%s1545_s5] ss:$8 sps:$4 sm:$0xff]   ;;  %v1065_v14 = vld [vmem:[%s1545_s5 + $0x14] ss:$8 sps:$4 sm:$0xff]  }
   0x5   :  { %79 = vmatpush1.bf16.msra.mxu1 %v73_v3  ;;  %v45_v7 = vpack.c.bf16 %v44_v5, %v44_v5  ;;  %v1062_v12 = vld [vmem:[%s1545_s5 + $0x4] ss:$8 sps:$4 sm:$0xff]   ;;  %v1052_v15 = vld [vmem:[%s1543_s2 + $0x20] ss:$8 sps:$4 sm:$0xff]   ;;  %v1067_v16 = vld [vmem:[%s1545_s5 + $0x10] ss:$8 sps:$4 sm:$0xff]  }
   0x6   :  { %187 = vmatprep.subr.bf16.mxu1 %v1048_v6  ;;  %450 = vmatprep.subr.bf16.mxu0 %v1062_v12  ;;  %v1057_v17 = vld [vmem:[%s1543_s2 + $0x34] ss:$8 sps:$4 sm:$0xff]   ;;  %v1068_v18 = vld [vmem:[%s1545_s5 + $0x24] ss:$8 sps:$4 sm:$0xff]   ;;  %v1055_v20 = vld [vmem:[%s1543_s2 + $0x30] ss:$8 sps:$4 sm:$0xff]  }
   0x7   :  { %451 = vmatpush1.bf16.msra.mxu0 %v1064_v13  ;;  %v56_v19 = vld [vmem:[%s1543_s2 + $0x50] sm:$0x11]  ;;  %v1070_v21 = vld [vmem:[%s1545_s5 + $0x20] ss:$8 sps:$4 sm:$0xff]   ;;  %v1060_v22 = vld [vmem:[%s1543_s2 + $0x44] ss:$8 sps:$4 sm:$0xff]  }
   0x8   :  { %927 = vmatmul.mubr.msk.bf16.vlgmr.msra.gmra.mrb[0].mxu1 %vm67_vm1, %v45_v7  ;;  %452 = vmatprep.subr.bf16.mxu0 %v1065_v14  ;;  %v939_v23 = vcombine.high %v56_v19, %v56_v19  ;;  %v1071_v24 = vld [vmem:[%s1545_s5 + $0x34] ss:$8 sps:$4 sm:$0xff]   ;;  %v1058_v26 = vld [vmem:[%s1543_s2 + $0x40] ss:$8 sps:$4 sm:$0xff]   ;;  %v1073_v27 = vld [vmem:[%s1545_s5 + $0x30] ss:$8 sps:$4 sm:$0xff]   ;;  %v938_v29 = vcombine.low %v56_v19, %v56_v19 }
   0x9   :  { %188 = vmatpush1.bf16.msra.mxu1 %v1046_v8  ;;  %219 = vmatprep.mubr.bf16.mxu1 %v1174_v1  ;;  %v1074_v28 = vld [vmem:[%s1545_s5 + $0x44] ss:$8 sps:$4 sm:$0xff]   ;;  %v41_v32 = vld [vmem:[%s1546_s0] sm:$0x3]  ;;  %v1077_v34 = vld [vmem:[%s1545_s5 + $0x54] ss:$8 sps:$4 sm:$0xff]  }
   0xa   :  { %189 = vmatprep.subr.bf16.mxu1 %v1051_v9  ;;  %v185_v30 = vand.u32 %v939_v23, %v180_v25  ;;  %v182_v31 = vand.u32 %v938_v29, %v180_v25  ;;  %v1076_v33 = vld [vmem:[%s1545_s5 + $0x40] ss:$8 sps:$4 sm:$0xff]   ;;  %v42_v35 = vpack.c.bf16 %v41_v32, %v41_v32  ;;  %v1079_v36 = vld [vmem:[%s1545_s5 + $0x50] ss:$8 sps:$4 sm:$0xff]   ;;  %v1080_v37 = vld [vmem:[%s1545_s5 + $0x64] ss:$8 sps:$4 sm:$0xff]   ;;  %v230_v25 = vlaneseq }
   0xb   :  { %453 = vmatpush1.bf16.msra.mxu0 %v1067_v16  ;;  %v1082_v38 = vld [vmem:[%s1545_s5 + $0x60] ss:$8 sps:$4 sm:$0xff]   ;;  %v1083_v39 = vld [vmem:[%s1545_s5 + $0x74] ss:$8 sps:$4 sm:$0xff]   ;;  %v1085_v40 = vld [vmem:[%s1545_s5 + $0x70] ss:$8 sps:$4 sm:$0xff]  }
   0xc   :  { %454 = vmatprep.subr.bf16.mxu0 %v1068_v18  ;;  %v1086_v41 = vld [vmem:[%s1545_s5 + $0x84] ss:$8 sps:$4 sm:$0xff]   ;;  %v1088_v42 = vld [vmem:[%s1545_s5 + $0x80] ss:$8 sps:$4 sm:$0xff]   ;;  %v1089_v43 = vld [vmem:[%s1545_s5 + $0x94] ss:$8 sps:$4 sm:$0xff]  }
   0xd   :  { %190 = vmatpush1.bf16.msra.mxu1 %v1049_v10  ;;  %v1091_v44 = vld [vmem:[%s1545_s5 + $0x90] ss:$8 sps:$4 sm:$0xff]   ;;  %v1092_v45 = vld [vmem:[%s1545_s5 + $0xa4] ss:$8 sps:$4 sm:$0xff]   ;;  %v1094_v46 = vld [vmem:[%s1545_s5 + $0xa0] ss:$8 sps:$4 sm:$0xff]  }
   0xe   :  { %191 = vmatprep.subr.bf16.mxu1 %v1054_v11  ;;  %v1095_v47 = vld [vmem:[%s1545_s5 + $0xb4] ss:$8 sps:$4 sm:$0xff]   ;;  %v1097_v48 = vld [vmem:[%s1545_s5 + $0xb0] ss:$8 sps:$4 sm:$0xff]   ;;  %v1098_v49 = vld [vmem:[%s1545_s5 + $0xc4] ss:$8 sps:$4 sm:$0xff]  }
   0xf   :  { %455 = vmatpush1.bf16.msra.mxu0 %v1070_v21  ;;  %v1100_v50 = vld [vmem:[%s1545_s5 + $0xc0] ss:$8 sps:$4 sm:$0xff]   ;;  %v1101_v51 = vld [vmem:[%s1545_s5 + $0xd4] ss:$8 sps:$4 sm:$0xff]   ;;  %v1103_v52 = vld [vmem:[%s1545_s5 + $0xd0] ss:$8 sps:$4 sm:$0xff]  }
  0x10   :  { %456 = vmatprep.subr.bf16.mxu0 %v1071_v24  ;;  %v1104_v53 = vld [vmem:[%s1545_s5 + $0xe4] ss:$8 sps:$4 sm:$0xff]   ;;  %v1106_v54 = vld [vmem:[%s1545_s5 + $0xe0] ss:$8 sps:$4 sm:$0xff]   ;;  %v1107_v55 = vld [vmem:[%s1545_s5 + $0xf4] ss:$8 sps:$4 sm:$0xff]  }
  0x11   :  { %192 = vmatpush1.bf16.msra.mxu1 %v1052_v15  ;;  %v1109_v56 = vld [vmem:[%s1545_s5 + $0xf0] ss:$8 sps:$4 sm:$0xff]   ;;  %v1110_v57 = vld [vmem:[%s1547_s7] ss:$8 sps:$4 sm:$0xff]   ;;  %v1112_v58 = vld [vmem:[%s1547_s7 + $0x4] ss:$8 sps:$4 sm:$0xff]  }
  0x12   :  { %193 = vmatprep.subr.bf16.mxu1 %v1057_v17  ;;  %v1115_v59 = vld [vmem:[%s1547_s7 + $0x14] ss:$8 sps:$4 sm:$0xff]   ;;  %v1113_v60 = vld [vmem:[%s1547_s7 + $0x10] ss:$8 sps:$4 sm:$0xff]   ;;  %v1118_v61 = vld [vmem:[%s1547_s7 + $0x24] ss:$8 sps:$4 sm:$0xff]  }
  0x13   :  { %457 = vmatpush1.bf16.msra.mxu0 %v1073_v27  ;;  %v1116_v62 = vld [vmem:[%s1547_s7 + $0x20] ss:$8 sps:$4 sm:$0xff]   ;;  %v1121_v63 = vld [vmem:[%s1547_s7 + $0x34] ss:$8 sps:$4 sm:$0xff]   ;;  %v1119_v0 = vld [vmem:[%s1547_s7 + $0x30] ss:$8 sps:$4 sm:$0xff]  }
  0x14   :  { %458 = vmatprep.subr.bf16.mxu0 %v1074_v28  ;;  %v1124_v1 = vld [vmem:[%s1547_s7 + $0x44] ss:$8 sps:$4 sm:$0xff]   ;;  %v1122_v2 = vld [vmem:[%s1547_s7 + $0x40] ss:$8 sps:$4 sm:$0xff]   ;;  %v1127_v3 = vld [vmem:[%s1547_s7 + $0x54] ss:$8 sps:$4 sm:$0xff]  }
  0x15   :  { %194 = vmatpush1.bf16.msra.mxu1 %v1055_v20  ;;  %v1125_v4 = vld [vmem:[%s1547_s7 + $0x50] ss:$8 sps:$4 sm:$0xff]   ;;  %v1130_v5 = vld [vmem:[%s1547_s7 + $0x64] ss:$8 sps:$4 sm:$0xff]   ;;  %v1128_v6 = vld [vmem:[%s1547_s7 + $0x60] ss:$8 sps:$4 sm:$0xff]  }
  0x16   :  { %195 = vmatprep.subr.bf16.mxu1 %v1060_v22  ;;  %v1133_v7 = vld [vmem:[%s1547_s7 + $0x74] ss:$8 sps:$4 sm:$0xff]   ;;  %v1131_v8 = vld [vmem:[%s1547_s7 + $0x70] ss:$8 sps:$4 sm:$0xff]   ;;  %v1136_v9 = vld [vmem:[%s1547_s7 + $0x84] ss:$8 sps:$4 sm:$0xff]  }
  0x17   :  { %459 = vmatpush1.bf16.msra.mxu0 %v1076_v33  ;;  %v1134_v10 = vld [vmem:[%s1547_s7 + $0x80] ss:$8 sps:$4 sm:$0xff]   ;;  %v1139_v11 = vld [vmem:[%s1547_s7 + $0x94] ss:$8 sps:$4 sm:$0xff]   ;;  %v1137_v12 = vld [vmem:[%s1547_s7 + $0x90] ss:$8 sps:$4 sm:$0xff]  }
  0x18   :  { %460 = vmatprep.subr.bf16.mxu0 %v1077_v34  ;;  %v1142_v13 = vld [vmem:[%s1547_s7 + $0xa4] ss:$8 sps:$4 sm:$0xff]   ;;  %v1140_v14 = vld [vmem:[%s1547_s7 + $0xa0] ss:$8 sps:$4 sm:$0xff]   ;;  %v1145_v15 = vld [vmem:[%s1547_s7 + $0xb4] ss:$8 sps:$4 sm:$0xff]  }
  0x19   :  { %196 = vmatpush1.bf16.msra.mxu1 %v1058_v26  ;;  %v1143_v16 = vld [vmem:[%s1547_s7 + $0xb0] ss:$8 sps:$4 sm:$0xff]   ;;  %v1148_v17 = vld [vmem:[%s1547_s7 + $0xc4] ss:$8 sps:$4 sm:$0xff]   ;;  %v1146_v18 = vld [vmem:[%s1547_s7 + $0xc0] ss:$8 sps:$4 sm:$0xff]  }
  0x1a   :  { %197 = vmatprep.subr.bf16.mxu1 %v185_v30  ;;  %v1151_v19 = vld [vmem:[%s1547_s7 + $0xd4] ss:$8 sps:$4 sm:$0xff]   ;;  %v1149_v20 = vld [vmem:[%s1547_s7 + $0xd0] ss:$8 sps:$4 sm:$0xff]   ;;  %v231_v26 = vshrl.u32 %v230_v25, 7  ;;  %vm919_vm4 = vcmask 1024  }
  0x1b   :  { %461 = vmatpush1.bf16.msra.mxu0 %v1079_v36  ;;  %v228_v28 = vld [vmem:[%s1548_s4] sm:$0x3] }
  0x1c   :  { %462 = vmatprep.subr.bf16.mxu0 %v1080_v37  ;;  %v1457_v27 = vsub.s32 0, %v231_v26  ;;  %v1462_v29 = vsub.s32 1, %v231_v26  ;;  %v16_v26 = vstv %s1552_s10 }
  0x1d   :  { %198 = vmatpush1.bf16.msra.mxu1 %v182_v31  ;;  %17 = vst [vmem:[#allocation2] sm:$0x1] %v16_v26 }
  0x1e   :  { %699 = vmatprep.subr.bf16.mxu1 %v1112_v58  ;;  %v233_v30 = vrot.slane %v228_v28, %v1457_v27  ;;  %v237_v32 = vrot.slane %v228_v28, %v1462_v29  ;;  %v1168_v58 = vld [vmem:[%s1549_s9 + $0x68] sm:$0xff]  }
  0x1f   :  { %463 = vmatpush1.bf16.msra.mxu0 %v1082_v38 }
  0x20   :  { %940 = vmatmul.mubr.msk.bf16.vlgmr.msra.gmra.mrb[4].mxu1 %vm174_vm3, %v42_v35  ;;  %464 = vmatprep.subr.bf16.mxu0 %v1083_v39 }
  0x21   :  { %700 = vmatpush1.bf16.msra.mxu1 %v1110_v57  ;;  %v1167_v57 = vld [vmem:[%s1549_s9 + $0x20] sm:$0xff]  }
  0x22   :  { %701 = vmatprep.subr.bf16.mxu1 %v1115_v59  ;;  %v1169_v59 = vld [vmem:[%s1549_s9 + $0x28] sm:$0xff]  }
  0x23   :  { %465 = vmatpush1.bf16.msra.mxu0 %v1085_v40 }
  0x24   :  { %466 = vmatprep.subr.bf16.mxu0 %v1086_v41  ;;  %v1005_v28 = vld [vmem:[#allocation2] ss:$0 sm:$0xff] }
  0x25   :  { %702 = vmatpush1.bf16.msra.mxu1 %v1113_v60  ;;  %v278_v60 = vld [vmem:[%s1550_s6] sm:$0x3] }
  0x26   :  { %703 = vmatprep.subr.bf16.mxu1 %v1118_v61  ;;  %v283_v61 = vrot.slane %v278_v60, %v1457_v27 }
  0x27   :  { %467 = vmatpush1.bf16.msra.mxu0 %v1088_v42 }
  0x28   :  { %468 = vmatprep.subr.bf16.mxu0 %v1089_v43 }
  0x29   :  { %704 = vmatpush1.bf16.msra.mxu1 %v1116_v62  ;;  %v287_v62 = vrot.slane %v278_v60, %v1462_v29 }
  0x2a   :  { %705 = vmatprep.subr.bf16.mxu1 %v1121_v63 }
  0x2b   :  { %469 = vmatpush1.bf16.msra.mxu0 %v1091_v44  ;;  %v1154_v44 = vld [vmem:[%s1547_s7 + $0xe4] ss:$8 sps:$4 sm:$0xff]  }
  0x2c   :  { %470 = vmatprep.subr.bf16.mxu0 %v1092_v45  ;;  %v1152_v45 = vld [vmem:[%s1547_s7 + $0xe0] ss:$8 sps:$4 sm:$0xff]  }
  0x2d   :  { %706 = vmatpush1.bf16.msra.mxu1 %v1119_v0 }
  0x2e   :  { %707 = vmatprep.subr.bf16.mxu1 %v1124_v1 }
  0x2f   :  { %471 = vmatpush1.bf16.msra.mxu0 %v1094_v46  ;;  %v1157_v46 = vld [vmem:[%s1547_s7 + $0xf4] ss:$8 sps:$4 sm:$0xff]  }
  0x30   :  { %472 = vmatprep.subr.bf16.mxu0 %v1095_v47  ;;  %v1155_v47 = vld [vmem:[%s1547_s7 + $0xf0] ss:$8 sps:$4 sm:$0xff]  }
  0x31   :  { %708 = vmatpush1.bf16.msra.mxu1 %v1122_v2 }
  0x32   :  { %709 = vmatprep.subr.bf16.mxu1 %v1127_v3 }
  0x33   :  { %473 = vmatpush1.bf16.msra.mxu0 %v1097_v48  ;;  %v1158_v48 = vld [vmem:[%s1549_s9 + $0x40] sm:$0xff]  }
  0x34   :  { %474 = vmatprep.subr.bf16.mxu0 %v1098_v49  ;;  %v1159_v49 = vld [vmem:[%s1549_s9] sm:$0xff]  }
  0x35   :  { %710 = vmatpush1.bf16.msra.mxu1 %v1125_v4 }
  0x36   :  { %711 = vmatprep.subr.bf16.mxu1 %v1130_v5 }
  0x37   :  { %475 = vmatpush1.bf16.msra.mxu0 %v1100_v50  ;;  %v1160_v50 = vld [vmem:[%s1549_s9 + $0x48] sm:$0xff]  }
  0x38   :  { %476 = vmatprep.subr.bf16.mxu0 %v1101_v51  ;;  %v1161_v51 = vld [vmem:[%s1549_s9 + $0x8] sm:$0xff]  }
  0x39   :  { %712 = vmatpush1.bf16.msra.mxu1 %v1128_v6 }
  0x3a   :  { %713 = vmatprep.subr.bf16.mxu1 %v1133_v7 }
  0x3b   :  { %477 = vmatpush1.bf16.msra.mxu0 %v1103_v52  ;;  %v1162_v52 = vld [vmem:[%s1549_s9 + $0x50] sm:$0xff]  }
  0x3c   :  { %478 = vmatprep.subr.bf16.mxu0 %v1104_v53  ;;  %v1163_v53 = vld [vmem:[%s1549_s9 + $0x10] sm:$0xff]  }
  0x3d   :  { %714 = vmatpush1.bf16.msra.mxu1 %v1131_v8 }
  0x3e   :  { %715 = vmatprep.subr.bf16.mxu1 %v1136_v9  ;;  %v1170_v9 = vld [vmem:[%s1549_s9 + $0x70] sm:$0xff]  }
  0x3f   :  { %479 = vmatpush1.bf16.msra.mxu0 %v1106_v54  ;;  %v1164_v54 = vld [vmem:[%s1549_s9 + $0x58] sm:$0xff]  }
  0x40   :  { %480 = vmatprep.subr.bf16.mxu0 %v1107_v55  ;;  %v1165_v55 = vld [vmem:[%s1549_s9 + $0x18] sm:$0xff]  }
  0x41   :  { %716 = vmatpush1.bf16.msra.mxu1 %v1134_v10  ;;  %v1171_v10 = vld [vmem:[%s1549_s9 + $0x30] sm:$0xff]  }
  0x42   :  { %717 = vmatprep.subr.bf16.mxu1 %v1139_v11  ;;  %v1172_v11 = vld [vmem:[%s1549_s9 + $0x78] sm:$0xff]  }
  0x43   :  { %481 = vmatpush1.bf16.msra.mxu0 %v1109_v56  ;;  %v1166_v56 = vld [vmem:[%s1549_s9 + $0x60] sm:$0xff]  }
  0x44   :  { %1022 = vmatprep.subr.bf16.mxu0 %v1158_v48 }
  0x45   :  { %718 = vmatpush1.bf16.msra.mxu1 %v1137_v12  ;;  %v1173_v12 = vld [vmem:[%s1549_s9 + $0x38] sm:$0xff]  }
  0x46   :  { %719 = vmatprep.subr.bf16.mxu1 %v1142_v13  ;;  %v527_v13 = vld [vmem:[%s1551_s8] sm:$0x3] }
  0x49   :  { %720 = vmatpush1.bf16.msra.mxu1 %v1140_v14  ;;  %v532_v14 = vrot.slane %v527_v13, %v1457_v27 }
  0x4a   :  { %721 = vmatprep.subr.bf16.mxu1 %v1145_v15  ;;  %v536_v15 = vrot.slane %v527_v13, %v1462_v29 }
  0x4d   :  { %722 = vmatpush1.bf16.msra.mxu1 %v1143_v16 }
  0x4e   :  { %723 = vmatprep.subr.bf16.mxu1 %v1148_v17 }
  0x51   :  { %724 = vmatpush1.bf16.msra.mxu1 %v1146_v18 }
  0x52   :  { %725 = vmatprep.subr.bf16.mxu1 %v1151_v19 }
  0x55   :  { %726 = vmatpush1.bf16.msra.mxu1 %v1149_v20 }
  0x56   :  { %727 = vmatprep.subr.bf16.mxu1 %v1154_v44 }
  0x59   :  { %728 = vmatpush1.bf16.msra.mxu1 %v1152_v45 }
  0x5a   :  { %729 = vmatprep.subr.bf16.mxu1 %v1157_v46 }
  0x5d   :  { %730 = vmatpush1.bf16.msra.mxu1 %v1155_v47 }
  0xdb   :  { %v112_v21 = vpop.f32.mrb[0].mxu1 }
  0xdc   :  { %v114_v22 = vpop.f32.mrb[1].mxu1 }
  0xdd   :  { %v116_v23 = vpop.f32.mrb[2].mxu1 }
  0xde   :  { %v117_v24 = vpop.f32.mrb[3].mxu1 }
  0xf3   :  { %v221_v31 = vpop.f32.mrb[4].mxu1 }
  0xf4   :  { %v222_v33 = vadd.f32 %v221_v31, %v112_v21  ;;  %v223_v34 = vpop.f32.mrb[5].mxu1 }
  0xf5   :  { %v224_v35 = vadd.f32 %v223_v34, %v114_v22  ;;  %v225_v36 = vpop.f32.mrb[6].mxu1 }
  0xf6   :  { %v240_v37 = vadd.f32 %v233_v30, %v222_v33  ;;  %v226_v38 = vpop.f32.mrb[7].mxu1 }
  0xf7   :  { %v241_v39 = vadd.f32 %v237_v32, %v224_v35 }
  0xf8   :  { %v242_v40 = vmax.f32 %v240_v37, 0.0 }
  0xf9   :  { %v243_v41 = vmax.f32 %v241_v39, 0.0 }
  0xfa   :  { %v244_v43 = vpack.c.bf16 %v242_v40, %v242_v40 }
  0xfb   :  { %v245_v42 = vpack.c.bf16 %v243_v41, %v243_v41 }
  0xfd   :  { %482 = vmatprep.mubr.bf16.mxu0 %v245_v42 }
  0xfe   :  { %483 = vmatmul.mubr.bf16.vlgmr.msra.gmra.mrb[0].mxu0 %v244_v43 }
  0xff   :  { %1023 = vmatpush3.bf16.msra.mxu0 %v1159_v49 }
 0x100   :  { %1024 = vmatprep.subr.bf16.mxu0 %v1160_v50 }
 0x103   :  { %1025 = vmatpush3.bf16.msra.mxu0 %v1161_v51 }
 0x104   :  { %1026 = vmatprep.subr.bf16.mxu0 %v1162_v52 }
 0x107   :  { %1027 = vmatpush3.bf16.msra.mxu0 %v1163_v53 }
 0x108   :  { %1028 = vmatprep.subr.bf16.mxu0 %v1164_v54 }
 0x10b   :  { %1029 = vmatpush3.bf16.msra.mxu0 %v1165_v55 }
 0x10c   :  { %1030 = vmatprep.subr.bf16.mxu0 %v1166_v56 }
 0x10f   :  { %1031 = vmatpush3.bf16.msra.mxu0 %v1167_v57 }
 0x110   :  { %1032 = vmatprep.subr.bf16.mxu0 %v1168_v58 }
 0x113   :  { %1033 = vmatpush3.bf16.msra.mxu0 %v1169_v59 }
 0x114   :  { %1034 = vmatprep.subr.bf16.mxu0 %v1170_v9 }
 0x117   :  { %1035 = vmatpush3.bf16.msra.mxu0 %v1171_v10 }
 0x118   :  { %1036 = vmatprep.subr.bf16.mxu0 %v1172_v11 }
 0x11b   :  { %1037 = vmatpush3.bf16.msra.mxu0 %v1173_v12 }
 0x1d1   :  { %v484_v63 = vpop.f32.mrb[0].mxu0 }
 0x1d2   :  { %v485_v0 = vadd.f32 %v484_v63, %v283_v61  ;;  %v486_v1 = vpop.f32.mrb[1].mxu0 }
 0x1d3   :  { %v487_v2 = vadd.f32 %v486_v1, %v287_v62  ;;  %v488_v3 = vpop.f32.mrb[2].mxu0 }
 0x1d4   :  { %v491_v4 = vmax.f32 %v485_v0, 0.0  ;;  %v489_v5 = vpop.f32.mrb[3].mxu0 }
 0x1d5   :  { %v492_v6 = vmax.f32 %v487_v2, 0.0 }
 0x1d6   :  { %v493_v8 = vpack.c.bf16 %v491_v4, %v491_v4 }
 0x1d7   :  { %v494_v7 = vpack.c.bf16 %v492_v6, %v492_v6 }
 0x1d9   :  { %731 = vmatprep.mubr.bf16.mxu1 %v494_v7 }
 0x1da   :  { %732 = vmatmul.mubr.bf16.vlgmr.msra.gmra.mrb[8].mxu1 %v493_v8 }
 0x2ad   :  { %v733_v16 = vpop.f32.mrb[8].mxu1 }
 0x2ae   :  { %v734_v17 = vadd.f32 %v733_v16, %v532_v14  ;;  %v735_v18 = vpop.f32.mrb[9].mxu1 }
 0x2af   :  { %v736_v19 = vadd.f32 %v735_v18, %v536_v15  ;;  %v737_v20 = vpop.f32.mrb[10].mxu1 }
 0x2b0   :  { %v740_v21 = vmax.f32 %v734_v17, 0.0  ;;  %v738_v22 = vpop.f32.mrb[11].mxu1 }
 0x2b1   :  { %v741_v23 = vmax.f32 %v736_v19, 0.0 }
 0x2b2   :  { %v742_v25 = vpack.c.bf16 %v740_v21, %v740_v21 }
 0x2b3   :  { %v743_v24 = vpack.c.bf16 %v741_v23, %v741_v23 }
 0x2b5   :  { %911 = vmatprep.mubr.bf16.mxu0 %v743_v24 }
 0x2b6   :  { %912 = vmatmul.mubr.bf16.vlgmr.msra.gmra.mrb[4].mxu0 %v742_v25 }
 0x389   :  { %v1038_v27 = vpop.f32.mrb[4].mxu0 }
 0x38a   :  { %v1039_v29 = vpop.f32.mrb[5].mxu0 }
 0x38b   :  { %v1040_v30 = vadd.f32 %v1039_v29, %v1038_v27  ;;  %v1041_v31 = vpop.f32.mrb[6].mxu0 }
 0x38c   :  { %v1042_v32 = vpop.f32.mrb[7].mxu0 }
 0x38d   :  { %v914_v33 = vadd.f32 %v1040_v30, %v1005_v28 }
 0x38f   :  { %920 = vst.msk [vmem:[%s1553_s11] sm:$0x3] %vm919_vm4, %v914_v33 }

</bundles_post_ra>
